<compile_context>
chip_gen: v7x
topology: tpu7x:2x2x1
jax: 0.10.0
libtpu: 0.0.40
codegen_flags: <defaults>
</compile_context>

<pallas_src>
import math

import jax
import jax.numpy as jnp
import numpy as np
from jax import lax
from jax.experimental import pallas as pl
from jax.experimental.pallas import tpu as pltpu

# ---------------- config (small, consistent with the module) ----------------
BATCH = 2
SEQ = 16
HIDDEN = 128
NUM_HEADS = 4
HEAD_DIM = HIDDEN // NUM_HEADS
HALF = HEAD_DIM // 2
INTER = int(HIDDEN * 2.68)          # 343, as in the module
INTER_PAD = 384                     # zero-padded to a multiple of 128 (same math)
VOCAB = 64
NUM_LAYERS = 2
EPS = 1e-5
NEG_INF = -1e30
ROWS = BATCH * SEQ                  # batch flattened into rows


# ---------------- in-kernel helper ----------------
def _rmsnorm(x, w):
    # x: (R, H) f32, w: (1, H) f32 -- exact semantics of the RMSNorm module
    var = jnp.mean(x * x, axis=-1, keepdims=True)
    return w * (x * lax.rsqrt(var + EPS))


# ---------------- fused per-layer Pallas kernel (grid = layers) ----------------
def fused_layer_kernel(ids_ref,                                   # SMEM (scalar prefetch)
                       emb_ref, cos_ref, sina_ref, sinb_ref, bias_ref, hmask_ref,
                       ln1_ref, wq_ref, wk_ref, wv_ref, wo_ref,
                       ln2_ref, wg_ref, wu_ref, wd_ref, normw_ref,
                       out_ref, x_scr):
    l = pl.program_id(0)

    @pl.when(l == 0)
    def _init_residual():
        # Fused token-embedding gather: ids live in SMEM, the whole (VOCAB, H)
        # table (32 KiB) is VMEM-resident; one dynamic-row load + static-row
        # store per token.  Static unroll over ROWS=32.
        for r in range(ROWS):
            x_scr[pl.ds(r, 1), :] = emb_ref[pl.ds(ids_ref[r], 1), :]

    x = x_scr[...]                        # (ROWS, H) f32 residual stream
    cos = cos_ref[...]                    # (ROWS, H)
    sin_a = sina_ref[...]                 # (ROWS, H)  (-sin on first half of each head, else 0)
    sin_b = sinb_ref[...]                 # (ROWS, H)  (+sin on second half of each head, else 0)
    bias = bias_ref[...]                  # (ROWS, ROWS) additive block-diag causal mask

    def rope(t):
        # rotate_half over the full 128-lane width: two XLU lane rolls; the
        # per-head sign/selection is folded into sin_a / sin_b, which are zero
        # exactly on the lanes where the roll wraps across head boundaries
        # (see assert in rope_and_mask_tables()).
        left = pltpu.roll(t, HIDDEN - HALF, axis=1)   # t[:, j + HALF]
        right = pltpu.roll(t, HALF, axis=1)           # t[:, j - HALF]
        return t * cos + left * sin_a + right * sin_b

    # ---- attention block: x + Attn(RMSNorm(x)) ----
    h = _rmsnorm(x, ln1_ref[...]).astype(jnp.bfloat16)
    q = jnp.dot(h, wq_ref[...], preferred_element_type=jnp.float32)   # (ROWS, H)
    k = jnp.dot(h, wk_ref[...], preferred_element_type=jnp.float32)
    v = jnp.dot(h, wv_ref[...], preferred_element_type=jnp.float32)
    # single bf16 cast per operand, hoisted out of the head loop
    q16 = rope(q).astype(jnp.bfloat16)    # 1/sqrt(head_dim) pre-folded into Wq
    k16 = rope(k).astype(jnp.bfloat16)
    v16 = v.astype(jnp.bfloat16)

    attn = jnp.zeros((ROWS, HIDDEN), jnp.float32)
    for hh in range(NUM_HEADS):           # static unroll; no lane slicing / concat
        hm = hmask_ref[hh]                               # (1, H) bf16 0/1 head selector
        km = k16 * hm                                    # mask K lanes (bf16)
        # scores_h = q @ (mask_h * k)^T  (contraction over full 128 lanes)
        s = lax.dot_general(q16, km, (((1,), (1,)), ((), ())),
                            preferred_element_type=jnp.float32)        # (ROWS, ROWS)
        s = s + bias
        s = s - jnp.max(s, axis=-1, keepdims=True)
        p = jnp.exp(s)
        p = p * pl.reciprocal(jnp.sum(p, axis=-1, keepdims=True), approx=True)
        # V-mask moved to the output side (identical math: mask selects output lanes)
        attn = attn + jnp.dot(p.astype(jnp.bfloat16), v16,
                              preferred_element_type=jnp.float32) * hm
    x = x + jnp.dot(attn.astype(jnp.bfloat16), wo_ref[...],
                    preferred_element_type=jnp.float32)

    # ---- MLP block: x + Down(silu(Gate(h2)) * Up(h2)) ----
    h2 = _rmsnorm(x, ln2_ref[...]).astype(jnp.bfloat16)
    g = jnp.dot(h2, wg_ref[...], preferred_element_type=jnp.float32)   # (ROWS, 384)
    u = jnp.dot(h2, wu_ref[...], preferred_element_type=jnp.float32)
    m = ((g * jax.nn.sigmoid(g)) * u).astype(jnp.bfloat16)
    x = x + jnp.dot(m, wd_ref[...], preferred_element_type=jnp.float32)

    x_scr[...] = x                        # residual carried across grid steps

    @pl.when(l == NUM_LAYERS - 1)
    def _finalize():
        # ---- final RMSNorm (the spec'd module) ----
        out_ref[...] = _rmsnorm(x, normw_ref[...])


# ---------------- host-side tables & packed kernel params ----------------
def rope_and_mask_tables():
    # The in-kernel full-width roll wraps across head boundaries; correctness
    # relies on sin_a being nonzero only on the first HALF lanes of each head
    # and sin_b only on the second HALF lanes (where the roll stays in-head).
    assert HIDDEN % HEAD_DIM == 0 and 2 * HALF == HEAD_DIM
    inv_freq = 1.0 / (10000.0 ** (jnp.arange(0, HEAD_DIM, 2, dtype=jnp.float32) / HEAD_DIM))
    t = jnp.arange(SEQ, dtype=jnp.float32)
    freqs = jnp.outer(t, inv_freq)                        # (S, HEAD_DIM/2)
    emb = jnp.concatenate([freqs, freqs], axis=-1)        # (S, HEAD_DIM)
    cos, sin = jnp.cos(emb), jnp.sin(emb)
    # tile to the flattened (B*S, H) layout used by the kernel
    cos_f = jnp.tile(jnp.tile(cos, (1, NUM_HEADS)), (BATCH, 1))
    sin_h = jnp.tile(sin, (1, NUM_HEADS))
    lane = jnp.arange(HIDDEN) % HEAD_DIM
    first = (lane < HALF)[None, :]
    sin_a = jnp.tile(jnp.where(first, -sin_h, 0.0), (BATCH, 1)).astype(jnp.float32)
    sin_b = jnp.tile(jnp.where(first, 0.0, sin_h), (BATCH, 1)).astype(jnp.float32)
    # block-diagonal causal additive mask over flattened rows (f32 only!)
    r = jnp.arange(ROWS)
    same = (r[:, None] // SEQ) == (r[None, :] // SEQ)
    causal = r[None, :] <= r[:, None]
    bias = jnp.where(same & causal, 0.0, NEG_INF).astype(jnp.float32)
    # per-head lane selector masks (NH, 1, H), bf16 (exact 0/1)
    hmask = (jnp.arange(HIDDEN)[None, :] // HEAD_DIM ==
             jnp.arange(NUM_HEADS)[:, None]).astype(jnp.bfloat16).reshape(NUM_HEADS, 1, HIDDEN)
    return (cos_f.astype(jnp.float32), sin_a, sin_b, bias, hmask), (cos, sin)


def build_kernel_params(layers, norm_w):
    inv_scale = 1.0 / math.sqrt(HEAD_DIM)
    stack = lambda key: jnp.stack([p[key] for p in layers], axis=0)
    ln1 = stack("ln1")                                          # (L, 1, H) f32
    ln2 = stack("ln2")
    wq = (stack("wq") * inv_scale).astype(jnp.bfloat16)         # fold 1/sqrt(d) into Wq
    wk = stack("wk").astype(jnp.bfloat16)
    wv = stack("wv").astype(jnp.bfloat16)
    wo = stack("wo").astype(jnp.bfloat16)
    # zero-pad MLP intermediate dim 343 -> 384 (identical math, lane-dense)
    wg = jnp.zeros((NUM_LAYERS, HIDDEN, INTER_PAD), jnp.float32).at[:, :, :INTER].set(stack("wg")).astype(jnp.bfloat16)
    wu = jnp.zeros((NUM_LAYERS, HIDDEN, INTER_PAD), jnp.float32).at[:, :, :INTER].set(stack("wu")).astype(jnp.bfloat16)
    wd = jnp.zeros((NUM_LAYERS, INTER_PAD, HIDDEN), jnp.float32).at[:, :INTER, :].set(stack("wd")).astype(jnp.bfloat16)
    return (ln1, wq, wk, wv, wo, ln2, wg, wu, wd, norm_w)


@jax.jit
def retriever_forward(input_ids, emb_table, kparams, tables):
    cos_f, sin_a, sin_b, bias, hmask = tables
    ln1, wq, wk, wv, wo, ln2, wg, wu, wd, normw = kparams
    ids_flat = input_ids.reshape(ROWS).astype(jnp.int32)

    const2 = lambda l, ids: (0, 0)            # grid-invariant 2-D blocks
    const3 = lambda l, ids: (0, 0, 0)         # grid-invariant 3-D blocks
    perlayer = lambda l, ids: (l, 0, 0)       # per-layer weight blocks

    grid_spec = pltpu.PrefetchScalarGridSpec(
        num_scalar_prefetch=1,
        grid=(NUM_LAYERS,),
        in_specs=[
            pl.BlockSpec((VOCAB, HIDDEN), const2),                         # emb table (f32)
            pl.BlockSpec((ROWS, HIDDEN), const2),                          # cos
            pl.BlockSpec((ROWS, HIDDEN), const2),                          # sin_a
            pl.BlockSpec((ROWS, HIDDEN), const2),                          # sin_b
            pl.BlockSpec((ROWS, ROWS), const2),                            # causal bias
            pl.BlockSpec((NUM_HEADS, 1, HIDDEN), const3),                  # head masks (bf16)
            pl.BlockSpec((pl.Squeezed(), 1, HIDDEN), perlayer),            # ln1
            pl.BlockSpec((pl.Squeezed(), HIDDEN, HIDDEN), perlayer),       # wq
            pl.BlockSpec((pl.Squeezed(), HIDDEN, HIDDEN), perlayer),       # wk
            pl.BlockSpec((pl.Squeezed(), HIDDEN, HIDDEN), perlayer),       # wv
            pl.BlockSpec((pl.Squeezed(), HIDDEN, HIDDEN), perlayer),       # wo
            pl.BlockSpec((pl.Squeezed(), 1, HIDDEN), perlayer),            # ln2
            pl.BlockSpec((pl.Squeezed(), HIDDEN, INTER_PAD), perlayer),    # wg
            pl.BlockSpec((pl.Squeezed(), HIDDEN, INTER_PAD), perlayer),    # wu
            pl.BlockSpec((pl.Squeezed(), INTER_PAD, HIDDEN), perlayer),    # wd
            pl.BlockSpec((1, HIDDEN), const2),                             # final norm weight
        ],
        out_specs=pl.BlockSpec((ROWS, HIDDEN), const2),
        scratch_shapes=[pltpu.VMEM((ROWS, HIDDEN), jnp.float32)],          # residual stream
    )

    out = pl.pallas_call(
        fused_layer_kernel,
        out_shape=jax.ShapeDtypeStruct((ROWS, HIDDEN), jnp.float32),
        grid_spec=grid_spec,
        compiler_params=pltpu.CompilerParams(
            dimension_semantics=("arbitrary",),            # layer axis carries the residual
            vmem_limit_bytes=32 * 1024 * 1024),
    )(ids_flat, emb_table, cos_f, sin_a, sin_b, bias, hmask,
      ln1, wq, wk, wv, wo, ln2, wg, wu, wd, normw)
    return out.reshape(BATCH, SEQ, HIDDEN)


# ---------------- parameter init ----------------
def init_params(key):
    keys = jax.random.split(key, 1 + NUM_LAYERS)
    emb = jax.random.normal(keys[0], (VOCAB, HIDDEN), jnp.float32) * 0.02
    layers = []
    for li in range(NUM_LAYERS):
        ks = jax.random.split(keys[1 + li], 7)
        layers.append(dict(
            ln1=jnp.ones((1, HIDDEN), jnp.float32),
            # stored as (in, out) so kernel computes x @ W (== nn.Linear x @ W^T)
            wq=jax.random.normal(ks[0], (HIDDEN, HIDDEN), jnp.float32) * 0.02,
            wk=jax.random.normal(ks[1], (HIDDEN, HIDDEN), jnp.float32) * 0.02,
            wv=jax.random.normal(ks[2], (HIDDEN, HIDDEN), jnp.float32) * 0.02,
            wo=jax.random.normal(ks[3], (HIDDEN, HIDDEN), jnp.float32) * 0.02,
            ln2=jnp.ones((1, HIDDEN), jnp.float32),
            wg=jax.random.normal(ks[4], (HIDDEN, INTER), jnp.float32) * 0.02,
            wu=jax.random.normal(ks[5], (HIDDEN, INTER), jnp.float32) * 0.02,
            wd=jax.random.normal(ks[6], (INTER, HIDDEN), jnp.float32) * 0.02,
        ))
    norm_w = jnp.ones((1, HIDDEN), jnp.float32)
    return emb, layers, norm_w


# ---------------- pure-JAX f32 reference (same math, no Pallas, no padding) ----------------
def ref_forward(input_ids, emb_table, layers, norm_w, cos, sin):
    def rms(x, w):
        return w * (x * lax.rsqrt(jnp.mean(x * x, -1, keepdims=True) + EPS))

    def rot(x):
        h = x.shape[-1] // 2
        return jnp.concatenate([-x[..., h:], x[..., :h]], axis=-1)

    x = emb_table[input_ids].astype(jnp.float32)
    S = x.shape[1]
    causal = jnp.arange(S)[None, :] <= jnp.arange(S)[:, None]
    for p in layers:
        h = rms(x, p["ln1"][0])
        q = h @ p["wq"]; k = h @ p["wk"]; v = h @ p["wv"]
        q = q.reshape(BATCH, S, NUM_HEADS, HEAD_DIM).transpose(0, 2, 1, 3)
        k = k.reshape(BATCH, S, NUM_HEADS, HEAD_DIM).transpose(0, 2, 1, 3)
        v = v.reshape(BATCH, S, NUM_HEADS, HEAD_DIM).transpose(0, 2, 1, 3)
        q = q * cos + rot(q) * sin
        k = k * cos + rot(k) * sin
        sc = jnp.einsum("bhqd,bhkd->bhqk", q, k) / math.sqrt(HEAD_DIM)
        sc = jnp.where(causal, sc, NEG_INF)
        pr = jax.nn.softmax(sc, axis=-1)
        o = jnp.einsum("bhqk,bhkd->bhqd", pr, v)
        o = o.transpose(0, 2, 1, 3).reshape(BATCH, S, HIDDEN) @ p["wo"]
        x = x + o
        h2 = rms(x, p["ln2"][0])
        g = h2 @ p["wg"]; u = h2 @ p["wu"]
        x = x + (jax.nn.silu(g) * u) @ p["wd"]
    return rms(x, norm_w[0])


if __name__ == "__main__":
    key = jax.random.PRNGKey(0)
    k_ids, k_params = jax.random.split(key)
    input_ids = jax.random.randint(k_ids, (BATCH, SEQ), 0, VOCAB, dtype=jnp.int32)
    emb_table, layers, norm_w = init_params(k_params)

    tables, (cos, sin) = rope_and_mask_tables()
    kparams = build_kernel_params(layers, norm_w)

    out = retriever_forward(input_ids, emb_table, kparams, tables)
    out = jax.block_until_ready(out)

    ref = ref_forward(input_ids, emb_table, layers, norm_w, cos, sin)
    ref = jax.block_until_ready(ref)

    assert out.shape == (BATCH, SEQ, HIDDEN)
    assert bool(jnp.all(jnp.isfinite(out)))
    # bf16 MXU operands + approx reciprocal softmax denom vs. an f32 reference
    np.testing.assert_allclose(np.asarray(out), np.asarray(ref), rtol=2e-2, atol=2e-2)
    print("KERNEL_OK")
</pallas_src>

<mosaic_0001>
module attributes {stable_mosaic.version = 11 : i64} {
  func.func @fused_layer_kernel(%arg0: i32, %arg1: memref<32xi32, #tpu.memory_space<smem>>, %arg2: memref<64x128xf32, #tpu.memory_space<vmem>>, %arg3: memref<32x128xf32, #tpu.memory_space<vmem>>, %arg4: memref<32x128xf32, #tpu.memory_space<vmem>>, %arg5: memref<32x128xf32, #tpu.memory_space<vmem>>, %arg6: memref<32x32xf32, #tpu.memory_space<vmem>>, %arg7: memref<4x1x128xbf16, #tpu.memory_space<vmem>>, %arg8: memref<1x1x128xf32, #tpu.memory_space<vmem>>, %arg9: memref<1x128x128xbf16, #tpu.memory_space<vmem>>, %arg10: memref<1x128x128xbf16, #tpu.memory_space<vmem>>, %arg11: memref<1x128x128xbf16, #tpu.memory_space<vmem>>, %arg12: memref<1x128x128xbf16, #tpu.memory_space<vmem>>, %arg13: memref<1x1x128xf32, #tpu.memory_space<vmem>>, %arg14: memref<1x128x384xbf16, #tpu.memory_space<vmem>>, %arg15: memref<1x128x384xbf16, #tpu.memory_space<vmem>>, %arg16: memref<1x384x128xbf16, #tpu.memory_space<vmem>>, %arg17: memref<1x128xf32, #tpu.memory_space<vmem>>, %arg18: memref<32x128xf32, #tpu.memory_space<vmem>>, %arg19: memref<32x128xf32, #tpu.memory_space<vmem>>) attributes {dimension_semantics = [#tpu.dimension_semantics<arbitrary>], iteration_bounds = array<i64: 2>, scalar_prefetch = 1 : i64, scratch_operands = 1 : i64, tpu.core_type = #tpu.core_type<tc>, window_params = [{pipeline_mode = #tpu.pipeline_mode<synchronous>, transform_indices = @transform_0, window_bounds = array<i64: 64, 128>}, {pipeline_mode = #tpu.pipeline_mode<synchronous>, transform_indices = @transform_1, window_bounds = array<i64: 32, 128>}, {pipeline_mode = #tpu.pipeline_mode<synchronous>, transform_indices = @transform_2, window_bounds = array<i64: 32, 128>}, {pipeline_mode = #tpu.pipeline_mode<synchronous>, transform_indices = @transform_3, window_bounds = array<i64: 32, 128>}, {pipeline_mode = #tpu.pipeline_mode<synchronous>, transform_indices = @transform_4, window_bounds = array<i64: 32, 32>}, {pipeline_mode = #tpu.pipeline_mode<synchronous>, transform_indices = @transform_5, window_bounds = array<i64: 4, 1, 128>}, {transform_indices = @transform_6, window_bounds = array<i64: 1, 1, 128>}, {transform_indices = @transform_7, window_bounds = array<i64: 1, 128, 128>}, {transform_indices = @transform_8, window_bounds = array<i64: 1, 128, 128>}, {transform_indices = @transform_9, window_bounds = array<i64: 1, 128, 128>}, {transform_indices = @transform_10, window_bounds = array<i64: 1, 128, 128>}, {transform_indices = @transform_11, window_bounds = array<i64: 1, 1, 128>}, {transform_indices = @transform_12, window_bounds = array<i64: 1, 128, 384>}, {transform_indices = @transform_13, window_bounds = array<i64: 1, 128, 384>}, {transform_indices = @transform_14, window_bounds = array<i64: 1, 384, 128>}, {pipeline_mode = #tpu.pipeline_mode<synchronous>, transform_indices = @transform_15, window_bounds = array<i64: 1, 128>}, {pipeline_mode = #tpu.pipeline_mode<synchronous>, transform_indices = @transform_16, window_bounds = array<i64: 32, 128>}]} {
    %c0_i32 = arith.constant 0 : i32
    %0 = arith.cmpi eq, %arg0, %c0_i32 : i32
    %1 = arith.extui %0 : i1 to i32
    %c0_i32_0 = arith.constant 0 : i32
    %2 = arith.cmpi ne, %1, %c0_i32_0 : i32
    scf.if %2 {
      %c0_81 = arith.constant 0 : index
      %180 = memref.load %arg1[%c0_81] : memref<32xi32, #tpu.memory_space<smem>>
      %181 = arith.index_cast %180 : i32 to index
      %c0_82 = arith.constant 0 : index
      %182 = vector.load %arg2[%181, %c0_82] : memref<64x128xf32, #tpu.memory_space<vmem>>, vector<1x128xf32>
      %c0_83 = arith.constant 0 : index
      %c0_84 = arith.constant 0 : index
      %183 = vector.load %arg19[%c0_83, %c0_84] : memref<32x128xf32, #tpu.memory_space<vmem>>, vector<1x128xf32>
      tpu.vector_store %arg19[%c0_83, %c0_84], %182 {strides = array<i32>} : memref<32x128xf32, #tpu.memory_space<vmem>>, vector<1x128xf32>,
      %c1_85 = arith.constant 1 : index
      %184 = memref.load %arg1[%c1_85] : memref<32xi32, #tpu.memory_space<smem>>
      %185 = arith.index_cast %184 : i32 to index
      %c0_86 = arith.constant 0 : index
      %186 = vector.load %arg2[%185, %c0_86] : memref<64x128xf32, #tpu.memory_space<vmem>>, vector<1x128xf32>
      %c1_87 = arith.constant 1 : index
      %c0_88 = arith.constant 0 : index
      %187 = vector.load %arg19[%c1_87, %c0_88] : memref<32x128xf32, #tpu.memory_space<vmem>>, vector<1x128xf32>
      tpu.vector_store %arg19[%c1_87, %c0_88], %186 {strides = array<i32>} : memref<32x128xf32, #tpu.memory_space<vmem>>, vector<1x128xf32>,
      %c2_89 = arith.constant 2 : index
      %188 = memref.load %arg1[%c2_89] : memref<32xi32, #tpu.memory_space<smem>>
      %189 = arith.index_cast %188 : i32 to index
      %c0_90 = arith.constant 0 : index
      %190 = vector.load %arg2[%189, %c0_90] : memref<64x128xf32, #tpu.memory_space<vmem>>, vector<1x128xf32>
      %c2_91 = arith.constant 2 : index
      %c0_92 = arith.constant 0 : index
      %191 = vector.load %arg19[%c2_91, %c0_92] : memref<32x128xf32, #tpu.memory_space<vmem>>, vector<1x128xf32>
      tpu.vector_store %arg19[%c2_91, %c0_92], %190 {strides = array<i32>} : memref<32x128xf32, #tpu.memory_space<vmem>>, vector<1x128xf32>,
      %c3_93 = arith.constant 3 : index
      %192 = memref.load %arg1[%c3_93] : memref<32xi32, #tpu.memory_space<smem>>
      %193 = arith.index_cast %192 : i32 to index
      %c0_94 = arith.constant 0 : index
      %194 = vector.load %arg2[%193, %c0_94] : memref<64x128xf32, #tpu.memory_space<vmem>>, vector<1x128xf32>
      %c3_95 = arith.constant 3 : index
      %c0_96 = arith.constant 0 : index
      %195 = vector.load %arg19[%c3_95, %c0_96] : memref<32x128xf32, #tpu.memory_space<vmem>>, vector<1x128xf32>
      tpu.vector_store %arg19[%c3_95, %c0_96], %194 {strides = array<i32>} : memref<32x128xf32, #tpu.memory_space<vmem>>, vector<1x128xf32>,
      %c4 = arith.constant 4 : index
      %196 = memref.load %arg1[%c4] : memref<32xi32, #tpu.memory_space<smem>>
      %197 = arith.index_cast %196 : i32 to index
      %c0_97 = arith.constant 0 : index
      %198 = vector.load %arg2[%197, %c0_97] : memref<64x128xf32, #tpu.memory_space<vmem>>, vector<1x128xf32>
      %c4_98 = arith.constant 4 : index
      %c0_99 = arith.constant 0 : index
      %199 = vector.load %arg19[%c4_98, %c0_99] : memref<32x128xf32, #tpu.memory_space<vmem>>, vector<1x128xf32>
      tpu.vector_store %arg19[%c4_98, %c0_99], %198 {strides = array<i32>} : memref<32x128xf32, #tpu.memory_space<vmem>>, vector<1x128xf32>,
      %c5 = arith.constant 5 : index
      %200 = memref.load %arg1[%c5] : memref<32xi32, #tpu.memory_space<smem>>
      %201 = arith.index_cast %200 : i32 to index
      %c0_100 = arith.constant 0 : index
      %202 = vector.load %arg2[%201, %c0_100] : memref<64x128xf32, #tpu.memory_space<vmem>>, vector<1x128xf32>
      %c5_101 = arith.constant 5 : index
      %c0_102 = arith.constant 0 : index
      %203 = vector.load %arg19[%c5_101, %c0_102] : memref<32x128xf32, #tpu.memory_space<vmem>>, vector<1x128xf32>
      tpu.vector_store %arg19[%c5_101, %c0_102], %202 {strides = array<i32>} : memref<32x128xf32, #tpu.memory_space<vmem>>, vector<1x128xf32>,
      %c6 = arith.constant 6 : index
      %204 = memref.load %arg1[%c6] : memref<32xi32, #tpu.memory_space<smem>>
      %205 = arith.index_cast %204 : i32 to index
      %c0_103 = arith.constant 0 : index
      %206 = vector.load %arg2[%205, %c0_103] : memref<64x128xf32, #tpu.memory_space<vmem>>, vector<1x128xf32>
      %c6_104 = arith.constant 6 : index
      %c0_105 = arith.constant 0 : index
      %207 = vector.load %arg19[%c6_104, %c0_105] : memref<32x128xf32, #tpu.memory_space<vmem>>, vector<1x128xf32>
      tpu.vector_store %arg19[%c6_104, %c0_105], %206 {strides = array<i32>} : memref<32x128xf32, #tpu.memory_space<vmem>>, vector<1x128xf32>,
      %c7 = arith.constant 7 : index
      %208 = memref.load %arg1[%c7] : memref<32xi32, #tpu.memory_space<smem>>
      %209 = arith.index_cast %208 : i32 to index
      %c0_106 = arith.constant 0 : index
      %210 = vector.load %arg2[%209, %c0_106] : memref<64x128xf32, #tpu.memory_space<vmem>>, vector<1x128xf32>
      %c7_107 = arith.constant 7 : index
      %c0_108 = arith.constant 0 : index
      %211 = vector.load %arg19[%c7_107, %c0_108] : memref<32x128xf32, #tpu.memory_space<vmem>>, vector<1x128xf32>
      tpu.vector_store %arg19[%c7_107, %c0_108], %210 {strides = array<i32>} : memref<32x128xf32, #tpu.memory_space<vmem>>, vector<1x128xf32>,
      %c8 = arith.constant 8 : index
      %212 = memref.load %arg1[%c8] : memref<32xi32, #tpu.memory_space<smem>>
      %213 = arith.index_cast %212 : i32 to index
      %c0_109 = arith.constant 0 : index
      %214 = vector.load %arg2[%213, %c0_109] : memref<64x128xf32, #tpu.memory_space<vmem>>, vector<1x128xf32>
      %c8_110 = arith.constant 8 : index
      %c0_111 = arith.constant 0 : index
      %215 = vector.load %arg19[%c8_110, %c0_111] : memref<32x128xf32, #tpu.memory_space<vmem>>, vector<1x128xf32>
      tpu.vector_store %arg19[%c8_110, %c0_111], %214 {strides = array<i32>} : memref<32x128xf32, #tpu.memory_space<vmem>>, vector<1x128xf32>,
      %c9 = arith.constant 9 : index
      %216 = memref.load %arg1[%c9] : memref<32xi32, #tpu.memory_space<smem>>
      %217 = arith.index_cast %216 : i32 to index
      %c0_112 = arith.constant 0 : index
      %218 = vector.load %arg2[%217, %c0_112] : memref<64x128xf32, #tpu.memory_space<vmem>>, vector<1x128xf32>
      %c9_113 = arith.constant 9 : index
      %c0_114 = arith.constant 0 : index
      %219 = vector.load %arg19[%c9_113, %c0_114] : memref<32x128xf32, #tpu.memory_space<vmem>>, vector<1x128xf32>
      tpu.vector_store %arg19[%c9_113, %c0_114], %218 {strides = array<i32>} : memref<32x128xf32, #tpu.memory_space<vmem>>, vector<1x128xf32>,
      %c10 = arith.constant 10 : index
      %220 = memref.load %arg1[%c10] : memref<32xi32, #tpu.memory_space<smem>>
      %221 = arith.index_cast %220 : i32 to index
      %c0_115 = arith.constant 0 : index
      %222 = vector.load %arg2[%221, %c0_115] : memref<64x128xf32, #tpu.memory_space<vmem>>, vector<1x128xf32>
      %c10_116 = arith.constant 10 : index
      %c0_117 = arith.constant 0 : index
      %223 = vector.load %arg19[%c10_116, %c0_117] : memref<32x128xf32, #tpu.memory_space<vmem>>, vector<1x128xf32>
      tpu.vector_store %arg19[%c10_116, %c0_117], %222 {strides = array<i32>} : memref<32x128xf32, #tpu.memory_space<vmem>>, vector<1x128xf32>,
      %c11 = arith.constant 11 : index
      %224 = memref.load %arg1[%c11] : memref<32xi32, #tpu.memory_space<smem>>
      %225 = arith.index_cast %224 : i32 to index
      %c0_118 = arith.constant 0 : index
      %226 = vector.load %arg2[%225, %c0_118] : memref<64x128xf32, #tpu.memory_space<vmem>>, vector<1x128xf32>
      %c11_119 = arith.constant 11 : index
      %c0_120 = arith.constant 0 : index
      %227 = vector.load %arg19[%c11_119, %c0_120] : memref<32x128xf32, #tpu.memory_space<vmem>>, vector<1x128xf32>
      tpu.vector_store %arg19[%c11_119, %c0_120], %226 {strides = array<i32>} : memref<32x128xf32, #tpu.memory_space<vmem>>, vector<1x128xf32>,
      %c12 = arith.constant 12 : index
      %228 = memref.load %arg1[%c12] : memref<32xi32, #tpu.memory_space<smem>>
      %229 = arith.index_cast %228 : i32 to index
      %c0_121 = arith.constant 0 : index
      %230 = vector.load %arg2[%229, %c0_121] : memref<64x128xf32, #tpu.memory_space<vmem>>, vector<1x128xf32>
      %c12_122 = arith.constant 12 : index
      %c0_123 = arith.constant 0 : index
      %231 = vector.load %arg19[%c12_122, %c0_123] : memref<32x128xf32, #tpu.memory_space<vmem>>, vector<1x128xf32>
      tpu.vector_store %arg19[%c12_122, %c0_123], %230 {strides = array<i32>} : memref<32x128xf32, #tpu.memory_space<vmem>>, vector<1x128xf32>,
      %c13 = arith.constant 13 : index
      %232 = memref.load %arg1[%c13] : memref<32xi32, #tpu.memory_space<smem>>
      %233 = arith.index_cast %232 : i32 to index
      %c0_124 = arith.constant 0 : index
      %234 = vector.load %arg2[%233, %c0_124] : memref<64x128xf32, #tpu.memory_space<vmem>>, vector<1x128xf32>
      %c13_125 = arith.constant 13 : index
      %c0_126 = arith.constant 0 : index
      %235 = vector.load %arg19[%c13_125, %c0_126] : memref<32x128xf32, #tpu.memory_space<vmem>>, vector<1x128xf32>
      tpu.vector_store %arg19[%c13_125, %c0_126], %234 {strides = array<i32>} : memref<32x128xf32, #tpu.memory_space<vmem>>, vector<1x128xf32>,
      %c14 = arith.constant 14 : index
      %236 = memref.load %arg1[%c14] : memref<32xi32, #tpu.memory_space<smem>>
      %237 = arith.index_cast %236 : i32 to index
      %c0_127 = arith.constant 0 : index
      %238 = vector.load %arg2[%237, %c0_127] : memref<64x128xf32, #tpu.memory_space<vmem>>, vector<1x128xf32>
      %c14_128 = arith.constant 14 : index
      %c0_129 = arith.constant 0 : index
      %239 = vector.load %arg19[%c14_128, %c0_129] : memref<32x128xf32, #tpu.memory_space<vmem>>, vector<1x128xf32>
      tpu.vector_store %arg19[%c14_128, %c0_129], %238 {strides = array<i32>} : memref<32x128xf32, #tpu.memory_space<vmem>>, vector<1x128xf32>,
      %c15 = arith.constant 15 : index
      %240 = memref.load %arg1[%c15] : memref<32xi32, #tpu.memory_space<smem>>
      %241 = arith.index_cast %240 : i32 to index
      %c0_130 = arith.constant 0 : index
      %242 = vector.load %arg2[%241, %c0_130] : memref<64x128xf32, #tpu.memory_space<vmem>>, vector<1x128xf32>
      %c15_131 = arith.constant 15 : index
      %c0_132 = arith.constant 0 : index
      %243 = vector.load %arg19[%c15_131, %c0_132] : memref<32x128xf32, #tpu.memory_space<vmem>>, vector<1x128xf32>
      tpu.vector_store %arg19[%c15_131, %c0_132], %242 {strides = array<i32>} : memref<32x128xf32, #tpu.memory_space<vmem>>, vector<1x128xf32>,
      %c16 = arith.constant 16 : index
      %244 = memref.load %arg1[%c16] : memref<32xi32, #tpu.memory_space<smem>>
      %245 = arith.index_cast %244 : i32 to index
      %c0_133 = arith.constant 0 : index
      %246 = vector.load %arg2[%245, %c0_133] : memref<64x128xf32, #tpu.memory_space<vmem>>, vector<1x128xf32>
      %c16_134 = arith.constant 16 : index
      %c0_135 = arith.constant 0 : index
      %247 = vector.load %arg19[%c16_134, %c0_135] : memref<32x128xf32, #tpu.memory_space<vmem>>, vector<1x128xf32>
      tpu.vector_store %arg19[%c16_134, %c0_135], %246 {strides = array<i32>} : memref<32x128xf32, #tpu.memory_space<vmem>>, vector<1x128xf32>,
      %c17 = arith.constant 17 : index
      %248 = memref.load %arg1[%c17] : memref<32xi32, #tpu.memory_space<smem>>
      %249 = arith.index_cast %248 : i32 to index
      %c0_136 = arith.constant 0 : index
      %250 = vector.load %arg2[%249, %c0_136] : memref<64x128xf32, #tpu.memory_space<vmem>>, vector<1x128xf32>
      %c17_137 = arith.constant 17 : index
      %c0_138 = arith.constant 0 : index
      %251 = vector.load %arg19[%c17_137, %c0_138] : memref<32x128xf32, #tpu.memory_space<vmem>>, vector<1x128xf32>
      tpu.vector_store %arg19[%c17_137, %c0_138], %250 {strides = array<i32>} : memref<32x128xf32, #tpu.memory_space<vmem>>, vector<1x128xf32>,
      %c18 = arith.constant 18 : index
      %252 = memref.load %arg1[%c18] : memref<32xi32, #tpu.memory_space<smem>>
      %253 = arith.index_cast %252 : i32 to index
      %c0_139 = arith.constant 0 : index
      %254 = vector.load %arg2[%253, %c0_139] : memref<64x128xf32, #tpu.memory_space<vmem>>, vector<1x128xf32>
      %c18_140 = arith.constant 18 : index
      %c0_141 = arith.constant 0 : index
      %255 = vector.load %arg19[%c18_140, %c0_141] : memref<32x128xf32, #tpu.memory_space<vmem>>, vector<1x128xf32>
      tpu.vector_store %arg19[%c18_140, %c0_141], %254 {strides = array<i32>} : memref<32x128xf32, #tpu.memory_space<vmem>>, vector<1x128xf32>,
      %c19 = arith.constant 19 : index
      %256 = memref.load %arg1[%c19] : memref<32xi32, #tpu.memory_space<smem>>
      %257 = arith.index_cast %256 : i32 to index
      %c0_142 = arith.constant 0 : index
      %258 = vector.load %arg2[%257, %c0_142] : memref<64x128xf32, #tpu.memory_space<vmem>>, vector<1x128xf32>
      %c19_143 = arith.constant 19 : index
      %c0_144 = arith.constant 0 : index
      %259 = vector.load %arg19[%c19_143, %c0_144] : memref<32x128xf32, #tpu.memory_space<vmem>>, vector<1x128xf32>
      tpu.vector_store %arg19[%c19_143, %c0_144], %258 {strides = array<i32>} : memref<32x128xf32, #tpu.memory_space<vmem>>, vector<1x128xf32>,
      %c20 = arith.constant 20 : index
      %260 = memref.load %arg1[%c20] : memref<32xi32, #tpu.memory_space<smem>>
      %261 = arith.index_cast %260 : i32 to index
      %c0_145 = arith.constant 0 : index
      %262 = vector.load %arg2[%261, %c0_145] : memref<64x128xf32, #tpu.memory_space<vmem>>, vector<1x128xf32>
      %c20_146 = arith.constant 20 : index
      %c0_147 = arith.constant 0 : index
      %263 = vector.load %arg19[%c20_146, %c0_147] : memref<32x128xf32, #tpu.memory_space<vmem>>, vector<1x128xf32>
      tpu.vector_store %arg19[%c20_146, %c0_147], %262 {strides = array<i32>} : memref<32x128xf32, #tpu.memory_space<vmem>>, vector<1x128xf32>,
      %c21 = arith.constant 21 : index
      %264 = memref.load %arg1[%c21] : memref<32xi32, #tpu.memory_space<smem>>
      %265 = arith.index_cast %264 : i32 to index
      %c0_148 = arith.constant 0 : index
      %266 = vector.load %arg2[%265, %c0_148] : memref<64x128xf32, #tpu.memory_space<vmem>>, vector<1x128xf32>
      %c21_149 = arith.constant 21 : index
      %c0_150 = arith.constant 0 : index
      %267 = vector.load %arg19[%c21_149, %c0_150] : memref<32x128xf32, #tpu.memory_space<vmem>>, vector<1x128xf32>
      tpu.vector_store %arg19[%c21_149, %c0_150], %266 {strides = array<i32>} : memref<32x128xf32, #tpu.memory_space<vmem>>, vector<1x128xf32>,
      %c22 = arith.constant 22 : index
      %268 = memref.load %arg1[%c22] : memref<32xi32, #tpu.memory_space<smem>>
      %269 = arith.index_cast %268 : i32 to index
      %c0_151 = arith.constant 0 : index
      %270 = vector.load %arg2[%269, %c0_151] : memref<64x128xf32, #tpu.memory_space<vmem>>, vector<1x128xf32>
      %c22_152 = arith.constant 22 : index
      %c0_153 = arith.constant 0 : index
      %271 = vector.load %arg19[%c22_152, %c0_153] : memref<32x128xf32, #tpu.memory_space<vmem>>, vector<1x128xf32>
      tpu.vector_store %arg19[%c22_152, %c0_153], %270 {strides = array<i32>} : memref<32x128xf32, #tpu.memory_space<vmem>>, vector<1x128xf32>,
      %c23 = arith.constant 23 : index
      %272 = memref.load %arg1[%c23] : memref<32xi32, #tpu.memory_space<smem>>
      %273 = arith.index_cast %272 : i32 to index
      %c0_154 = arith.constant 0 : index
      %274 = vector.load %arg2[%273, %c0_154] : memref<64x128xf32, #tpu.memory_space<vmem>>, vector<1x128xf32>
      %c23_155 = arith.constant 23 : index
      %c0_156 = arith.constant 0 : index
      %275 = vector.load %arg19[%c23_155, %c0_156] : memref<32x128xf32, #tpu.memory_space<vmem>>, vector<1x128xf32>
      tpu.vector_store %arg19[%c23_155, %c0_156], %274 {strides = array<i32>} : memref<32x128xf32, #tpu.memory_space<vmem>>, vector<1x128xf32>,
      %c24 = arith.constant 24 : index
      %276 = memref.load %arg1[%c24] : memref<32xi32, #tpu.memory_space<smem>>
      %277 = arith.index_cast %276 : i32 to index
      %c0_157 = arith.constant 0 : index
      %278 = vector.load %arg2[%277, %c0_157] : memref<64x128xf32, #tpu.memory_space<vmem>>, vector<1x128xf32>
      %c24_158 = arith.constant 24 : index
      %c0_159 = arith.constant 0 : index
      %279 = vector.load %arg19[%c24_158, %c0_159] : memref<32x128xf32, #tpu.memory_space<vmem>>, vector<1x128xf32>
      tpu.vector_store %arg19[%c24_158, %c0_159], %278 {strides = array<i32>} : memref<32x128xf32, #tpu.memory_space<vmem>>, vector<1x128xf32>,
      %c25 = arith.constant 25 : index
      %280 = memref.load %arg1[%c25] : memref<32xi32, #tpu.memory_space<smem>>
      %281 = arith.index_cast %280 : i32 to index
      %c0_160 = arith.constant 0 : index
      %282 = vector.load %arg2[%281, %c0_160] : memref<64x128xf32, #tpu.memory_space<vmem>>, vector<1x128xf32>
      %c25_161 = arith.constant 25 : index
      %c0_162 = arith.constant 0 : index
      %283 = vector.load %arg19[%c25_161, %c0_162] : memref<32x128xf32, #tpu.memory_space<vmem>>, vector<1x128xf32>
      tpu.vector_store %arg19[%c25_161, %c0_162], %282 {strides = array<i32>} : memref<32x128xf32, #tpu.memory_space<vmem>>, vector<1x128xf32>,
      %c26 = arith.constant 26 : index
      %284 = memref.load %arg1[%c26] : memref<32xi32, #tpu.memory_space<smem>>
      %285 = arith.index_cast %284 : i32 to index
      %c0_163 = arith.constant 0 : index
      %286 = vector.load %arg2[%285, %c0_163] : memref<64x128xf32, #tpu.memory_space<vmem>>, vector<1x128xf32>
      %c26_164 = arith.constant 26 : index
      %c0_165 = arith.constant 0 : index
      %287 = vector.load %arg19[%c26_164, %c0_165] : memref<32x128xf32, #tpu.memory_space<vmem>>, vector<1x128xf32>
      tpu.vector_store %arg19[%c26_164, %c0_165], %286 {strides = array<i32>} : memref<32x128xf32, #tpu.memory_space<vmem>>, vector<1x128xf32>,
      %c27 = arith.constant 27 : index
      %288 = memref.load %arg1[%c27] : memref<32xi32, #tpu.memory_space<smem>>
      %289 = arith.index_cast %288 : i32 to index
      %c0_166 = arith.constant 0 : index
      %290 = vector.load %arg2[%289, %c0_166] : memref<64x128xf32, #tpu.memory_space<vmem>>, vector<1x128xf32>
      %c27_167 = arith.constant 27 : index
      %c0_168 = arith.constant 0 : index
      %291 = vector.load %arg19[%c27_167, %c0_168] : memref<32x128xf32, #tpu.memory_space<vmem>>, vector<1x128xf32>
      tpu.vector_store %arg19[%c27_167, %c0_168], %290 {strides = array<i32>} : memref<32x128xf32, #tpu.memory_space<vmem>>, vector<1x128xf32>,
      %c28 = arith.constant 28 : index
      %292 = memref.load %arg1[%c28] : memref<32xi32, #tpu.memory_space<smem>>
      %293 = arith.index_cast %292 : i32 to index
      %c0_169 = arith.constant 0 : index
      %294 = vector.load %arg2[%293, %c0_169] : memref<64x128xf32, #tpu.memory_space<vmem>>, vector<1x128xf32>
      %c28_170 = arith.constant 28 : index
      %c0_171 = arith.constant 0 : index
      %295 = vector.load %arg19[%c28_170, %c0_171] : memref<32x128xf32, #tpu.memory_space<vmem>>, vector<1x128xf32>
      tpu.vector_store %arg19[%c28_170, %c0_171], %294 {strides = array<i32>} : memref<32x128xf32, #tpu.memory_space<vmem>>, vector<1x128xf32>,
      %c29 = arith.constant 29 : index
      %296 = memref.load %arg1[%c29] : memref<32xi32, #tpu.memory_space<smem>>
      %297 = arith.index_cast %296 : i32 to index
      %c0_172 = arith.constant 0 : index
      %298 = vector.load %arg2[%297, %c0_172] : memref<64x128xf32, #tpu.memory_space<vmem>>, vector<1x128xf32>
      %c29_173 = arith.constant 29 : index
      %c0_174 = arith.constant 0 : index
      %299 = vector.load %arg19[%c29_173, %c0_174] : memref<32x128xf32, #tpu.memory_space<vmem>>, vector<1x128xf32>
      tpu.vector_store %arg19[%c29_173, %c0_174], %298 {strides = array<i32>} : memref<32x128xf32, #tpu.memory_space<vmem>>, vector<1x128xf32>,
      %c30 = arith.constant 30 : index
      %300 = memref.load %arg1[%c30] : memref<32xi32, #tpu.memory_space<smem>>
      %301 = arith.index_cast %300 : i32 to index
      %c0_175 = arith.constant 0 : index
      %302 = vector.load %arg2[%301, %c0_175] : memref<64x128xf32, #tpu.memory_space<vmem>>, vector<1x128xf32>
      %c30_176 = arith.constant 30 : index
      %c0_177 = arith.constant 0 : index
      %303 = vector.load %arg19[%c30_176, %c0_177] : memref<32x128xf32, #tpu.memory_space<vmem>>, vector<1x128xf32>
      tpu.vector_store %arg19[%c30_176, %c0_177], %302 {strides = array<i32>} : memref<32x128xf32, #tpu.memory_space<vmem>>, vector<1x128xf32>,
      %c31 = arith.constant 31 : index
      %304 = memref.load %arg1[%c31] : memref<32xi32, #tpu.memory_space<smem>>
      %305 = arith.index_cast %304 : i32 to index
      %c0_178 = arith.constant 0 : index
      %306 = vector.load %arg2[%305, %c0_178] : memref<64x128xf32, #tpu.memory_space<vmem>>, vector<1x128xf32>
      %c31_179 = arith.constant 31 : index
      %c0_180 = arith.constant 0 : index
      %307 = vector.load %arg19[%c31_179, %c0_180] : memref<32x128xf32, #tpu.memory_space<vmem>>, vector<1x128xf32>
      tpu.vector_store %arg19[%c31_179, %c0_180], %306 {strides = array<i32>} : memref<32x128xf32, #tpu.memory_space<vmem>>, vector<1x128xf32>,
    } else {
    }
    %c0 = arith.constant 0 : index
    %c0_1 = arith.constant 0 : index
    %3 = vector.load %arg19[%c0, %c0_1] : memref<32x128xf32, #tpu.memory_space<vmem>>, vector<32x128xf32>
    %c0_2 = arith.constant 0 : index
    %c0_3 = arith.constant 0 : index
    %4 = vector.load %arg3[%c0_2, %c0_3] : memref<32x128xf32, #tpu.memory_space<vmem>>, vector<32x128xf32>
    %c0_4 = arith.constant 0 : index
    %c0_5 = arith.constant 0 : index
    %5 = vector.load %arg4[%c0_4, %c0_5] : memref<32x128xf32, #tpu.memory_space<vmem>>, vector<32x128xf32>
    %c0_6 = arith.constant 0 : index
    %c0_7 = arith.constant 0 : index
    %6 = vector.load %arg5[%c0_6, %c0_7] : memref<32x128xf32, #tpu.memory_space<vmem>>, vector<32x128xf32>
    %c0_8 = arith.constant 0 : index
    %c0_9 = arith.constant 0 : index
    %7 = vector.load %arg6[%c0_8, %c0_9] : memref<32x32xf32, #tpu.memory_space<vmem>>, vector<32x32xf32>
    %c0_10 = arith.constant 0 : index
    %c0_11 = arith.constant 0 : index
    %c0_12 = arith.constant 0 : index
    %8 = vector.load %arg8[%c0_10, %c0_11, %c0_12] : memref<1x1x128xf32, #tpu.memory_space<vmem>>, vector<1x1x128xf32>
    %9 = vector.shape_cast %8 : vector<1x1x128xf32> to vector<1x128xf32>
    %10 = arith.mulf %3, %3 : vector<32x128xf32>
    %cst = arith.constant dense<0.000000e+00> : vector<32xf32>
    %11 = vector.multi_reduction <add>, %10, %cst [1] : vector<32x128xf32> to vector<32xf32>
    %12 = vector.shape_cast %11 : vector<32xf32> to vector<32x1xf32>
    %cst_13 = arith.constant 1.280000e+02 : f32
    %13 = vector.broadcast %cst_13 : f32 to vector<32x1xf32>
    %14 = arith.divf %12, %13 : vector<32x1xf32>
    %cst_14 = arith.constant 9.99999974E-6 : f32
    %15 = vector.broadcast %cst_14 : f32 to vector<32x1xf32>
    %16 = arith.addf %14, %15 : vector<32x1xf32>
    %17 = math.rsqrt %16 : vector<32x1xf32>
    %18 = vector.broadcast %17 : vector<32x1xf32> to vector<32x128xf32>
    %19 = arith.mulf %3, %18 : vector<32x128xf32>
    %20 = vector.broadcast %9 : vector<1x128xf32> to vector<32x128xf32>
    %21 = arith.mulf %20, %19 : vector<32x128xf32>
    %22 = arith.truncf %21 : vector<32x128xf32> to vector<32x128xbf16>
    %c0_15 = arith.constant 0 : index
    %c0_16 = arith.constant 0 : index
    %c0_17 = arith.constant 0 : index
    %23 = vector.load %arg9[%c0_15, %c0_16, %c0_17] : memref<1x128x128xbf16, #tpu.memory_space<vmem>>, vector<1x128x128xbf16>
    %24 = vector.shape_cast %23 : vector<1x128x128xbf16> to vector<128x128xbf16>
    %cst_18 = arith.constant dense<0.000000e+00> : vector<32x128xf32>
    %25 = tpu.matmul %22, %24, %cst_18 {dimension_numbers = #tpu.dot_dimension_numbers<[1], [0], [0], [1], [0, 0, 1, 1], [], []>} : vector<32x128xbf16>, vector<128x128xbf16>, vector<32x128xf32> -> vector<32x128xf32>
    %c0_19 = arith.constant 0 : index
    %c0_20 = arith.constant 0 : index
    %c0_21 = arith.constant 0 : index
    %26 = vector.load %arg10[%c0_19, %c0_20, %c0_21] : memref<1x128x128xbf16, #tpu.memory_space<vmem>>, vector<1x128x128xbf16>
    %27 = vector.shape_cast %26 : vector<1x128x128xbf16> to vector<128x128xbf16>
    %cst_22 = arith.constant dense<0.000000e+00> : vector<32x128xf32>
    %28 = tpu.matmul %22, %27, %cst_22 {dimension_numbers = #tpu.dot_dimension_numbers<[1], [0], [0], [1], [0, 0, 1, 1], [], []>} : vector<32x128xbf16>, vector<128x128xbf16>, vector<32x128xf32> -> vector<32x128xf32>
    %c0_23 = arith.constant 0 : index
    %c0_24 = arith.constant 0 : index
    %c0_25 = arith.constant 0 : index
    %29 = vector.load %arg11[%c0_23, %c0_24, %c0_25] : memref<1x128x128xbf16, #tpu.memory_space<vmem>>, vector<1x128x128xbf16>
    %30 = vector.shape_cast %29 : vector<1x128x128xbf16> to vector<128x128xbf16>
    %cst_26 = arith.constant dense<0.000000e+00> : vector<32x128xf32>
    %31 = tpu.matmul %22, %30, %cst_26 {dimension_numbers = #tpu.dot_dimension_numbers<[1], [0], [0], [1], [0, 0, 1, 1], [], []>} : vector<32x128xbf16>, vector<128x128xbf16>, vector<32x128xf32> -> vector<32x128xf32>
    %c112_i32 = arith.constant 112 : i32
    %32 = tpu.dynamic_rotate %25 by %c112_i32 dim 1 : vector<32x128xf32>, i32 -> vector<32x128xf32>
    %c16_i32 = arith.constant 16 : i32
    %33 = tpu.dynamic_rotate %25 by %c16_i32 dim 1 : vector<32x128xf32>, i32 -> vector<32x128xf32>
    %34 = arith.mulf %25, %4 : vector<32x128xf32>
    %35 = arith.mulf %32, %5 : vector<32x128xf32>
    %36 = arith.addf %34, %35 : vector<32x128xf32>
    %37 = arith.mulf %33, %6 : vector<32x128xf32>
    %38 = arith.addf %36, %37 : vector<32x128xf32>
    %39 = arith.truncf %38 : vector<32x128xf32> to vector<32x128xbf16>
    %c112_i32_27 = arith.constant 112 : i32
    %40 = tpu.dynamic_rotate %28 by %c112_i32_27 dim 1 : vector<32x128xf32>, i32 -> vector<32x128xf32>
    %c16_i32_28 = arith.constant 16 : i32
    %41 = tpu.dynamic_rotate %28 by %c16_i32_28 dim 1 : vector<32x128xf32>, i32 -> vector<32x128xf32>
    %42 = arith.mulf %28, %4 : vector<32x128xf32>
    %43 = arith.mulf %40, %5 : vector<32x128xf32>
    %44 = arith.addf %42, %43 : vector<32x128xf32>
    %45 = arith.mulf %41, %6 : vector<32x128xf32>
    %46 = arith.addf %44, %45 : vector<32x128xf32>
    %47 = arith.truncf %46 : vector<32x128xf32> to vector<32x128xbf16>
    %48 = arith.truncf %31 : vector<32x128xf32> to vector<32x128xbf16>
    %cst_29 = arith.constant 0.000000e+00 : f32
    %49 = vector.broadcast %cst_29 : f32 to vector<32x128xf32>
    %c0_30 = arith.constant 0 : index
    %c0_31 = arith.constant 0 : index
    %c0_32 = arith.constant 0 : index
    %50 = vector.load %arg7[%c0_30, %c0_31, %c0_32] : memref<4x1x128xbf16, #tpu.memory_space<vmem>>, vector<1x1x128xbf16>
    %51 = vector.shape_cast %50 : vector<1x1x128xbf16> to vector<1x128xbf16>
    %52 = vector.broadcast %51 : vector<1x128xbf16> to vector<32x128xbf16>
    %53 = arith.mulf %47, %52 : vector<32x128xbf16>
    %cst_33 = arith.constant dense<0.000000e+00> : vector<32x32xf32>
    %54 = tpu.matmul %39, %53, %cst_33 {dimension_numbers = #tpu.dot_dimension_numbers<[1], [1], [0], [0], [0, 0, 1, 0], [], []>} : vector<32x128xbf16>, vector<32x128xbf16>, vector<32x32xf32> -> vector<32x32xf32>
    %55 = arith.addf %54, %7 : vector<32x32xf32>
    %cst_34 = arith.constant dense<0xFF800000> : vector<32xf32>
    %56 = vector.multi_reduction <maximumf>, %55, %cst_34 [1] : vector<32x32xf32> to vector<32xf32>
    %57 = vector.shape_cast %56 : vector<32xf32> to vector<32x1xf32>
    %58 = vector.broadcast %57 : vector<32x1xf32> to vector<32x32xf32>
    %59 = arith.subf %55, %58 : vector<32x32xf32>
    %60 = math.exp %59 : vector<32x32xf32>
    %cst_35 = arith.constant dense<0.000000e+00> : vector<32xf32>
    %61 = vector.multi_reduction <add>, %60, %cst_35 [1] : vector<32x32xf32> to vector<32xf32>
    %62 = vector.shape_cast %61 : vector<32xf32> to vector<32x1xf32>
    %63 = tpu.reciprocal %62 {approx = true} : vector<32x1xf32> -> vector<32x1xf32>
    %64 = vector.broadcast %63 : vector<32x1xf32> to vector<32x32xf32>
    %65 = arith.mulf %60, %64 : vector<32x32xf32>
    %66 = arith.truncf %65 : vector<32x32xf32> to vector<32x32xbf16>
    %cst_36 = arith.constant dense<0.000000e+00> : vector<32x128xf32>
    %67 = tpu.matmul %66, %48, %cst_36 {dimension_numbers = #tpu.dot_dimension_numbers<[1], [0], [0], [1], [0, 0, 1, 1], [], []>} : vector<32x32xbf16>, vector<32x128xbf16>, vector<32x128xf32> -> vector<32x128xf32>
    %68 = arith.extf %51 : vector<1x128xbf16> to vector<1x128xf32>
    %69 = vector.broadcast %68 : vector<1x128xf32> to vector<32x128xf32>
    %70 = arith.mulf %67, %69 : vector<32x128xf32>
    %71 = arith.addf %49, %70 : vector<32x128xf32>
    %c1 = arith.constant 1 : index
    %c0_37 = arith.constant 0 : index
    %c0_38 = arith.constant 0 : index
    %72 = vector.load %arg7[%c1, %c0_37, %c0_38] : memref<4x1x128xbf16, #tpu.memory_space<vmem>>, vector<1x1x128xbf16>
    %73 = vector.shape_cast %72 : vector<1x1x128xbf16> to vector<1x128xbf16>
    %74 = vector.broadcast %73 : vector<1x128xbf16> to vector<32x128xbf16>
    %75 = arith.mulf %47, %74 : vector<32x128xbf16>
    %cst_39 = arith.constant dense<0.000000e+00> : vector<32x32xf32>
    %76 = tpu.matmul %39, %75, %cst_39 {dimension_numbers = #tpu.dot_dimension_numbers<[1], [1], [0], [0], [0, 0, 1, 0], [], []>} : vector<32x128xbf16>, vector<32x128xbf16>, vector<32x32xf32> -> vector<32x32xf32>
    %77 = arith.addf %76, %7 : vector<32x32xf32>
    %cst_40 = arith.constant dense<0xFF800000> : vector<32xf32>
    %78 = vector.multi_reduction <maximumf>, %77, %cst_40 [1] : vector<32x32xf32> to vector<32xf32>
    %79 = vector.shape_cast %78 : vector<32xf32> to vector<32x1xf32>
    %80 = vector.broadcast %79 : vector<32x1xf32> to vector<32x32xf32>
    %81 = arith.subf %77, %80 : vector<32x32xf32>
    %82 = math.exp %81 : vector<32x32xf32>
    %cst_41 = arith.constant dense<0.000000e+00> : vector<32xf32>
    %83 = vector.multi_reduction <add>, %82, %cst_41 [1] : vector<32x32xf32> to vector<32xf32>
    %84 = vector.shape_cast %83 : vector<32xf32> to vector<32x1xf32>
    %85 = tpu.reciprocal %84 {approx = true} : vector<32x1xf32> -> vector<32x1xf32>
    %86 = vector.broadcast %85 : vector<32x1xf32> to vector<32x32xf32>
    %87 = arith.mulf %82, %86 : vector<32x32xf32>
    %88 = arith.truncf %87 : vector<32x32xf32> to vector<32x32xbf16>
    %cst_42 = arith.constant dense<0.000000e+00> : vector<32x128xf32>
    %89 = tpu.matmul %88, %48, %cst_42 {dimension_numbers = #tpu.dot_dimension_numbers<[1], [0], [0], [1], [0, 0, 1, 1], [], []>} : vector<32x32xbf16>, vector<32x128xbf16>, vector<32x128xf32> -> vector<32x128xf32>
    %90 = arith.extf %73 : vector<1x128xbf16> to vector<1x128xf32>
    %91 = vector.broadcast %90 : vector<1x128xf32> to vector<32x128xf32>
    %92 = arith.mulf %89, %91 : vector<32x128xf32>
    %93 = arith.addf %71, %92 : vector<32x128xf32>
    %c2 = arith.constant 2 : index
    %c0_43 = arith.constant 0 : index
    %c0_44 = arith.constant 0 : index
    %94 = vector.load %arg7[%c2, %c0_43, %c0_44] : memref<4x1x128xbf16, #tpu.memory_space<vmem>>, vector<1x1x128xbf16>
    %95 = vector.shape_cast %94 : vector<1x1x128xbf16> to vector<1x128xbf16>
    %96 = vector.broadcast %95 : vector<1x128xbf16> to vector<32x128xbf16>
    %97 = arith.mulf %47, %96 : vector<32x128xbf16>
    %cst_45 = arith.constant dense<0.000000e+00> : vector<32x32xf32>
    %98 = tpu.matmul %39, %97, %cst_45 {dimension_numbers = #tpu.dot_dimension_numbers<[1], [1], [0], [0], [0, 0, 1, 0], [], []>} : vector<32x128xbf16>, vector<32x128xbf16>, vector<32x32xf32> -> vector<32x32xf32>
    %99 = arith.addf %98, %7 : vector<32x32xf32>
    %cst_46 = arith.constant dense<0xFF800000> : vector<32xf32>
    %100 = vector.multi_reduction <maximumf>, %99, %cst_46 [1] : vector<32x32xf32> to vector<32xf32>
    %101 = vector.shape_cast %100 : vector<32xf32> to vector<32x1xf32>
    %102 = vector.broadcast %101 : vector<32x1xf32> to vector<32x32xf32>
    %103 = arith.subf %99, %102 : vector<32x32xf32>
    %104 = math.exp %103 : vector<32x32xf32>
    %cst_47 = arith.constant dense<0.000000e+00> : vector<32xf32>
    %105 = vector.multi_reduction <add>, %104, %cst_47 [1] : vector<32x32xf32> to vector<32xf32>
    %106 = vector.shape_cast %105 : vector<32xf32> to vector<32x1xf32>
    %107 = tpu.reciprocal %106 {approx = true} : vector<32x1xf32> -> vector<32x1xf32>
    %108 = vector.broadcast %107 : vector<32x1xf32> to vector<32x32xf32>
    %109 = arith.mulf %104, %108 : vector<32x32xf32>
    %110 = arith.truncf %109 : vector<32x32xf32> to vector<32x32xbf16>
    %cst_48 = arith.constant dense<0.000000e+00> : vector<32x128xf32>
    %111 = tpu.matmul %110, %48, %cst_48 {dimension_numbers = #tpu.dot_dimension_numbers<[1], [0], [0], [1], [0, 0, 1, 1], [], []>} : vector<32x32xbf16>, vector<32x128xbf16>, vector<32x128xf32> -> vector<32x128xf32>
    %112 = arith.extf %95 : vector<1x128xbf16> to vector<1x128xf32>
    %113 = vector.broadcast %112 : vector<1x128xf32> to vector<32x128xf32>
    %114 = arith.mulf %111, %113 : vector<32x128xf32>
    %115 = arith.addf %93, %114 : vector<32x128xf32>
    %c3 = arith.constant 3 : index
    %c0_49 = arith.constant 0 : index
    %c0_50 = arith.constant 0 : index
    %116 = vector.load %arg7[%c3, %c0_49, %c0_50] : memref<4x1x128xbf16, #tpu.memory_space<vmem>>, vector<1x1x128xbf16>
    %117 = vector.shape_cast %116 : vector<1x1x128xbf16> to vector<1x128xbf16>
    %118 = vector.broadcast %117 : vector<1x128xbf16> to vector<32x128xbf16>
    %119 = arith.mulf %47, %118 : vector<32x128xbf16>
    %cst_51 = arith.constant dense<0.000000e+00> : vector<32x32xf32>
    %120 = tpu.matmul %39, %119, %cst_51 {dimension_numbers = #tpu.dot_dimension_numbers<[1], [1], [0], [0], [0, 0, 1, 0], [], []>} : vector<32x128xbf16>, vector<32x128xbf16>, vector<32x32xf32> -> vector<32x32xf32>
    %121 = arith.addf %120, %7 : vector<32x32xf32>
    %cst_52 = arith.constant dense<0xFF800000> : vector<32xf32>
    %122 = vector.multi_reduction <maximumf>, %121, %cst_52 [1] : vector<32x32xf32> to vector<32xf32>
    %123 = vector.shape_cast %122 : vector<32xf32> to vector<32x1xf32>
    %124 = vector.broadcast %123 : vector<32x1xf32> to vector<32x32xf32>
    %125 = arith.subf %121, %124 : vector<32x32xf32>
    %126 = math.exp %125 : vector<32x32xf32>
    %cst_53 = arith.constant dense<0.000000e+00> : vector<32xf32>
    %127 = vector.multi_reduction <add>, %126, %cst_53 [1] : vector<32x32xf32> to vector<32xf32>
    %128 = vector.shape_cast %127 : vector<32xf32> to vector<32x1xf32>
    %129 = tpu.reciprocal %128 {approx = true} : vector<32x1xf32> -> vector<32x1xf32>
    %130 = vector.broadcast %129 : vector<32x1xf32> to vector<32x32xf32>
    %131 = arith.mulf %126, %130 : vector<32x32xf32>
    %132 = arith.truncf %131 : vector<32x32xf32> to vector<32x32xbf16>
    %cst_54 = arith.constant dense<0.000000e+00> : vector<32x128xf32>
    %133 = tpu.matmul %132, %48, %cst_54 {dimension_numbers = #tpu.dot_dimension_numbers<[1], [0], [0], [1], [0, 0, 1, 1], [], []>} : vector<32x32xbf16>, vector<32x128xbf16>, vector<32x128xf32> -> vector<32x128xf32>
    %134 = arith.extf %117 : vector<1x128xbf16> to vector<1x128xf32>
    %135 = vector.broadcast %134 : vector<1x128xf32> to vector<32x128xf32>
    %136 = arith.mulf %133, %135 : vector<32x128xf32>
    %137 = arith.addf %115, %136 : vector<32x128xf32>
    %138 = arith.truncf %137 : vector<32x128xf32> to vector<32x128xbf16>
    %c0_55 = arith.constant 0 : index
    %c0_56 = arith.constant 0 : index
    %c0_57 = arith.constant 0 : index
    %139 = vector.load %arg12[%c0_55, %c0_56, %c0_57] : memref<1x128x128xbf16, #tpu.memory_space<vmem>>, vector<1x128x128xbf16>
    %140 = vector.shape_cast %139 : vector<1x128x128xbf16> to vector<128x128xbf16>
    %cst_58 = arith.constant dense<0.000000e+00> : vector<32x128xf32>
    %141 = tpu.matmul %138, %140, %cst_58 {dimension_numbers = #tpu.dot_dimension_numbers<[1], [0], [0], [1], [0, 0, 1, 1], [], []>} : vector<32x128xbf16>, vector<128x128xbf16>, vector<32x128xf32> -> vector<32x128xf32>
    %142 = arith.addf %3, %141 : vector<32x128xf32>
    %c0_59 = arith.constant 0 : index
    %c0_60 = arith.constant 0 : index
    %c0_61 = arith.constant 0 : index
    %143 = vector.load %arg13[%c0_59, %c0_60, %c0_61] : memref<1x1x128xf32, #tpu.memory_space<vmem>>, vector<1x1x128xf32>
    %144 = vector.shape_cast %143 : vector<1x1x128xf32> to vector<1x128xf32>
    %145 = arith.mulf %142, %142 : vector<32x128xf32>
    %cst_62 = arith.constant dense<0.000000e+00> : vector<32xf32>
    %146 = vector.multi_reduction <add>, %145, %cst_62 [1] : vector<32x128xf32> to vector<32xf32>
    %147 = vector.shape_cast %146 : vector<32xf32> to vector<32x1xf32>
    %cst_63 = arith.constant 1.280000e+02 : f32
    %148 = vector.broadcast %cst_63 : f32 to vector<32x1xf32>
    %149 = arith.divf %147, %148 : vector<32x1xf32>
    %cst_64 = arith.constant 9.99999974E-6 : f32
    %150 = vector.broadcast %cst_64 : f32 to vector<32x1xf32>
    %151 = arith.addf %149, %150 : vector<32x1xf32>
    %152 = math.rsqrt %151 : vector<32x1xf32>
    %153 = vector.broadcast %152 : vector<32x1xf32> to vector<32x128xf32>
    %154 = arith.mulf %142, %153 : vector<32x128xf32>
    %155 = vector.broadcast %144 : vector<1x128xf32> to vector<32x128xf32>
    %156 = arith.mulf %155, %154 : vector<32x128xf32>
    %157 = arith.truncf %156 : vector<32x128xf32> to vector<32x128xbf16>
    %c0_65 = arith.constant 0 : index
    %c0_66 = arith.constant 0 : index
    %c0_67 = arith.constant 0 : index
    %158 = vector.load %arg14[%c0_65, %c0_66, %c0_67] : memref<1x128x384xbf16, #tpu.memory_space<vmem>>, vector<1x128x384xbf16>
    %159 = vector.shape_cast %158 : vector<1x128x384xbf16> to vector<128x384xbf16>
    %cst_68 = arith.constant dense<0.000000e+00> : vector<32x384xf32>
    %160 = tpu.matmul %157, %159, %cst_68 {dimension_numbers = #tpu.dot_dimension_numbers<[1], [0], [0], [1], [0, 0, 1, 1], [], []>} : vector<32x128xbf16>, vector<128x384xbf16>, vector<32x384xf32> -> vector<32x384xf32>
    %c0_69 = arith.constant 0 : index
    %c0_70 = arith.constant 0 : index
    %c0_71 = arith.constant 0 : index
    %161 = vector.load %arg15[%c0_69, %c0_70, %c0_71] : memref<1x128x384xbf16, #tpu.memory_space<vmem>>, vector<1x128x384xbf16>
    %162 = vector.shape_cast %161 : vector<1x128x384xbf16> to vector<128x384xbf16>
    %cst_72 = arith.constant dense<0.000000e+00> : vector<32x384xf32>
    %163 = tpu.matmul %157, %162, %cst_72 {dimension_numbers = #tpu.dot_dimension_numbers<[1], [0], [0], [1], [0, 0, 1, 1], [], []>} : vector<32x128xbf16>, vector<128x384xbf16>, vector<32x384xf32> -> vector<32x384xf32>
    %164 = arith.negf %160 : vector<32x384xf32>
    %165 = math.exp %164 : vector<32x384xf32>
    %cst_73 = arith.constant 1.000000e+00 : f32
    %166 = vector.broadcast %cst_73 : f32 to vector<32x384xf32>
    %167 = arith.addf %166, %165 : vector<32x384xf32>
    %168 = arith.divf %166, %167 : vector<32x384xf32>
    %169 = arith.mulf %160, %168 : vector<32x384xf32>
    %170 = arith.mulf %169, %163 : vector<32x384xf32>
    %171 = arith.truncf %170 : vector<32x384xf32> to vector<32x384xbf16>
    %c0_74 = arith.constant 0 : index
    %c0_75 = arith.constant 0 : index
    %c0_76 = arith.constant 0 : index
    %172 = vector.load %arg16[%c0_74, %c0_75, %c0_76] : memref<1x384x128xbf16, #tpu.memory_space<vmem>>, vector<1x384x128xbf16>
    %173 = vector.shape_cast %172 : vector<1x384x128xbf16> to vector<384x128xbf16>
    %cst_77 = arith.constant dense<0.000000e+00> : vector<32x128xf32>
    %174 = tpu.matmul %171, %173, %cst_77 {dimension_numbers = #tpu.dot_dimension_numbers<[1], [0], [0], [1], [0, 0, 1, 1], [], []>} : vector<32x384xbf16>, vector<384x128xbf16>, vector<32x128xf32> -> vector<32x128xf32>
    %175 = arith.addf %142, %174 : vector<32x128xf32>
    %c0_78 = arith.constant 0 : index
    %c0_79 = arith.constant 0 : index
    %176 = vector.load %arg19[%c0_78, %c0_79] : memref<32x128xf32, #tpu.memory_space<vmem>>, vector<32x128xf32>
    tpu.vector_store %arg19[%c0_78, %c0_79], %175 {strides = array<i32>} : memref<32x128xf32, #tpu.memory_space<vmem>>, vector<32x128xf32>,
    %c1_i32 = arith.constant 1 : i32
    %177 = arith.cmpi eq, %arg0, %c1_i32 : i32
    %178 = arith.extui %177 : i1 to i32
    %c0_i32_80 = arith.constant 0 : i32
    %179 = arith.cmpi ne, %178, %c0_i32_80 : i32
    scf.if %179 {
      %c0_81 = arith.constant 0 : index
      %c0_82 = arith.constant 0 : index
      %180 = vector.load %arg17[%c0_81, %c0_82] : memref<1x128xf32, #tpu.memory_space<vmem>>, vector<1x128xf32>
      %181 = arith.mulf %175, %175 : vector<32x128xf32>
      %cst_83 = arith.constant dense<0.000000e+00> : vector<32xf32>
      %182 = vector.multi_reduction <add>, %181, %cst_83 [1] : vector<32x128xf32> to vector<32xf32>
      %183 = vector.shape_cast %182 : vector<32xf32> to vector<32x1xf32>
      %cst_84 = arith.constant 1.280000e+02 : f32
      %184 = vector.broadcast %cst_84 : f32 to vector<32x1xf32>
      %185 = arith.divf %183, %184 : vector<32x1xf32>
      %cst_85 = arith.constant 9.99999974E-6 : f32
      %186 = vector.broadcast %cst_85 : f32 to vector<32x1xf32>
      %187 = arith.addf %185, %186 : vector<32x1xf32>
      %188 = math.rsqrt %187 : vector<32x1xf32>
      %189 = vector.broadcast %188 : vector<32x1xf32> to vector<32x128xf32>
      %190 = arith.mulf %175, %189 : vector<32x128xf32>
      %191 = vector.broadcast %180 : vector<1x128xf32> to vector<32x128xf32>
      %192 = arith.mulf %191, %190 : vector<32x128xf32>
      %c0_86 = arith.constant 0 : index
      %c0_87 = arith.constant 0 : index
      %193 = vector.load %arg18[%c0_86, %c0_87] : memref<32x128xf32, #tpu.memory_space<vmem>>, vector<32x128xf32>
      tpu.vector_store %arg18[%c0_86, %c0_87], %192 {strides = array<i32>} : memref<32x128xf32, #tpu.memory_space<vmem>>, vector<32x128xf32>,
    } else {
    }
    return
  }
  func.func @transform_0(%arg0: i32, %arg1: memref<32xi32, #tpu.memory_space<smem>>) -> (i32, i32) {
    %c0_i32 = arith.constant 0 : i32
    %c0_i32_0 = arith.constant 0 : i32
    %c0_i32_1 = arith.constant 0 : i32
    return %c0_i32, %c0_i32_0 : i32, i32
  }
  func.func @transform_1(%arg0: i32, %arg1: memref<32xi32, #tpu.memory_space<smem>>) -> (i32, i32) {
    %c0_i32 = arith.constant 0 : i32
    %c0_i32_0 = arith.constant 0 : i32
    %c0_i32_1 = arith.constant 0 : i32
    return %c0_i32, %c0_i32_0 : i32, i32
  }
  func.func @transform_2(%arg0: i32, %arg1: memref<32xi32, #tpu.memory_space<smem>>) -> (i32, i32) {
    %c0_i32 = arith.constant 0 : i32
    %c0_i32_0 = arith.constant 0 : i32
    %c0_i32_1 = arith.constant 0 : i32
    return %c0_i32, %c0_i32_0 : i32, i32
  }
  func.func @transform_3(%arg0: i32, %arg1: memref<32xi32, #tpu.memory_space<smem>>) -> (i32, i32) {
    %c0_i32 = arith.constant 0 : i32
    %c0_i32_0 = arith.constant 0 : i32
    %c0_i32_1 = arith.constant 0 : i32
    return %c0_i32, %c0_i32_0 : i32, i32
  }
  func.func @transform_4(%arg0: i32, %arg1: memref<32xi32, #tpu.memory_space<smem>>) -> (i32, i32) {
    %c0_i32 = arith.constant 0 : i32
    %c0_i32_0 = arith.constant 0 : i32
    %c0_i32_1 = arith.constant 0 : i32
    return %c0_i32, %c0_i32_0 : i32, i32
  }
  func.func @transform_5(%arg0: i32, %arg1: memref<32xi32, #tpu.memory_space<smem>>) -> (i32, i32, i32) {
    %c0_i32 = arith.constant 0 : i32
    %c0_i32_0 = arith.constant 0 : i32
    %c0_i32_1 = arith.constant 0 : i32
    %c0_i32_2 = arith.constant 0 : i32
    return %c0_i32, %c0_i32_0, %c0_i32_1 : i32, i32, i32
  }
  func.func @transform_6(%arg0: i32, %arg1: memref<32xi32, #tpu.memory_space<smem>>) -> (i32, i32, i32) {
    %c0_i32 = arith.constant 0 : i32
    %c0_i32_0 = arith.constant 0 : i32
    %c0_i32_1 = arith.constant 0 : i32
    return %arg0, %c0_i32, %c0_i32_0 : i32, i32, i32
  }
  func.func @transform_7(%arg0: i32, %arg1: memref<32xi32, #tpu.memory_space<smem>>) -> (i32, i32, i32) {
    %c0_i32 = arith.constant 0 : i32
    %c0_i32_0 = arith.constant 0 : i32
    %c0_i32_1 = arith.constant 0 : i32
    return %arg0, %c0_i32, %c0_i32_0 : i32, i32, i32
  }
  func.func @transform_8(%arg0: i32, %arg1: memref<32xi32, #tpu.memory_space<smem>>) -> (i32, i32, i32) {
    %c0_i32 = arith.constant 0 : i32
    %c0_i32_0 = arith.constant 0 : i32
    %c0_i32_1 = arith.constant 0 : i32
    return %arg0, %c0_i32, %c0_i32_0 : i32, i32, i32
  }
  func.func @transform_9(%arg0: i32, %arg1: memref<32xi32, #tpu.memory_space<smem>>) -> (i32, i32, i32) {
    %c0_i32 = arith.constant 0 : i32
    %c0_i32_0 = arith.constant 0 : i32
    %c0_i32_1 = arith.constant 0 : i32
    return %arg0, %c0_i32, %c0_i32_0 : i32, i32, i32
  }
  func.func @transform_10(%arg0: i32, %arg1: memref<32xi32, #tpu.memory_space<smem>>) -> (i32, i32, i32) {
    %c0_i32 = arith.constant 0 : i32
    %c0_i32_0 = arith.constant 0 : i32
    %c0_i32_1 = arith.constant 0 : i32
    return %arg0, %c0_i32, %c0_i32_0 : i32, i32, i32
  }
  func.func @transform_11(%arg0: i32, %arg1: memref<32xi32, #tpu.memory_space<smem>>) -> (i32, i32, i32) {
    %c0_i32 = arith.constant 0 : i32
    %c0_i32_0 = arith.constant 0 : i32
    %c0_i32_1 = arith.constant 0 : i32
    return %arg0, %c0_i32, %c0_i32_0 : i32, i32, i32
  }
  func.func @transform_12(%arg0: i32, %arg1: memref<32xi32, #tpu.memory_space<smem>>) -> (i32, i32, i32) {
    %c0_i32 = arith.constant 0 : i32
    %c0_i32_0 = arith.constant 0 : i32
    %c0_i32_1 = arith.constant 0 : i32
    return %arg0, %c0_i32, %c0_i32_0 : i32, i32, i32
  }
  func.func @transform_13(%arg0: i32, %arg1: memref<32xi32, #tpu.memory_space<smem>>) -> (i32, i32, i32) {
    %c0_i32 = arith.constant 0 : i32
    %c0_i32_0 = arith.constant 0 : i32
    %c0_i32_1 = arith.constant 0 : i32
    return %arg0, %c0_i32, %c0_i32_0 : i32, i32, i32
  }
  func.func @transform_14(%arg0: i32, %arg1: memref<32xi32, #tpu.memory_space<smem>>) -> (i32, i32, i32) {
    %c0_i32 = arith.constant 0 : i32
    %c0_i32_0 = arith.constant 0 : i32
    %c0_i32_1 = arith.constant 0 : i32
    return %arg0, %c0_i32, %c0_i32_0 : i32, i32, i32
  }
  func.func @transform_15(%arg0: i32, %arg1: memref<32xi32, #tpu.memory_space<smem>>) -> (i32, i32) {
    %c0_i32 = arith.constant 0 : i32
    %c0_i32_0 = arith.constant 0 : i32
    %c0_i32_1 = arith.constant 0 : i32
    return %c0_i32, %c0_i32_0 : i32, i32
  }
  func.func @transform_16(%arg0: i32, %arg1: memref<32xi32, #tpu.memory_space<smem>>) -> (i32, i32) {
    %c0_i32 = arith.constant 0 : i32
    %c0_i32_0 = arith.constant 0 : i32
    %c0_i32_1 = arith.constant 0 : i32
    return %c0_i32, %c0_i32_0 : i32, i32
  }
}

</mosaic_0001>

<bundles_post_ra>
// kernel: retriever_forward.1
= control target key start
LH: loop header
LB: loop body
LE: loop exit
PB: predicated region body
PF: predicated region fallthrough
CT: control target
= control target key end

     0   :  { %s6139_s0 = inlined_call_operand.vmem [shape: s32[32], index: 0, kind: input, shape index: {}]   ;;  %s6140_s1 = inlined_call_operand.hbm [shape: f32[64,128], index: 1, kind: input, shape index: {}]   ;;  %s6141_s2 = inlined_call_operand.vmem [shape: f32[32,128], index: 2, kind: input, shape index: {}]   ;;  %s6142_s3 = inlined_call_operand.hbm [shape: f32[32,128], index: 3, kind: input, shape index: {}]   ;;  %s6143_s4 = inlined_call_operand.hbm [shape: f32[32,128], index: 4, kind: input, shape index: {}]   ;;  %s6144_s5 = inlined_call_operand.vmem [shape: f32[32,32], index: 5, kind: input, shape index: {}]   ;;  %s6145_s6 = inlined_call_operand.vmem [shape: bf16[4,1,128], index: 6, kind: input, shape index: {}]   ;;  %s6146_s7 = inlined_call_operand.vmem [shape: f32[2,1,128], index: 7, kind: input, shape index: {}]   ;;  %s6147_s8 = inlined_call_operand.hbm [shape: bf16[2,128,128], index: 8, kind: input, shape index: {}]   ;;  %s6148_s9 = inlined_call_operand.hbm [shape: bf16[2,128,128], index: 9, kind: input, shape index: {}]   ;;  %s6149_s10 = inlined_call_operand.hbm [shape: bf16[2,128,128], index: 10, kind: input, shape index: {}]   ;;  %s6150_s11 = inlined_call_operand.hbm [shape: bf16[2,128,128], index: 11, kind: input, shape index: {}]   ;;  %s6151_s12 = inlined_call_operand.hbm [shape: f32[2,1,128], index: 12, kind: input, shape index: {}]   ;;  %s6152_s13 = inlined_call_operand.hbm [shape: bf16[2,128,384], index: 13, kind: input, shape index: {}]   ;;  %s6153_s14 = inlined_call_operand.hbm [shape: bf16[2,128,384], index: 14, kind: input, shape index: {}]   ;;  %s6154_s15 = inlined_call_operand.hbm [shape: bf16[2,384,128], index: 15, kind: input, shape index: {}]   ;;  %s6155_s16 = inlined_call_operand.hbm [shape: f32[1,128], index: 16, kind: input, shape index: {}]   ;;  %s6156_s17 = inlined_call_operand.hbm [shape: f32[32,128], index: 17, kind: output, shape index: {}]  }
   0x1   :  { %6196 = sst [smem:[#allocation42_spill]] %s6139_s0 }
   0x2   :  { %6197 = sst [smem:[#allocation43_spill]] %s6140_s1  ;;  %s6212_s26 = sld [smem:[#allocation42_spill]] }
   0x3   :  { %6198 = sst [smem:[#allocation44_spill]] %s6141_s2 }
   0x4   :  { %6199 = sst [smem:[#allocation45_spill]] %s6142_s3 }
   0x5   :  { %6200 = sst [smem:[#allocation46_spill]] %s6143_s4 }
   0x6   :  { %6201 = sst [smem:[#allocation47_spill]] %s6144_s5 }
   0x7   :  { %6202 = sst [smem:[#allocation48_spill]] %s6145_s6 }
   0x8   :  { %6203 = sst [smem:[#allocation49_spill]] %s6146_s7  ;;  %s22_s5 = sshll.u32 %s6212_s26, 4  ;;  %s23_s5 = int_to_ptr.vmem [resolvable:$true] %s22_s5 }
   0x9   :  { %6204 = sst [smem:[#allocation50_spill]] %s6147_s8  ;;  %s4532_s27 = scalar_lea.vmem %s23_s5, 16 }
   0xa   :  { %6205 = sst [smem:[#allocation51_spill]] %s6148_s9  ;;  %p4533_p0 = scmp.ne.s32.totalorder %s23_s5, %s4532_s27 }
   0xb   :  { %6206 = sst [smem:[#allocation52_spill]] %s6149_s10  ;;  %p4537_p1 = scmp.lt.s32.totalorder %s23_s5, %s23_s5 }
   0xc   :  { %6207 = sst [smem:[#allocation53_spill]] %s6150_s11  ;;  %p4538_p2 = scmp.lt.s32.totalorder %s4532_s27, %s4532_s27 }
   0xd   :  { %6208 = sst [smem:[#allocation54_spill]] %s6151_s12 }
   0xe   :  { %6209 = sst [smem:[#allocation55_spill]] %s6152_s13  ;;  %p4539_p3 = por %p4538_p2, %p4537_p1 }
   0xf   :  { %6210 = sst [smem:[#allocation56_spill]] %s6153_s14 }
  0x10   :  { %6211 = sst [smem:[#allocation57_spill]] %s6156_s17  ;;  %p4540_p4 = pnand %p4539_p3, %p4533_p0 }
  0x12   :  { %4543 = shalt.err (!%p4540_p4)  }
  0x13   :  { %s4988_s28 = smov [#allocation4]  }
  0x14   :  { %25 = dma.vmem_to_smem %s23_s5, 16, %s4988_s28, [#allocation3] }
  0x15   :  { %4938 = dma.done.wait [#allocation3], 16 }
  0x16   :  { %4939 = vsyncadd [#allocation3], 4294967280 }
  0x17   :  { %27 = sfence }
  0x18   :  { %28 = vsyncpa [#allocation6], 0 }
  0x19   :  { %29 = vsyncpa [#allocation9], 0 }
  0x1a   :  { %30 = vsyncpa [#allocation12], 0 }
  0x1b   :  { %32 = vsyncpa [#allocation12 + $0x1], 0 }
  0x1c   :  { %33 = vsyncpa [#allocation15], 0 }
  0x1d   :  { %35 = vsyncpa [#allocation15 + $0x1], 0 }
  0x1e   :  { %36 = vsyncpa [#allocation18], 0 }
  0x1f   :  { %38 = vsyncpa [#allocation18 + $0x1], 0 }
  0x20   :  { %39 = vsyncpa [#allocation21], 0 }
  0x21   :  { %41 = vsyncpa [#allocation21 + $0x1], 0 }
  0x22   :  { %42 = vsyncpa [#allocation24], 0 }
  0x23   :  { %43 = vsyncpa [#allocation7], 0  ;;  %s5106_s29 = smov 0   ;;  %s5108_s0 = smov 0  }
  0x24   :  { %s5110_s5 = smov 0   ;;  %s5112_s30 = smov 0  }
  0x25 LB: > { %6213 = sst [smem:[#allocation35_spill]] %s4978_s0  ;;  %s5125_s18 = sadd.s32 4294967295, %s4986_s30   ;;  %s4986_s30 = sphi %s5112_s30, %s6275_s30   ;;  %s4982_s5 = sphi %s5110_s5, %s6278_s5   ;;  %s4978_s0 = sphi %s5108_s0, %s6277_s0   ;;  %s4974_s29 = sphi %s5106_s29, %s6276_s29  }
  0x26   : > { %6214 = sst [smem:[#allocation36_spill]] %s4982_s5  ;;  %p221_p5 = scmp.ne.s32.totalorder %s4978_s0, %s4974_s29 }
  0x27   : > { %6215 = sst [smem:[#allocation37_spill]] %s5125_s18  ;;  %p6162_p6 = scmp.eq.s32.totalorder %s5125_s18, 0 }
  0x28   : > { %p3595_p7 = scmp.ge.s32.totalorder %s4986_s30, 1  ;;  %p456_p8 = scmp.lt.s32.totalorder %s4986_s30, 3 }
  0x29   : > { %p5134_p10 = por %p6162_p6, %p221_p5  ;;  %s4989_s20 = smov [#allocation8]  }
  0x2a   : > { %p5138_p11 = pnand %p3595_p7, %p456_p8  ;;  %s484_s21 = sshll.u32 %s4989_s20, 4  ;;  %s485_s21 = int_to_ptr.vmem [resolvable:$true] %s484_s21 }
  0x2b   : > { %s6216_s19 = scalar_select %p5134_p10, 1, 0 }
  0x2c   : > { %s6218_s1 = scalar_select %p5138_p11, 1, 0 }
  0x2d   : > { %6217 = sst [smem:[#allocation38_spill]] %s6216_s19  ;;  %p4174_p12 = pneg %p5138_p11 }
  0x2e   : > { %6219 = sst [smem:[#allocation39_spill]] %s6218_s1  ;;  %s5151_s23 = sadd.s32 1, %s4986_s30  }
  0x2f   : > { %p5146_p13 = pnand %p4174_p12, %p6162_p6  ;;  %6221 = sst [smem:[#allocation40_spill]] %s5151_s23 }
  0x30   : > { %s208_s24 = sadd.s32 1, %s4982_s5  ;;  %s205_s25 = ssub.s32 %s4986_s30, %s5151_s23 }
  0x31   : > { %s6220_s22 = scalar_select %p5146_p13, 1, 0 }
  0x32   : > { %s6222_s3 = sld [smem:[#allocation45_spill]]  ;;  %p5164_p1 = pneg %p5146_p13 }
  0x34   : > { %s6223_s20 = scalar_select %p5164_p1, 1, 0 }
  0x38   : > { %s4544_s28 = scalar_lea.hbm %s6222_s3, 512 }
  0x39   : > { %p4545_p0 = scmp.ne.s32.totalorder %s6222_s3, %s4544_s28  ;;  %p4551_p4 = scmp.lt.u32.totalorder %s4544_s28, %s6222_s3 }
  0x3b   : > { %p4547_p2 = pnand %p5164_p1, %p4545_p0 }
  0x3d   : > { %p4548_p3 = pneg %p4547_p2 }
  0x3f   : > { %p4553_p5 = pnand %p4551_p4, %p4548_p3 }
  0x41   : > { %4556 = shalt.err (!%p4553_p5)
}
  0x42   : > { %s4557_s26 = scalar_lea.vmem %s485_s21, 512  ;;  %p4565_p9 = scmp.lt.s32.totalorder %s485_s21, %s485_s21 }
  0x43   : > { %p4558_p7 = scmp.ne.s32.totalorder %s485_s21, %s4557_s26  ;;  %p4566_p6 = scmp.lt.s32.totalorder %s4557_s26, %s4557_s26 }
  0x45   : > { %p4560_p8 = pnand %p4558_p7, %p5164_p1  ;;  %p4567_p10 = por %p4566_p6, %p4565_p9 }
  0x47   : > { %p4561_p12 = pneg %p4560_p8 }
  0x49   : > { %p4568_p11 = pnand %p4567_p10, %p4561_p12 }
  0x4b   : > { %4571 = shalt.err (!%p4568_p11)
}
  0x4c   : > { %s6167_s17 = smov 128   ;;  %s6169_s2 = smov 8  }
  0x4d   : > { %4180 = dma.hbm_to_vmem [thread:$0]  (!%p5146_p13), %s6222_s3, 512, %s485_s21, [#allocation9], %s6167_s17, %s6167_s17, %s6169_s2  }
  0x4e   : > { %p206_p6 = scmp.eq.s32.totalorder %s205_s25, 0  ;;  %p215_p9 = scmp.ne.s32.totalorder %s4982_s5, %s4978_s0 }
  0x4f   : > { %p216_p10 = scmp.eq.s32.totalorder %s4986_s30, 0  ;;  %p4216_p11 = scmp.lt.s32.totalorder %s4986_s30, 2 }
  0x50   : > { %s5188_s28 = scalar_select %p206_p6, %s4982_s5, %s208_s24  }
  0x51   : > { %p217_p0 = por %p216_p10, %p215_p9  ;;  %s5191_s29 = sand.u32 1, %s4986_s30  }
  0x52   : > { %6224 = sst [smem:[#allocation41_spill]] %s5188_s28  ;;  %s5194_s26 = sand.u32 1, %s4982_s5  }
  0x53   : > { %s5197_s23 = sshll.u32 %s5194_s26, 6  ;;  %s5200_s7 = sshll.u32 %s4986_s30, 10 }
  0x54   : > { %s6225_s8 = sld [smem:[#allocation50_spill]]  ;;  %s538_s24 = scalar_lea.vmem [#allocation11], %s5197_s23 }
  0x55   : > { %s545_s27 = sshll.u32 %s538_s24, 4  ;;  %p5209_p2 = pnand %p4216_p11, %p217_p0  ;;  %s5213_s27 = int_to_ptr.vmem [resolvable:$true] %s545_s27 }
  0x57   : > { %s6226_s17 = scalar_select %p5209_p2, 1, 0 }
  0x58   : > { %p5220_p4 = pneg %p5209_p2 }
  0x5a   : > { %s5206_s6 = scalar_lea.hbm %s6225_s8, %s5200_s7  ;;  %s4577_s28 = scalar_lea.hbm %s6225_s8, 2048 }
  0x5b   : > { %s4572_s3 = scalar_lea.hbm %s5206_s6, 1024  ;;  %p4578_p8 = scmp.lt.u32.totalorder %s5206_s6, %s6225_s8 }
  0x5c   : > { %p4573_p3 = scmp.ne.s32.totalorder %s5206_s6, %s4572_s3  ;;  %p4579_p12 = scmp.lt.u32.totalorder %s4577_s28, %s4572_s3 }
  0x5d   : > { %s6227_s21 = scalar_select %p5220_p4, 1, 0 }
  0x5e   : > { %p4575_p5 = pnand %p5220_p4, %p4573_p3  ;;  %p4580_p6 = por %p4579_p12, %p4578_p8 }
  0x5f   : > { %p4581_p9 = scmp.lt.u32.totalorder %s4572_s3, %s5206_s6 }
  0x60   : > { %p4576_p7 = pneg %p4575_p5 }
  0x61   : > { %p4582_p10 = por %p4581_p9, %p4580_p6 }
  0x63   : > { %p4583_p11 = pnand %p4582_p10, %p4576_p7 }
  0x65   : > { %4586 = shalt.err (!%p4583_p11)
}
  0x66   : > { %s4587_s2 = scalar_lea.vmem %s5213_s27, 1024  ;;  %s4992_s25 = smov [#allocation11]  }
  0x67   : > { %p4588_p0 = scmp.ne.s32.totalorder %s5213_s27, %s4587_s2  ;;  %s4592_s24 = sshll.u32 %s4992_s25, 4  ;;  %s4593_s24 = int_to_ptr.vmem [resolvable:$false] %s4592_s24 }
  0x68   : > { %s4594_s5 = scalar_lea.vmem %s4593_s24, 2048  ;;  %p4595_p13 = scmp.lt.s32.totalorder %s5213_s27, %s4593_s24 }
  0x69   : > { %p4590_p3 = pnand %p4588_p0, %p5220_p4  ;;  %p4596_p1 = scmp.lt.s32.totalorder %s4594_s5, %s4587_s2 }
  0x6b   : > { %p4591_p5 = pneg %p4590_p3  ;;  %p4597_p8 = por %p4596_p1, %p4595_p13 }
  0x6d   : > { %p4598_p12 = pnand %p4597_p8, %p4591_p5 }
  0x6f   : > { %4601 = shalt.err (!%p4598_p12)
}
  0x70   : > { %s6185_s3 = smov 64   ;;  %s6187_s19 = smov 4  }
  0x71   : > { %s6228_s28 = scalar_lea.sflag [#allocation12], %s5191_s29  ;;  %s6229_s10 = sld [smem:[#allocation52_spill]] }
  0x72   : > { %4190 = dma.hbm_to_vmem [thread:$0]  (!%p5209_p2), %s5206_s6, 1024, %s5213_s27, %s6228_s28, %s6185_s3, %s6185_s3, %s6187_s19  }
  0x73   : > { %s580_s5 = scalar_lea.vmem [#allocation14], %s5197_s23  ;;  %s6184_s0 = scalar_lea.sflag [#allocation15], %s5191_s29 }
  0x74   : > { %s587_s8 = sshll.u32 %s580_s5, 4  ;;  %s5255_s8 = int_to_ptr.vmem [resolvable:$true] %s587_s8 }
  0x77   : > { %s5252_s24 = scalar_lea.hbm %s6229_s10, %s5200_s7  ;;  %s4607_s28 = scalar_lea.hbm %s6229_s10, 2048 }
  0x78   : > { %s4602_s18 = scalar_lea.hbm %s5252_s24, 1024  ;;  %p4608_p6 = scmp.lt.u32.totalorder %s5252_s24, %s6229_s10 }
  0x79   : > { %p4603_p13 = scmp.ne.s32.totalorder %s5252_s24, %s4602_s18  ;;  %p4609_p9 = scmp.lt.u32.totalorder %s4607_s28, %s4602_s18 }
  0x7a   : > { %p4611_p11 = scmp.lt.u32.totalorder %s4602_s18, %s5252_s24 }
  0x7b   : > { %p4605_p1 = pnand %p4603_p13, %p5220_p4  ;;  %p4610_p10 = por %p4609_p9, %p4608_p6 }
  0x7d   : > { %p4606_p7 = pneg %p4605_p1  ;;  %p4612_p0 = por %p4611_p11, %p4610_p10 }
  0x7f   : > { %p4613_p3 = pnand %p4612_p0, %p4606_p7 }
  0x81   : > { %4616 = shalt.err (!%p4613_p3)
}
  0x82   : > { %s4617_s5 = scalar_lea.vmem %s5255_s8, 1024  ;;  %s4995_s6 = smov [#allocation14]  }
  0x83   : > { %p4618_p5 = scmp.ne.s32.totalorder %s5255_s8, %s4617_s5  ;;  %s4622_s27 = sshll.u32 %s4995_s6, 4  ;;  %s4623_s27 = int_to_ptr.vmem [resolvable:$false] %s4622_s27 }
  0x84   : > { %s4624_s2 = scalar_lea.vmem %s4623_s27, 2048  ;;  %p4625_p13 = scmp.lt.s32.totalorder %s5255_s8, %s4623_s27 }
  0x85   : > { %p4620_p8 = pnand %p4618_p5, %p5220_p4  ;;  %p4626_p1 = scmp.lt.s32.totalorder %s4624_s2, %s4617_s5 }
  0x87   : > { %p4621_p12 = pneg %p4620_p8  ;;  %p4627_p6 = por %p4626_p1, %p4625_p13 }
  0x89   : > { %p4628_p9 = pnand %p4627_p6, %p4621_p12 }
  0x8b   : > { %4631 = shalt.err (!%p4628_p9)
}
  0x8c   : > { %4196 = dma.hbm_to_vmem [thread:$0]  (!%p5209_p2), %s5252_s24, 1024, %s5255_s8, %s6184_s0, %s6185_s3, %s6185_s3, %s6187_s19  }
  0x8d   : > { %s3613_s18 = sshll.u32 %s4986_s30, 4  ;;  %s6230_s12 = sld [smem:[#allocation54_spill]] }
  0x8e   : > { %s621_s6 = scalar_lea.vmem [#allocation17], %s5194_s26  ;;  %s5294_s2 = smul.u32 192, %s5194_s26 }
  0x8f   : > { %s628_s27 = sshll.u32 %s621_s6, 4  ;;  %s6183_s10 = scalar_lea.sflag [#allocation18], %s5191_s29  ;;  %s5291_s27 = int_to_ptr.vmem [resolvable:$true] %s628_s27 }
  0x93   : > { %s5288_s5 = scalar_lea.hbm %s6230_s12, %s3613_s18  ;;  %s4637_s18 = scalar_lea.hbm %s6230_s12, 32 }
  0x94   : > { %s4632_s1 = scalar_lea.hbm %s5288_s5, 16  ;;  %p4638_p0 = scmp.lt.u32.totalorder %s5288_s5, %s6230_s12 }
  0x95   : > { %p4633_p7 = scmp.ne.s32.totalorder %s5288_s5, %s4632_s1  ;;  %p4639_p3 = scmp.lt.u32.totalorder %s4637_s18, %s4632_s1 }
  0x96   : > { %p4641_p8 = scmp.lt.u32.totalorder %s4632_s1, %s5288_s5 }
  0x97   : > { %p4635_p10 = pnand %p4633_p7, %p5220_p4  ;;  %p4640_p5 = por %p4639_p3, %p4638_p0 }
  0x99   : > { %p4636_p11 = pneg %p4635_p10  ;;  %p4642_p12 = por %p4641_p8, %p4640_p5 }
  0x9b   : > { %p4643_p13 = pnand %p4642_p12, %p4636_p11 }
  0x9d   : > { %4646 = shalt.err (!%p4643_p13)
}
  0x9e   : > { %s4647_s26 = scalar_lea.vmem %s5291_s27, 16  ;;  %s4996_s6 = smov [#allocation17]  }
  0x9f   : > { %p4648_p1 = scmp.ne.s32.totalorder %s5291_s27, %s4647_s26  ;;  %s4652_s8 = sshll.u32 %s4996_s6, 4  ;;  %s4653_s8 = int_to_ptr.vmem [resolvable:$false] %s4652_s8 }
  0xa0   : > { %s4654_s24 = scalar_lea.vmem %s4653_s8, 32  ;;  %p4655_p7 = scmp.lt.s32.totalorder %s5291_s27, %s4653_s8 }
  0xa1   : > { %p4650_p6 = pnand %p4648_p1, %p5220_p4  ;;  %p4656_p10 = scmp.lt.s32.totalorder %s4654_s24, %s4647_s26 }
  0xa3   : > { %p4651_p9 = pneg %p4650_p6  ;;  %p4657_p0 = por %p4656_p10, %p4655_p7 }
  0xa5   : > { %p4658_p3 = pnand %p4657_p0, %p4651_p9 }
  0xa7   : > { %4661 = shalt.err (!%p4658_p3)
}
  0xa8   : > { %4202 = dma.hbm_to_vmem [thread:$0]  (!%p5209_p2), %s5288_s5, 16, %s5291_s27, %s6183_s10  }
  0xa9   : > { %s5321_s1 = smul.u32 3072, %s4986_s30  ;;  %s6231_s14 = sld [smem:[#allocation56_spill]] }
  0xaa   : > { %s660_s26 = scalar_lea.vmem [#allocation20], %s5294_s2  ;;  %s4997_s8 = smov [#allocation5]  }
  0xab   : > { %s667_s6 = sshll.u32 %s660_s26, 4  ;;  %s5332_s24 = sshll.u32 %s4997_s8, 4  ;;  %s5330_s6 = int_to_ptr.vmem [resolvable:$true] %s667_s6  ;;  %s469_s24 = int_to_ptr.vmem [resolvable:$true] %s5332_s24 }
  0xac   : > { %s6191_s5 = scalar_lea.sflag [#allocation21], %s5191_s29 }
  0xaf   : > { %s5327_s25 = scalar_lea.hbm %s6231_s14, %s5321_s1  ;;  %s4667_s28 = scalar_lea.hbm %s6231_s14, 6144 }
  0xb0   : > { %s4662_s30 = scalar_lea.hbm %s5327_s25, 3072  ;;  %p4668_p12 = scmp.lt.u32.totalorder %s5327_s25, %s6231_s14 }
  0xb1   : > { %p4663_p11 = scmp.ne.s32.totalorder %s5327_s25, %s4662_s30  ;;  %p4669_p13 = scmp.lt.u32.totalorder %s4667_s28, %s4662_s30 }
  0xb2   : > { %p4671_p6 = scmp.lt.u32.totalorder %s4662_s30, %s5327_s25 }
  0xb3   : > { %p4665_p5 = pnand %p4663_p11, %p5220_p4  ;;  %p4670_p1 = por %p4669_p13, %p4668_p12 }
  0xb5   : > { %p4666_p8 = pneg %p4665_p5  ;;  %p4672_p9 = por %p4671_p6, %p4670_p1 }
  0xb7   : > { %p4673_p7 = pnand %p4672_p9, %p4666_p8 }
  0xb9   : > { %4676 = shalt.err (!%p4673_p7)
}
  0xba   : > { %s4677_s26 = scalar_lea.vmem %s5330_s6, 3072  ;;  %s4998_s8 = smov [#allocation20]  }
  0xbb   : > { %p4678_p10 = scmp.ne.s32.totalorder %s5330_s6, %s4677_s26  ;;  %s4682_s27 = sshll.u32 %s4998_s8, 4  ;;  %s4683_s27 = int_to_ptr.vmem [resolvable:$false] %s4682_s27 }
  0xbc   : > { %s4684_s10 = scalar_lea.vmem %s4683_s27, 6144  ;;  %p4685_p11 = scmp.lt.s32.totalorder %s5330_s6, %s4683_s27 }
  0xbd   : > { %p4680_p0 = pnand %p4678_p10, %p5220_p4  ;;  %p4686_p5 = scmp.lt.s32.totalorder %s4684_s10, %s4677_s26 }
  0xbf   : > { %p4681_p3 = pneg %p4680_p0  ;;  %p4687_p12 = por %p4686_p5, %p4685_p11 }
  0xc1   : > { %p4688_p13 = pnand %p4687_p12, %p4681_p3 }
  0xc3   : > { %4691 = shalt.err (!%p4688_p13)
}
  0xc4   : > { %s6192_s0 = smov 192   ;;  %s6193_s30 = smov 12  }
  0xc5   : > { %4208 = dma.hbm_to_vmem [thread:$0]  (!%p5209_p2), %s5327_s25, 3072, %s5330_s6, %s6191_s5, %s6192_s0, %s6192_s0, %s6193_s30  }
  0xc6   : > { %s6232_s26 = sld [smem:[#allocation43_spill]]  ;;  %p6233_p1 = scmp.ne.s32.totalorder %s6223_s20, 0 }
  0xcc   : > { %s4692_s8 = scalar_lea.hbm %s6232_s26, 1024 }
  0xcd   : > { %p4693_p8 = scmp.ne.s32.totalorder %s6232_s26, %s4692_s8  ;;  %p4699_p7 = scmp.lt.u32.totalorder %s4692_s8, %s6232_s26 }
  0xcf   : > { %p4695_p6 = pnand %p4693_p8, %p6233_p1 }
  0xd1   : > { %p4696_p9 = pneg %p4695_p6 }
  0xd3   : > { %p4701_p10 = pnand %p4699_p7, %p4696_p9 }
  0xd5   : > { %4704 = shalt.err (!%p4701_p10)
}
  0xd6   : > { %s4705_s12 = scalar_lea.vmem %s469_s24, 1024  ;;  %p4713_p5 = scmp.lt.s32.totalorder %s469_s24, %s469_s24 }
  0xd7   : > { %p4706_p0 = scmp.ne.s32.totalorder %s469_s24, %s4705_s12  ;;  %p4714_p12 = scmp.lt.s32.totalorder %s4705_s12, %s4705_s12 }
  0xd9   : > { %p4708_p3 = pnand %p4706_p0, %p6233_p1  ;;  %p4715_p13 = por %p4714_p12, %p4713_p5 }
  0xdb   : > { %p4709_p11 = pneg %p4708_p3 }
  0xdd   : > { %p4716_p2 = pnand %p4715_p13, %p4709_p11 }
  0xdf   : > { %4719 = shalt.err (!%p4716_p2)
}
  0xe0   : > { %p6234_p8 = scmp.ne.s32.totalorder %s6220_s22, 0  ;;  %s6235_s25 = smov 8  }
  0xe1   : > { %s6236_s6 = smov 128   ;;  %s5001_s18 = smov [#allocation10]  }
  0xe2   : > { %4177 = dma.hbm_to_vmem [thread:$0]  (!%p6234_p8), %s6232_s26, 1024, %s469_s24, [#allocation6], %s6236_s6, %s6236_s6, %s6235_s25  }
  0xe3   : > { %s497_s28 = sshll.u32 %s5001_s18, 4  ;;  %s5002_s8 = smov [#allocation23]   ;;  %s498_s28 = int_to_ptr.vmem [resolvable:$true] %s497_s28 }
  0xe4   : > { %s517_s27 = sshll.u32 %s5002_s8, 4  ;;  %s6237_s4 = sld [smem:[#allocation46_spill]]  ;;  %s518_s27 = int_to_ptr.vmem [resolvable:$true] %s517_s27 }
  0xea   : > { %s4720_s5 = scalar_lea.hbm %s6237_s4, 512 }
  0xeb   : > { %p4721_p2 = scmp.ne.s32.totalorder %s6237_s4, %s4720_s5  ;;  %p4727_p7 = scmp.lt.u32.totalorder %s4720_s5, %s6237_s4 }
  0xed   : > { %p4723_p6 = pnand %p4721_p2, %p6233_p1 }
  0xef   : > { %p4724_p9 = pneg %p4723_p6 }
  0xf1   : > { %p4729_p10 = pnand %p4727_p7, %p4724_p9 }
  0xf3   : > { %4732 = shalt.err (!%p4729_p10)
}
  0xf4   : > { %s4733_s24 = scalar_lea.vmem %s498_s28, 512  ;;  %p4741_p5 = scmp.lt.s32.totalorder %s498_s28, %s498_s28 }
  0xf5   : > { %p4734_p0 = scmp.ne.s32.totalorder %s498_s28, %s4733_s24  ;;  %p4742_p12 = scmp.lt.s32.totalorder %s4733_s24, %s4733_s24 }
  0xf7   : > { %p4736_p3 = pnand %p4734_p0, %p6233_p1  ;;  %p4743_p13 = por %p4742_p12, %p4741_p5 }
  0xf9   : > { %p4737_p11 = pneg %p4736_p3 }
  0xfb   : > { %p4744_p4 = pnand %p4743_p13, %p4737_p11 }
  0xfd   : > { %4747 = shalt.err (!%p4744_p4)
}
  0xfe   : > { %4183 = dma.hbm_to_vmem [thread:$0]  (!%p6234_p8), %s6237_s4, 512, %s498_s28, [#allocation9], %s6236_s6, %s6236_s6, %s6235_s25  }
  0xff   : > { %s4748_s19 = scalar_lea.hbm %s6155_s16, 16 }
 0x100   : > { %p4749_p2 = scmp.ne.s32.totalorder %s6155_s16, %s4748_s19  ;;  %p4755_p9 = scmp.lt.u32.totalorder %s4748_s19, %s6155_s16 }
 0x102   : > { %p4751_p4 = pnand %p4749_p2, %p6233_p1 }
 0x104   : > { %p4752_p6 = pneg %p4751_p4 }
 0x106   : > { %p4757_p7 = pnand %p4755_p9, %p4752_p6 }
 0x108   : > { %4760 = shalt.err (!%p4757_p7)
}
 0x109   : > { %s4761_s3 = scalar_lea.vmem %s518_s27, 16  ;;  %s4768_s25 = scalar_lea.vmem %s518_s27, 32 }
 0x10a   : > { %p4762_p10 = scmp.ne.s32.totalorder %s518_s27, %s4761_s3  ;;  %p4769_p11 = scmp.lt.s32.totalorder %s518_s27, %s518_s27 }
 0x10b   : > { %p4770_p5 = scmp.lt.s32.totalorder %s4768_s25, %s4761_s3 }
 0x10c   : > { %p4764_p0 = pnand %p4762_p10, %p6233_p1 }
 0x10d   : > { %p4771_p12 = por %p4770_p5, %p4769_p11 }
 0x10e   : > { %p4765_p3 = pneg %p4764_p0 }
 0x110   : > { %p4772_p13 = pnand %p4771_p12, %p4765_p3 }
 0x112   : > { %4775 = shalt.err (!%p4772_p13)
}
 0x113   : > { %4186 = dma.hbm_to_vmem [thread:$0]  (!%p6234_p8), %s6155_s16, 16, %s518_s27, [#allocation24]  }
 0x114   : > { %s6238_s9 = sld [smem:[#allocation51_spill]]  ;;  %s559_s5 = scalar_lea.vmem [#allocation13], %s5197_s23 }
 0x115   : > { %s566_s0 = sshll.u32 %s559_s5, 4  ;;  %p6239_p2 = scmp.ne.s32.totalorder %s6227_s21, 0  ;;  %s5429_s0 = int_to_ptr.vmem [resolvable:$true] %s566_s0 }
 0x11a   : > { %s5426_s20 = scalar_lea.hbm %s6238_s9, %s5200_s7  ;;  %s4781_s19 = scalar_lea.hbm %s6238_s9, 2048 }
 0x11b   : > { %s4776_s22 = scalar_lea.hbm %s5426_s20, 1024  ;;  %p4782_p8 = scmp.lt.u32.totalorder %s5426_s20, %s6238_s9 }
 0x11c   : > { %p4777_p1 = scmp.ne.s32.totalorder %s5426_s20, %s4776_s22  ;;  %p4783_p9 = scmp.lt.u32.totalorder %s4781_s19, %s4776_s22 }
 0x11d   : > { %p4785_p10 = scmp.lt.u32.totalorder %s4776_s22, %s5426_s20 }
 0x11e   : > { %p4779_p4 = pnand %p4777_p1, %p6239_p2  ;;  %p4784_p7 = por %p4783_p9, %p4782_p8 }
 0x120   : > { %p4780_p6 = pneg %p4779_p4  ;;  %p4786_p0 = por %p4785_p10, %p4784_p7 }
 0x122   : > { %p4787_p3 = pnand %p4786_p0, %p4780_p6 }
 0x124   : > { %4790 = shalt.err (!%p4787_p3)
}
 0x125   : > { %s4791_s10 = scalar_lea.vmem %s5429_s0, 1024  ;;  %s5003_s12 = smov [#allocation13]  }
 0x126   : > { %p4792_p11 = scmp.ne.s32.totalorder %s5429_s0, %s4791_s10  ;;  %s4796_s3 = sshll.u32 %s5003_s12, 4  ;;  %s4797_s3 = int_to_ptr.vmem [resolvable:$false] %s4796_s3 }
 0x127   : > { %s4798_s25 = scalar_lea.vmem %s4797_s3, 2048  ;;  %p4799_p13 = scmp.lt.s32.totalorder %s5429_s0, %s4797_s3 }
 0x128   : > { %p4794_p5 = pnand %p4792_p11, %p6239_p2  ;;  %p4800_p1 = scmp.lt.s32.totalorder %s4798_s25, %s4791_s10 }
 0x12a   : > { %p4795_p12 = pneg %p4794_p5  ;;  %p4801_p4 = por %p4800_p1, %p4799_p13 }
 0x12c   : > { %p4802_p8 = pnand %p4801_p4, %p4795_p12 }
 0x12e   : > { %4805 = shalt.err (!%p4802_p8)
}
 0x12f   : > { %p6240_p6 = scmp.ne.s32.totalorder %s6226_s17, 0  ;;  %s6241_s6 = smov 4  }
 0x130   : > { %s6242_s28 = smov 64   ;;  %s6243_s24 = scalar_lea.sflag [#allocation12], %s5191_s29 }
 0x131   : > { %4193 = dma.hbm_to_vmem [thread:$0]  (!%p6240_p6), %s5426_s20, 1024, %s5429_s0, %s6243_s24, %s6242_s28, %s6242_s28, %s6241_s6  }
 0x132   : > { %s6244_s11 = sld [smem:[#allocation53_spill]]  ;;  %s601_s30 = scalar_lea.vmem [#allocation16], %s5197_s23 }
 0x133   : > { %s608_s27 = sshll.u32 %s601_s30, 4  ;;  %s5464_s27 = int_to_ptr.vmem [resolvable:$true] %s608_s27 }
 0x138   : > { %s5461_s22 = scalar_lea.hbm %s6244_s11, %s5200_s7  ;;  %s4811_s0 = scalar_lea.hbm %s6244_s11, 2048 }
 0x139   : > { %s4806_s19 = scalar_lea.hbm %s5461_s22, 1024  ;;  %p4812_p0 = scmp.lt.u32.totalorder %s5461_s22, %s6244_s11 }
 0x13a   : > { %p4807_p9 = scmp.ne.s32.totalorder %s5461_s22, %s4806_s19  ;;  %p4813_p3 = scmp.lt.u32.totalorder %s4811_s0, %s4806_s19 }
 0x13b   : > { %p4815_p5 = scmp.lt.u32.totalorder %s4806_s19, %s5461_s22 }
 0x13c   : > { %p4809_p7 = pnand %p4807_p9, %p6239_p2  ;;  %p4814_p11 = por %p4813_p3, %p4812_p0 }
 0x13e   : > { %p4810_p10 = pneg %p4809_p7  ;;  %p4816_p12 = por %p4815_p5, %p4814_p11 }
 0x140   : > { %p4817_p13 = pnand %p4816_p12, %p4810_p10 }
 0x142   : > { %4820 = shalt.err (!%p4817_p13)
}
 0x143   : > { %s4821_s23 = scalar_lea.vmem %s5464_s27, 1024  ;;  %s5004_s10 = smov [#allocation16]  }
 0x144   : > { %p4822_p1 = scmp.ne.s32.totalorder %s5464_s27, %s4821_s23  ;;  %s4826_s12 = sshll.u32 %s5004_s10, 4  ;;  %s4827_s12 = int_to_ptr.vmem [resolvable:$false] %s4826_s12 }
 0x145   : > { %s4828_s3 = scalar_lea.vmem %s4827_s12, 2048  ;;  %p4829_p9 = scmp.lt.s32.totalorder %s5464_s27, %s4827_s12 }
 0x146   : > { %p4824_p4 = pnand %p4822_p1, %p6239_p2  ;;  %p4830_p7 = scmp.lt.s32.totalorder %s4828_s3, %s4821_s23 }
 0x148   : > { %p4825_p8 = pneg %p4824_p4  ;;  %p4831_p0 = por %p4830_p7, %p4829_p9 }
 0x14a   : > { %p4832_p3 = pnand %p4831_p0, %p4825_p8 }
 0x14c   : > { %4835 = shalt.err (!%p4832_p3)
}
 0x14d   : > { %s6245_s25 = scalar_lea.sflag [#allocation15], %s5191_s29  ;;  %s6246_s13 = sld [smem:[#allocation55_spill]] }
 0x14e   : > { %4199 = dma.hbm_to_vmem [thread:$0]  (!%p6240_p6), %s5461_s22, 1024, %s5464_s27, %s6245_s25, %s6242_s28, %s6242_s28, %s6241_s6  }
 0x14f   : > { %s639_s30 = scalar_lea.vmem [#allocation19], %s5294_s2 }
 0x150   : > { %s646_s19 = sshll.u32 %s639_s30, 4  ;;  %s5499_s19 = int_to_ptr.vmem [resolvable:$true] %s646_s19 }
 0x153   : > { %s5496_s5 = scalar_lea.hbm %s6246_s13, %s5321_s1  ;;  %s4841_s27 = scalar_lea.hbm %s6246_s13, 6144 }
 0x154   : > { %s4836_s18 = scalar_lea.hbm %s5496_s5, 3072  ;;  %p4842_p12 = scmp.lt.u32.totalorder %s5496_s5, %s6246_s13 }
 0x155   : > { %p4837_p10 = scmp.ne.s32.totalorder %s5496_s5, %s4836_s18  ;;  %p4843_p13 = scmp.lt.u32.totalorder %s4841_s27, %s4836_s18 }
 0x156   : > { %p4845_p4 = scmp.lt.u32.totalorder %s4836_s18, %s5496_s5 }
 0x157   : > { %p4839_p11 = pnand %p4837_p10, %p6239_p2  ;;  %p4844_p1 = por %p4843_p13, %p4842_p12 }
 0x159   : > { %p4840_p5 = pneg %p4839_p11  ;;  %p4846_p8 = por %p4845_p4, %p4844_p1 }
 0x15b   : > { %p4847_p9 = pnand %p4846_p8, %p4840_p5 }
 0x15d   : > { %4850 = shalt.err (!%p4847_p9)
}
 0x15e   : > { %s4851_s7 = scalar_lea.vmem %s5499_s19, 3072  ;;  %s5005_s23 = smov [#allocation19]  }
 0x15f   : > { %p4852_p7 = scmp.ne.s32.totalorder %s5499_s19, %s4851_s7  ;;  %s4856_s10 = sshll.u32 %s5005_s23, 4  ;;  %s4857_s10 = int_to_ptr.vmem [resolvable:$false] %s4856_s10 }
 0x160   : > { %s4858_s12 = scalar_lea.vmem %s4857_s10, 6144  ;;  %p4859_p10 = scmp.lt.s32.totalorder %s5499_s19, %s4857_s10 }
 0x161   : > { %p4854_p0 = pnand %p4852_p7, %p6239_p2  ;;  %p4860_p11 = scmp.lt.s32.totalorder %s4858_s12, %s4851_s7 }
 0x163   : > { %p4855_p3 = pneg %p4854_p0  ;;  %p4861_p12 = por %p4860_p11, %p4859_p10 }
 0x165   : > { %p4862_p13 = pnand %p4861_p12, %p4855_p3 }
 0x167   : > { %4865 = shalt.err (!%p4862_p13)
}
 0x168   : > { %s6247_s3 = smov 12   ;;  %s6248_s25 = smov 192  }
 0x169   : > { %s6249_s24 = scalar_lea.sflag [#allocation18], %s5191_s29  ;;  %s5531_s18 = scalar_lea.hbm %s6154_s15, %s5321_s1 }
 0x16a   : > { %4205 = dma.hbm_to_vmem [thread:$0]  (!%p6240_p6), %s5496_s5, 3072, %s5499_s19, %s6249_s24, %s6248_s25, %s6248_s25, %s6247_s3  }
 0x16b   : > { %s681_s20 = scalar_lea.vmem [#allocation22], %s5294_s2  ;;  %s4866_s27 = scalar_lea.hbm %s5531_s18, 3072 }
 0x16c   : > { %s688_s22 = sshll.u32 %s681_s20, 4  ;;  %p4867_p5 = scmp.ne.s32.totalorder %s5531_s18, %s4866_s27  ;;  %s5534_s22 = int_to_ptr.vmem [resolvable:$true] %s688_s22 }
 0x16d   : > { %s4871_s19 = scalar_lea.hbm %s6154_s15, 6144  ;;  %p4872_p8 = scmp.lt.u32.totalorder %s5531_s18, %s6154_s15 }
 0x16e   : > { %p4869_p1 = pnand %p4867_p5, %p6239_p2  ;;  %p4873_p9 = scmp.lt.u32.totalorder %s4871_s19, %s4866_s27 }
 0x16f   : > { %p4875_p0 = scmp.lt.u32.totalorder %s4866_s27, %s5531_s18 }
 0x170   : > { %p4870_p4 = pneg %p4869_p1  ;;  %p4874_p7 = por %p4873_p9, %p4872_p8 }
 0x172   : > { %p4876_p3 = por %p4875_p0, %p4874_p7 }
 0x174   : > { %p4877_p10 = pnand %p4876_p3, %p4870_p4 }
 0x176   : > { %4880 = shalt.err (!%p4877_p10)
}
 0x177   : > { %s4881_s2 = scalar_lea.vmem %s5534_s22, 3072  ;;  %s5006_s7 = smov [#allocation22]  }
 0x178   : > { %p4882_p11 = scmp.ne.s32.totalorder %s5534_s22, %s4881_s2  ;;  %s4886_s23 = sshll.u32 %s5006_s7, 4  ;;  %s4887_s23 = int_to_ptr.vmem [resolvable:$false] %s4886_s23 }
 0x179   : > { %s4888_s10 = scalar_lea.vmem %s4887_s23, 6144  ;;  %p4889_p5 = scmp.lt.s32.totalorder %s5534_s22, %s4887_s23 }
 0x17a   : > { %p4884_p12 = pnand %p4882_p11, %p6239_p2  ;;  %p4890_p1 = scmp.lt.s32.totalorder %s4888_s10, %s4881_s2 }
 0x17c   : > { %p4885_p13 = pneg %p4884_p12  ;;  %p4891_p8 = por %p4890_p1, %p4889_p5 }
 0x17e   : > { %p4892_p9 = pnand %p4891_p8, %p4885_p13 }
 0x180   : > { %4895 = shalt.err (!%p4892_p9)
}
 0x181   : > { %s6250_s12 = scalar_lea.sflag [#allocation21], %s5191_s29  ;;  %s6251_s21 = sld [smem:[#allocation39_spill]] }
 0x182   : > { %4211 = dma.hbm_to_vmem [thread:$0]  (!%p6240_p6), %s5531_s18, 3072, %s5534_s22, %s6250_s12, %s6242_s28, %s6242_s28, %s6241_s6  }
 0x187   : > { %p6252_p2 = scmp.ne.s32.totalorder %s6251_s21, 0 }
 0x188   : > { %s6253_s3 = sld [smem:[#allocation37_spill]] (!%p6252_p2) }
 0x189   : > { %700 = sbr.rel (%p6252_p2) target bundleno = 3957 (0xf75), region = 84 }
 0x18e   : > { %p6254_p4 = scmp.eq.s32.totalorder (!%p6252_p2), %s6253_s3, 0 }
 0x190   : > { %4941 = dma.done.wait (%p6254_p4), [#allocation6], 1024   ;;  %p6255_p7 = pmov %p6254_p4 }
 0x191   : > { %p6256_p0 = pmov %p6254_p4 }
 0x192   : > { %4943 = vsyncadd (%p6255_p7), [#allocation6], 4294966272 }
 0x193   : > { %4945 = dma.done.wait (%p6256_p0), [#allocation9], 1024   ;;  %p6257_p3 = pmov %p6256_p0 }
 0x194   : > { %s6258_s17 = sld [smem:[#allocation35_spill]]  ;;  %s6259_s29 = sld [smem:[#allocation38_spill]] }
 0x195   : > { %4947 = vsyncadd (%p6257_p3), [#allocation9], 4294966272  ;;  %s714_s25 = sand.u32 1, %s6253_s3  }
 0x196   : > { %s715_s24 = scalar_lea.sflag [#allocation12], %s714_s25 }
 0x19a   : > { %s5574_s6 = sand.u32 1, %s6258_s17   ;;  %p6260_p6 = scmp.ne.s32.totalorder %s6259_s29, 0 }
 0x19b   : > { %s3621_s28 = sshll.u32 %s5574_s6, 6 }
 0x19c   : > { %s5577_s14 = scalar_lea.vmem [#allocation11], %s3621_s28 }
 0x19d   : > { %4949 = dma.done.wait (%p6260_p6), %s715_s24, 2048  }
 0x19e   : > { %4951 = vsyncadd (%p6260_p6), %s715_s24, 4294965248  ;;  %s5583_s30 = scalar_lea.vmem [#allocation13], %s3621_s28  ;;  %s733_s18 = scalar_lea.sflag [#allocation15], %s714_s25 }
 0x19f   : > { %s5585_s20 = scalar_lea.vmem [#allocation14], %s3621_s28 }
 0x1a0   : > { %4953 = dma.done.wait (%p6260_p6), %s733_s18, 2048  }
 0x1a1   : > { %4955 = vsyncadd (%p6260_p6), %s733_s18, 4294965248  ;;  %s5591_s22 = scalar_lea.vmem [#allocation16], %s3621_s28  ;;  %s751_s27 = scalar_lea.sflag [#allocation18], %s714_s25 }
 0x1a2   : > { %4957 = dma.done.wait (%p6260_p6), %s751_s27, 3088  }
 0x1a3   : > { %4959 = vsyncadd (%p6260_p6), %s751_s27, 4294964208  ;;  %s4137_s5 = smul.u32 192, %s5574_s6  ;;  %s768_s8 = scalar_lea.sflag [#allocation21], %s714_s25 }
 0x1a5   : > { %s5599_s19 = scalar_lea.vmem [#allocation19], %s4137_s5  ;;  %s5601_s1 = scalar_lea.vmem [#allocation20], %s4137_s5 }
 0x1a6   : > { %4961 = dma.done.wait (%p6260_p6), %s768_s8, 6144  }
 0x1a7   : > { %4963 = vsyncadd (%p6260_p6), %s768_s8, 4294961152  ;;  %s5607_s2 = scalar_lea.vmem [#allocation22], %s4137_s5  ;;  %p6261_p10 = pmov %p6256_p0 }
 0x1a8   : > { %p6262_p11 = pmov %p6256_p0 }
 0x1a9   : > { %4965 = dma.done.wait (%p6261_p10), [#allocation24], 16  }
 0x1aa   : > { %4967 = vsyncadd (%p6262_p11), [#allocation24], 4294967280  ;;  %p865_p12 = scmp.lt.s32.totalorder %s6253_s3, 1  ;;  %p6264_p13 = scmp.ne.s32.totalorder %s6253_s3, 0 }
 0x1ab   : > { %s873_s17 = sld [smem:[#allocation4]] (!%p6264_p13)  ;;  %s3627_s29 = sld [smem:[#allocation4 + $0x1]] (!%p6264_p13) }
 0x1ac   : > { %s5615_s7 = scalar_select %p865_p12, %s6253_s3, 1 }
 0x1ad   : > { %872 = sbr.rel (%p6264_p13) target bundleno = 468 (0x1d4), region = 136  ;;  %s3628_s25 = sld [smem:[#allocation4 + $0x2]] (!%p6264_p13) }
 0x1ae   : > { %s3629_s28 = sld [smem:[#allocation4 + $0x3]] (!%p6264_p13)  ;;  %s3630_s24 = sld [smem:[#allocation4 + $0x4]] (!%p6264_p13) }
 0x1af   : > { %s3631_s18 = sld [smem:[#allocation4 + $0x5]] (!%p6264_p13)  ;;  %s3632_s27 = sld [smem:[#allocation4 + $0x6]] (!%p6264_p13) }
 0x1b0   : > { %s3633_s5 = sld [smem:[#allocation4 + $0x7]] (!%p6264_p13)  ;;  %s5623_s8 = sld [smem:[#allocation4 + $0x8]] (!%p6264_p13) }
 0x1b1   : > { %s5625_s0 = sld [smem:[#allocation4 + $0x9]] (!%p6264_p13)  ;;  %s5627_s4 = sld [smem:[#allocation4 + $0xa]] (!%p6264_p13) }
 0x1b2   : > { %s5629_s9 = sld [smem:[#allocation4 + $0xb]] (!%p6264_p13)  ;;  %s874_s23 = scalar_lea.vmem (!%p6264_p13), [#allocation5], %s873_s17 }
 0x1b3   : > { %v875_v0 = vld [vmem:[%s874_s23] sm:$0x1] (!%p6264_p13)  ;;  %s878_s3 = scalar_lea.vmem (!%p6264_p13), [#allocation5], %s3627_s29  ;;  %s882_s10 = scalar_lea.vmem (!%p6264_p13), [#allocation5], %s3628_s25 }
 0x1b4   : > { %v879_v1 = vld [vmem:[%s878_s3] sm:$0x1]  ;;  %876 = vst [vmem:[#allocation2] sm:$0x1] %v875_v0  ;;  %s886_s12 = scalar_lea.vmem [#allocation5], %s3629_s28  ;;  %s890_s21 = scalar_lea.vmem [#allocation5], %s3630_s24 }
 0x1b5   : > { %880 = vst [vmem:[#allocation2 + $0x1] sm:$0x1] %v879_v1  ;;  %v883_v2 = vld [vmem:[%s882_s10] sm:$0x1]  ;;  %s894_s11 = scalar_lea.vmem [#allocation5], %s3631_s18  ;;  %s898_s17 = scalar_lea.vmem [#allocation5], %s3632_s27 }
 0x1b6   : > { %v887_v3 = vld [vmem:[%s886_s12] sm:$0x1]  ;;  %884 = vst [vmem:[#allocation2 + $0x2] sm:$0x1] %v883_v2  ;;  %s902_s29 = scalar_lea.vmem [#allocation5], %s3633_s5  ;;  %s906_s25 = scalar_lea.vmem [#allocation5], %s5623_s8 }
 0x1b7   : > { %888 = vst [vmem:[#allocation2 + $0x3] sm:$0x1] %v887_v3  ;;  %v891_v4 = vld [vmem:[%s890_s21] sm:$0x1]  ;;  %s910_s28 = scalar_lea.vmem [#allocation5], %s5625_s0  ;;  %s914_s24 = scalar_lea.vmem [#allocation5], %s5627_s4 }
 0x1b8   : > { %v895_v5 = vld [vmem:[%s894_s11] sm:$0x1]  ;;  %892 = vst [vmem:[#allocation2 + $0x4] sm:$0x1] %v891_v4  ;;  %s918_s21 = scalar_lea.vmem [#allocation5], %s5629_s9  ;;  %s3638_s11 = sld [smem:[#allocation4 + $0xc]] }
 0x1b9   : > { %896 = vst [vmem:[#allocation2 + $0x5] sm:$0x1] %v895_v5  ;;  %v899_v6 = vld [vmem:[%s898_s17] sm:$0x1]  ;;  %s3639_s18 = sld [smem:[#allocation4 + $0xd]]  ;;  %s3640_s27 = sld [smem:[#allocation4 + $0xe]] }
 0x1ba   : > { %v903_v7 = vld [vmem:[%s902_s29] sm:$0x1]  ;;  %900 = vst [vmem:[#allocation2 + $0x6] sm:$0x1] %v899_v6  ;;  %s3641_s23 = sld [smem:[#allocation4 + $0xf]]  ;;  %s3642_s5 = sld [smem:[#allocation4 + $0x10]] }
 0x1bb   : > { %904 = vst [vmem:[#allocation2 + $0x7] sm:$0x1] %v903_v7  ;;  %v907_v8 = vld [vmem:[%s906_s25] sm:$0x1]  ;;  %s3643_s3 = sld [smem:[#allocation4 + $0x11]]  ;;  %s3644_s10 = sld [smem:[#allocation4 + $0x12]] }
 0x1bc   : > { %v911_v9 = vld [vmem:[%s910_s28] sm:$0x1]  ;;  %908 = vst [vmem:[#allocation2 + $0x8] sm:$0x1] %v907_v8  ;;  %s3645_s12 = sld [smem:[#allocation4 + $0x13]]  ;;  %s3646_s8 = sld [smem:[#allocation4 + $0x14]] }
 0x1bd   : > { %912 = vst [vmem:[#allocation2 + $0x9] sm:$0x1] %v911_v9  ;;  %v915_v10 = vld [vmem:[%s914_s24] sm:$0x1]  ;;  %s5635_s17 = sld [smem:[#allocation4 + $0x15]]  ;;  %s5637_s0 = sld [smem:[#allocation4 + $0x16]] }
 0x1be   : > { %v919_v11 = vld [vmem:[%s918_s21] sm:$0x1]  ;;  %916 = vst [vmem:[#allocation2 + $0xa] sm:$0x1] %v915_v10  ;;  %s5639_s29 = sld [smem:[#allocation4 + $0x17]]  ;;  %s922_s4 = scalar_lea.vmem [#allocation5], %s3638_s11 }
 0x1bf   : > { %920 = vst [vmem:[#allocation2 + $0xb] sm:$0x1] %v919_v11  ;;  %v923_v12 = vld [vmem:[%s922_s4] sm:$0x1]  ;;  %s926_s9 = scalar_lea.vmem [#allocation5], %s3639_s18  ;;  %s930_s25 = scalar_lea.vmem [#allocation5], %s3640_s27 }
 0x1c0   : > { %924 = vst [vmem:[#allocation2 + $0xc] sm:$0x1] %v923_v12  ;;  %v927_v13 = vld [vmem:[%s926_s9] sm:$0x1]  ;;  %s934_s28 = scalar_lea.vmem [#allocation5], %s3641_s23  ;;  %s938_s24 = scalar_lea.vmem [#allocation5], %s3642_s5 }
 0x1c1   : > { %v931_v14 = vld [vmem:[%s930_s25] sm:$0x1]  ;;  %928 = vst [vmem:[#allocation2 + $0xd] sm:$0x1] %v927_v13  ;;  %s942_s21 = scalar_lea.vmem [#allocation5], %s3643_s3  ;;  %s946_s13 = scalar_lea.vmem [#allocation5], %s3644_s10 }
 0x1c2   : > { %932 = vst [vmem:[#allocation2 + $0xe] sm:$0x1] %v931_v14  ;;  %v935_v15 = vld [vmem:[%s934_s28] sm:$0x1]  ;;  %s950_s11 = scalar_lea.vmem [#allocation5], %s3645_s12  ;;  %s954_s18 = scalar_lea.vmem [#allocation5], %s3646_s8 }
 0x1c3   : > { %v939_v16 = vld [vmem:[%s938_s24] sm:$0x1]  ;;  %936 = vst [vmem:[#allocation2 + $0xf] sm:$0x1] %v935_v15  ;;  %s958_s27 = scalar_lea.vmem [#allocation5], %s5635_s17  ;;  %s962_s23 = scalar_lea.vmem [#allocation5], %s5637_s0 }
 0x1c4   : > { %940 = vst [vmem:[#allocation2 + $0x10] sm:$0x1] %v939_v16  ;;  %v943_v17 = vld [vmem:[%s942_s21] sm:$0x1]  ;;  %s966_s5 = scalar_lea.vmem [#allocation5], %s5639_s29  ;;  %s3650_s3 = sld [smem:[#allocation4 + $0x18]] }
 0x1c5   : > { %v947_v18 = vld [vmem:[%s946_s13] sm:$0x1]  ;;  %944 = vst [vmem:[#allocation2 + $0x11] sm:$0x1] %v943_v17  ;;  %s3651_s10 = sld [smem:[#allocation4 + $0x19]]  ;;  %s3652_s13 = sld [smem:[#allocation4 + $0x1a]] }
 0x1c6   : > { %948 = vst [vmem:[#allocation2 + $0x12] sm:$0x1] %v947_v18  ;;  %v951_v19 = vld [vmem:[%s950_s11] sm:$0x1]  ;;  %s3653_s4 = sld [smem:[#allocation4 + $0x1b]]  ;;  %s3654_s9 = sld [smem:[#allocation4 + $0x1c]] }
 0x1c7   : > { %v955_v20 = vld [vmem:[%s954_s18] sm:$0x1]  ;;  %952 = vst [vmem:[#allocation2 + $0x13] sm:$0x1] %v951_v19  ;;  %s3655_s12 = sld [smem:[#allocation4 + $0x1d]]  ;;  %s3656_s25 = sld [smem:[#allocation4 + $0x1e]] }
 0x1c8   : > { %956 = vst [vmem:[#allocation2 + $0x14] sm:$0x1] %v955_v20  ;;  %v959_v21 = vld [vmem:[%s958_s27] sm:$0x1]  ;;  %s3657_s8 = sld [smem:[#allocation4 + $0x1f]] }
 0x1c9   : > { %v963_v22 = vld [vmem:[%s962_s23] sm:$0x1]  ;;  %960 = vst [vmem:[#allocation2 + $0x15] sm:$0x1] %v959_v21 }
 0x1ca   : > { %964 = vst [vmem:[#allocation2 + $0x16] sm:$0x1] %v963_v22  ;;  %v967_v23 = vld [vmem:[%s966_s5] sm:$0x1]  ;;  %s970_s28 = scalar_lea.vmem [#allocation5], %s3650_s3 }
 0x1cb   : > { %968 = vst [vmem:[#allocation2 + $0x17] sm:$0x1] %v967_v23  ;;  %v971_v24 = vld [vmem:[%s970_s28] sm:$0x1]  ;;  %s974_s24 = scalar_lea.vmem [#allocation5], %s3651_s10  ;;  %s978_s17 = scalar_lea.vmem [#allocation5], %s3652_s13 }
 0x1cc   : > { %v975_v25 = vld [vmem:[%s974_s24] sm:$0x1]  ;;  %972 = vst [vmem:[#allocation2 + $0x18] sm:$0x1] %v971_v24  ;;  %s982_s0 = scalar_lea.vmem [#allocation5], %s3653_s4  ;;  %s986_s29 = scalar_lea.vmem [#allocation5], %s3654_s9 }
 0x1cd   : > { %976 = vst [vmem:[#allocation2 + $0x19] sm:$0x1] %v975_v25  ;;  %v979_v26 = vld [vmem:[%s978_s17] sm:$0x1]  ;;  %s990_s21 = scalar_lea.vmem [#allocation5], %s3655_s12  ;;  %s994_s11 = scalar_lea.vmem [#allocation5], %s3656_s25 }
 0x1ce   : > { %v983_v27 = vld [vmem:[%s982_s0] sm:$0x1]  ;;  %980 = vst [vmem:[#allocation2 + $0x1a] sm:$0x1] %v979_v26  ;;  %s998_s18 = scalar_lea.vmem [#allocation5], %s3657_s8 }
 0x1cf   : > { %984 = vst [vmem:[#allocation2 + $0x1b] sm:$0x1] %v983_v27  ;;  %v987_v28 = vld [vmem:[%s986_s29] sm:$0x1] }
 0x1d0   : > { %v991_v29 = vld [vmem:[%s990_s21] sm:$0x1]  ;;  %988 = vst [vmem:[#allocation2 + $0x1c] sm:$0x1] %v987_v28 }
 0x1d1   : > { %992 = vst [vmem:[#allocation2 + $0x1d] sm:$0x1] %v991_v29  ;;  %v995_v30 = vld [vmem:[%s994_s11] sm:$0x1] }
 0x1d2   : > { %v999_v31 = vld [vmem:[%s998_s18] sm:$0x1]  ;;  %996 = vst [vmem:[#allocation2 + $0x1e] sm:$0x1] %v995_v30 }
 0x1d3   : > { %1000 = vst [vmem:[#allocation2 + $0x1f] sm:$0x1] %v999_v31 }
 0x1d4 PF: > { %v5644_v32 = vld [vmem:[#allocation2 + $0x10] sm:$0xff]  ;;  %v5654_v37 = vld [vmem:[#allocation2 + $0x8] sm:$0xff]  ;;  %v4272_v38 = vld [vmem:[%s5577_s14] sm:$0xff]   ;;  %s6265_s27 = sld [smem:[#allocation49_spill]]  ;;  %s5008_s5 = smov 16   ;;  %vm1539_vm0 = vcmask 261120  }
 0x1d5   : > { %v1024_v35 = vmul.f32 %v5644_v32, %v5644_v32  ;;  %v1023_v40 = vmul.f32 %v5654_v37, %v5654_v37  ;;  %v4273_v41 = vld [vmem:[%s5583_s30] sm:$0xff]   ;;  %3927 = vmatprep.subr.bf16.mxu0 %v4272_v38  ;;  %v4274_v42 = vld [vmem:[%s5577_s14 + $0x8] sm:$0xff]   ;;  %v4276_v44 = vld [vmem:[%s5577_s14 + $0x10] sm:$0xff]   ;;  %s6267_s10 = sld [smem:[#allocation44_spill]]  ;;  %s6268_s9 = sld [smem:[#allocation48_spill]] }
 0x1d6   : > { %3928 = vmatpush3.bf16.msra.mxu0 %v4272_v38  ;;  %3947 = vmatprep.subr.bf16.mxu1 %v4273_v41  ;;  %v4275_v43 = vld [vmem:[%s5583_s30 + $0x8] sm:$0xff]   ;;  %v4277_v45 = vld [vmem:[%s5583_s30 + $0x10] sm:$0xff]   ;;  %v4278_v46 = vld [vmem:[%s5577_s14 + $0x18] sm:$0xff]  }
 0x1d7   : > { %1030 = vadd.xlane.f32.xlu1 %v1024_v35  ;;  %3948 = vmatpush3.bf16.msra.mxu1 %v4273_v41  ;;  %v4279_v47 = vld [vmem:[%s5583_s30 + $0x18] sm:$0xff]   ;;  %v4280_v48 = vld [vmem:[%s5577_s14 + $0x20] sm:$0xff]   ;;  %v4282_v50 = vld [vmem:[%s5577_s14 + $0x28] sm:$0xff]  }
 0x1d8   : > { %3929 = vmatprep.subr.bf16.mxu0 %v4274_v42  ;;  %3949 = vmatprep.subr.bf16.mxu1 %v4275_v43  ;;  %v4281_v49 = vld [vmem:[%s5583_s30 + $0x20] sm:$0xff]   ;;  %v4283_v51 = vld [vmem:[%s5583_s30 + $0x28] sm:$0xff]   ;;  %v4284_v52 = vld [vmem:[%s5577_s14 + $0x30] sm:$0xff]  }
 0x1d9   : > { %v4285_v53 = vld [vmem:[%s5583_s30 + $0x30] sm:$0xff]   ;;  %v4286_v54 = vld [vmem:[%s5577_s14 + $0x38] sm:$0xff]   ;;  %v4288_v56 = vld [vmem:[%s5585_s20] sm:$0xff]  }
 0x1da   : > { %v5648_v34 = vld [vmem:[#allocation2 + $0x18] sm:$0xff]  ;;  %3930 = vmatpush3.bf16.msra.mxu0 %v4274_v42  ;;  %s6266_s23 = scalar_lea.vmem %s6265_s27, %s5615_s7  ;;  %v4289_v20 = vld [vmem:[%s5585_s20 + $0x8] sm:$0xff]   ;;  %v4290_v21 = vld [vmem:[%s5585_s20 + $0x10] sm:$0xff]   ;;  %s5007_s7 = smov 112  }
 0x1db   : > { %v5646_v33 = vld [vmem:[#allocation2] sm:$0xff]  ;;  %v1025_v39 = vmul.f32 %v5648_v34, %v5648_v34  ;;  %3950 = vmatpush3.bf16.msra.mxu1 %v4275_v43  ;;  %3931 = vmatprep.subr.bf16.mxu0 %v4276_v44  ;;  %v4287_v55 = vld [vmem:[%s5583_s30 + $0x38] sm:$0xff]   ;;  %v4293_v24 = vld [vmem:[%s5585_s20 + $0x28] sm:$0xff]   ;;  %v1484_v43 = vlaneseq  ;;  %s6269_s30 = sld [smem:[#allocation47_spill]] }
 0x1dc   : > { %v1022_v36 = vmul.f32 %v5646_v33, %v5646_v33  ;;  %3951 = vmatprep.subr.bf16.mxu1 %v4277_v45  ;;  %v3658_v9 = vld [vmem:[%s6266_s23] ss:$0 sm:$0xff]  ;;  %v4291_v22 = vld [vmem:[%s5585_s20 + $0x18] sm:$0xff]   ;;  %v4294_v25 = vld [vmem:[%s5585_s20 + $0x30] sm:$0xff]  }
 0x1dd   : > { %1032 = vadd.xlane.f32.xlu1 %v1025_v39  ;;  %v4292_v23 = vld [vmem:[%s5585_s20 + $0x20] sm:$0xff]   ;;  %v4295_v26 = vld [vmem:[%s5585_s20 + $0x38] sm:$0xff]  }
 0x1de   : > { %1026 = vadd.xlane.f32.xlu0 %v1022_v36  ;;  %3932 = vmatpush3.bf16.msra.mxu0 %v4276_v44 }
 0x1df   : > { %3952 = vmatpush3.bf16.msra.mxu1 %v4277_v45  ;;  %3933 = vmatprep.subr.bf16.mxu0 %v4278_v46  ;;  %v5717_v45 = vld [vmem:[#allocation8] sm:$0xff] }
 0x1e0   : > { %3953 = vmatprep.subr.bf16.mxu1 %v4279_v47 }
 0x1e1   : > { %s6270_s27 = smov %s6269_s30 }
 0x1e2   : > { %1028 = vadd.xlane.f32.xlu0 %v1023_v40  ;;  %3934 = vmatpush3.bf16.msra.mxu0 %v4278_v46 }
 0x1e3   : > { %3954 = vmatpush3.bf16.msra.mxu1 %v4279_v47  ;;  %3935 = vmatprep.subr.bf16.mxu0 %v4280_v48  ;;  %v5722_v47 = vld [vmem:[%s6267_s10] sm:$0xff] }
 0x1e4   : > { %3955 = vmatprep.subr.bf16.mxu1 %v4281_v49 }
 0x1e6   : > { %3936 = vmatpush3.bf16.msra.mxu0 %v4280_v48  ;;  %v1010_v48 = vld [vmem:[#allocation8 + $0x8] sm:$0xff] }
 0x1e7   : > { %3956 = vmatpush3.bf16.msra.mxu1 %v4281_v49  ;;  %3937 = vmatprep.subr.bf16.mxu0 %v4282_v50  ;;  %v1485_v49 = vshrl.u32 %v1484_v43, 7 }
 0x1e8   : > { %3957 = vmatprep.subr.bf16.mxu1 %v4283_v51 }
 0x1ea   : > { %3938 = vmatpush3.bf16.msra.mxu0 %v4282_v50 }
 0x1eb   : > { %3958 = vmatpush3.bf16.msra.mxu1 %v4283_v51  ;;  %3939 = vmatprep.subr.bf16.mxu0 %v4284_v52 }
 0x1ec   : > { %3959 = vmatprep.subr.bf16.mxu1 %v4285_v53 }
 0x1ee   : > { %3940 = vmatpush3.bf16.msra.mxu0 %v4284_v52  ;;  %v5728_v52 = vld [vmem:[%s6268_s9] sm:$0x1] }
 0x1ef   : > { %3960 = vmatpush3.bf16.msra.mxu1 %v4285_v53  ;;  %3941 = vmatprep.subr.bf16.mxu0 %v4286_v54  ;;  %v1006_v53 = vld [vmem:[%s6267_s10 + $0x8] sm:$0xff] }
 0x1f0   : > { %3961 = vmatprep.subr.bf16.mxu1 %v4287_v55 }
 0x1f2   : > { %3942 = vmatpush3.bf16.msra.mxu0 %v4286_v54 }
 0x1f3   : > { %3962 = vmatpush3.bf16.msra.mxu1 %v4287_v55  ;;  %3967 = vmatprep.subr.bf16.mxu0 %v4288_v56  ;;  %v5736_v55 = vld [vmem:[%s6268_s9 + $0x2] sm:$0x1] }
 0x264   : > { %v1031_v57 = vpop.xlane.xlu1 %1030 }
 0x265   : > { %v1037_v59 = vmul.f32 0.0078125, %v1031_v57  ;;  %v1011_v57 = vld [vmem:[#allocation8 + $0x10] sm:$0xff] }
 0x267   : > { %v1041_v61 = vadd.f32 1e-05, %v1037_v59  ;;  %v1013_v59 = vld [vmem:[#allocation10] sm:$0xff] }
 0x269   : > { %4392 = vrsqrt.f32 %v1041_v61  ;;  %v1014_v61 = vld [vmem:[#allocation10 + $0x8] sm:$0xff] }
 0x26a   : > { %v1033_v63 = vpop.xlane.xlu1 %1032 }
 0x26b   : > { %v1027_v58 = vpop.xlane.xlu0 %1026  ;;  %v1038_v1 = vmul.f32 0.0078125, %v1033_v63  ;;  %v5741_v63 = vsub.s32 0, %v1485_v49 }
 0x26c   : > { %v1035_v60 = vmul.f32 0.0078125, %v1027_v58 }
 0x26d   : > { %v1042_v3 = vadd.f32 1e-05, %v1038_v1  ;;  %v1008_v1 = vld [vmem:[%s6267_s10 + $0x18] sm:$0xff] }
 0x26e   : > { %v1039_v62 = vadd.f32 1e-05, %v1035_v60  ;;  %v1012_v60 = vld [vmem:[#allocation8 + $0x18] sm:$0xff] }
 0x26f   : > { %v1029_v0 = vpop.xlane.xlu0 %1028 }
 0x270   : > { %v1036_v2 = vmul.f32 0.0078125, %v1029_v0  ;;  %4394 = vrsqrt.f32 %v1039_v62  ;;  %v1482_v62 = vpack.i.b16 %v5728_v52, %v5728_v52  ;;  %v1007_v0 = vld [vmem:[%s6267_s10 + $0x10] sm:$0xff] }
 0x271   : > { %4396 = vrsqrt.f32 %v1042_v3 }
 0x272   : > { %v1040_v4 = vadd.f32 1e-05, %v1036_v2 }
 0x273   : > { %v4393_v5 = vpop.eup %4392 }
 0x274   : > { %4398 = vrsqrt.f32 %v1040_v4  ;;  %v1049_v7 = vmul.f32 %v4393_v5, %v5644_v32  ;;  %v1831_v5 = vpack.i.b16 %v5736_v55, %v5736_v55 }
 0x276   : > { %v1059_v14 = vmul.f32 %v3658_v9, %v1049_v7  ;;  %v1015_v7 = vld [vmem:[#allocation10 + $0x10] sm:$0xff] }
 0x27a   : > { %v4395_v6 = vpop.eup %4394 }
 0x27b   : > { %v4397_v8 = vpop.eup %4396  ;;  %v1047_v10 = vmul.f32 %v4395_v6, %v5646_v33 }
 0x27c   : > { %v1050_v12 = vmul.f32 %v4397_v8, %v5648_v34 }
 0x27d   : > { %v1057_v16 = vmul.f32 %v3658_v9, %v1047_v10 }
 0x27e   : > { %v4399_v11 = vpop.eup %4398  ;;  %v1060_v15 = vmul.f32 %v3658_v9, %v1050_v12 }
 0x27f   : > { %v1048_v13 = vmul.f32 %v4399_v11, %v5654_v37 }
 0x280   : > { %v1062_v18 = vpack.c.bf16 %v1060_v15, %v1059_v14 }
 0x281   : > { %v1058_v17 = vmul.f32 %v3658_v9, %v1048_v13  ;;  %v5754_v13 = vld [vmem:[%s6268_s9 + $0x1] sm:$0x1] }
 0x283   : > { %v1061_v19 = vpack.c.bf16 %v1058_v17, %v1057_v16  ;;  %v1016_v16 = vld [vmem:[#allocation10 + $0x18] sm:$0xff]  ;;  %v1487_v17 = vrot.slane %v1482_v62, %v5741_v63 }
 0x285   : > { %3943 = vmatprep.mubr.bf16.mxu0 %v1061_v19  ;;  %3963 = vmatprep.mubr.bf16.mxu1 %v1061_v19 }
 0x286   : > { %3944 = vmatmul.mubr.bf16.vlgmr.msra.gmra.mrb[0].mxu0 %v1062_v18  ;;  %3964 = vmatmul.mubr.bf16.vlgmr.msra.gmra.mrb[0].mxu1 %v1062_v18 }
 0x287   : > { %3968 = vmatpush3.bf16.msra.mxu0 %v4288_v56  ;;  %3983 = vmatprep.mubr.bf16.mxu0 %v1061_v19 }
 0x288   : > { %3969 = vmatprep.subr.bf16.mxu0 %v4289_v20 }
 0x28b   : > { %3970 = vmatpush3.bf16.msra.mxu0 %v4289_v20 }
 0x28c   : > { %3971 = vmatprep.subr.bf16.mxu0 %v4290_v21 }
 0x28f   : > { %3972 = vmatpush3.bf16.msra.mxu0 %v4290_v21  ;;  %v1836_v21 = vrot.slane %v1831_v5, %v5741_v63 }
 0x290   : > { %3973 = vmatprep.subr.bf16.mxu0 %v4291_v22 }
 0x293   : > { %3974 = vmatpush3.bf16.msra.mxu0 %v4291_v22 }
 0x294   : > { %3975 = vmatprep.subr.bf16.mxu0 %v4292_v23 }
 0x297   : > { %3976 = vmatpush3.bf16.msra.mxu0 %v4292_v23 }
 0x298   : > { %3977 = vmatprep.subr.bf16.mxu0 %v4293_v24 }
 0x29b   : > { %3978 = vmatpush3.bf16.msra.mxu0 %v4293_v24  ;;  %v1657_v24 = vpack.i.b16 %v5754_v13, %v5754_v13 }
 0x29c   : > { %3979 = vmatprep.subr.bf16.mxu0 %v4294_v25 }
 0x29f   : > { %3980 = vmatpush3.bf16.msra.mxu0 %v4294_v25 }
 0x2a0   : > { %3981 = vmatprep.subr.bf16.mxu0 %v4295_v26 }
 0x2a3   : > { %3982 = vmatpush3.bf16.msra.mxu0 %v4295_v26 }
 0x2a6   : > { %3984 = vmatmul.mubr.bf16.vlgmr.msra.gmra.mrb[4].mxu0 %v1062_v18 }
 0x359   : > { %v5693_v27 = vpop.f32.mrb[0].mxu0  ;;  %v5695_v28 = vpop.f32.mrb[0].mxu1 }
 0x35a   : > { %1444 = vrot.lane.b32.xlu0 %v5695_v28, %s5007_s7  ;;  %v5698_v29 = vpop.f32.mrb[1].mxu0  ;;  %v1274_v30 = vpop.f32.mrb[1].mxu1  ;;  %v1458_v14 = vmul.f32 %v5695_v28, %v1007_v0 }
 0x35b   : > { %1448 = vrot.lane.b32.xlu1 %v1274_v30, %s5008_s5  ;;  %v5700_v31 = vpop.f32.mrb[2].mxu0  ;;  %v3966_v32 = vpop.f32.mrb[2].mxu1  ;;  %v1456_v56 = vmul.f32 %v1274_v30, %v5722_v47 }
 0x35c   : > { %v5702_v33 = vpop.f32.mrb[3].mxu0  ;;  %v1277_v34 = vpop.f32.mrb[3].mxu1  ;;  %v1459_v15 = vmul.f32 %v3966_v32, %v1008_v1 }
 0x35d   : > { %v1457_v2 = vmul.f32 %v1277_v34, %v1006_v53 }
 0x35e   : > { %1440 = vrot.lane.b32.xlu0 %v1274_v30, %s5007_s7 }
 0x35f   : > { %1446 = vrot.lane.b32.xlu1 %v3966_v32, %s5007_s7 }
 0x362   : > { %1452 = vrot.lane.b32.xlu0 %v5695_v28, %s5008_s5 }
 0x363   : > { %1442 = vrot.lane.b32.xlu1 %v1277_v34, %s5007_s7 }
 0x366   : > { %1402 = vrot.lane.b32.xlu0 %v5698_v29, %s5007_s7 }
 0x367   : > { %1450 = vrot.lane.b32.xlu1 %v1277_v34, %s5008_s5 }
 0x36a   : > { %1406 = vrot.lane.b32.xlu0 %v5693_v27, %s5007_s7 }
 0x36b   : > { %1454 = vrot.lane.b32.xlu1 %v3966_v32, %s5008_s5 }
 0x36e   : > { %1410 = vrot.lane.b32.xlu0 %v5698_v29, %s5008_s5 }
 0x36f   : > { %1408 = vrot.lane.b32.xlu1 %v5700_v31, %s5007_s7 }
 0x372   : > { %1414 = vrot.lane.b32.xlu0 %v5693_v27, %s5008_s5 }
 0x373   : > { %1404 = vrot.lane.b32.xlu1 %v5702_v33, %s5007_s7 }
 0x377   : > { %1412 = vrot.lane.b32.xlu1 %v5702_v33, %s5008_s5 }
 0x379   : > { %v3985_v35 = vpop.f32.mrb[4].mxu0 }
 0x37a   : > { %v1387_v36 = vpop.f32.mrb[5].mxu0 }
 0x37b   : > { %v3986_v37 = vpop.f32.mrb[6].mxu0  ;;  %1416 = vrot.lane.b32.xlu1 %v5700_v31, %s5008_s5 }
 0x37c   : > { %v5713_v38 = vpack.c.bf16 %v3986_v37, %v3985_v35  ;;  %v1390_v39 = vpop.f32.mrb[7].mxu0 }
 0x37d   : > { %v5715_v40 = vpack.c.bf16 %v1390_v39, %v1387_v36 }
 0x3cc   : > { %v1445_v41 = vpop.permute.xlu0 %1444 }
 0x3cd   : > { %v1449_v42 = vpop.permute.xlu1 %1448  ;;  %v1462_v6 = vmul.f32 %v1445_v41, %v1011_v57  ;;  %v1662_v41 = vrot.slane %v1657_v24, %v5741_v63  ;;  %v5829_v24 = vld [vmem:[%s6270_s27 + $0x18] sm:$0xff] }
 0x3ce   : > { %v1468_v9 = vmul.f32 %v1449_v42, %v1013_v59 }
 0x3cf   : > { %v1466_v25 = vadd.f32 %v1462_v6, %v1458_v14 }
 0x3d0   : > { %v1441_v44 = vpop.permute.xlu0 %1440 }
 0x3d1   : > { %v1447_v46 = vpop.permute.xlu1 %1446  ;;  %v1460_v50 = vmul.f32 %v1441_v44, %v5717_v45 }
 0x3d2   : > { %v1463_v10 = vmul.f32 %v1447_v46, %v1012_v60 }
 0x3d3   : > { %v1464_v3 = vadd.f32 %v1460_v50, %v1456_v56  ;;  %v1419_v56 = vmul.f32 %v5702_v33, %v1006_v53 }
 0x3d4   : > { %v1453_v51 = vpop.permute.xlu0 %1452  ;;  %v1467_v26 = vadd.f32 %v1463_v10, %v1459_v15  ;;  %v1420_v10 = vmul.f32 %v5693_v27, %v1007_v0  ;;  %v5816_v15 = vld [vmem:[%s6270_s27 + $0x8] sm:$0xff] }
 0x3d5   : > { %v1443_v54 = vpop.permute.xlu1 %1442  ;;  %v1472_v18 = vadd.f32 %v1468_v9, %v1464_v3  ;;  %v1470_v19 = vmul.f32 %v1453_v51, %v1015_v7 }
 0x3d6   : > { %v1461_v58 = vmul.f32 %v1443_v54, %v1010_v48  ;;  %v1418_v54 = vmul.f32 %v5698_v29, %v5722_v47 }
 0x3d7   : > { %v1474_v28 = vadd.f32 %v1470_v19, %v1466_v25 }
 0x3d8   : > { %v1403_v4 = vpop.permute.xlu0 %1402  ;;  %v1465_v11 = vadd.f32 %v1461_v58, %v1457_v2 }
 0x3d9   : > { %v1451_v8 = vpop.permute.xlu1 %1450  ;;  %v1422_v49 = vmul.f32 %v1403_v4, %v5717_v45  ;;  %v1421_v45 = vmul.f32 %v5700_v31, %v1008_v1 }
 0x3da   : > { %v1469_v12 = vmul.f32 %v1451_v8, %v1014_v61 }
 0x3db   : > { %v1426_v62 = vadd.f32 %v1422_v49, %v1418_v54 }
 0x3dc   : > { %v1473_v20 = vadd.f32 %v1469_v12, %v1465_v11  ;;  %v1407_v22 = vpop.permute.xlu0 %1406 }
 0x3dd   : > { %v1455_v23 = vpop.permute.xlu1 %1454  ;;  %v1424_v5 = vmul.f32 %v1407_v22, %v1011_v57 }
 0x3de   : > { %v5761_v30 = vpack.c.bf16 %v1473_v20, %v1472_v18  ;;  %v1471_v34 = vmul.f32 %v1455_v23, %v1016_v16 }
 0x3df   : > { %v1428_v33 = vadd.f32 %v1424_v5, %v1420_v10 }
 0x3e0   : > { %v1475_v32 = vadd.f32 %v1471_v34, %v1467_v26  ;;  %v1488_v35 = vmul.bf16 %v1487_v17, %v5761_v30  ;;  %v1837_v36 = vmul.bf16 %v1836_v21, %v5761_v30  ;;  %v1411_v42 = vpop.permute.xlu0 %1410  ;;  %v5794_v31 = vmul.bf16 %v1662_v41, %v5761_v30 }
 0x3e1   : > { %v1409_v37 = vpop.permute.xlu1 %1408  ;;  %v1430_v58 = vmul.f32 %v1411_v42, %v1013_v59 }
 0x3e2   : > { %v5765_v39 = vpack.c.bf16 %v1475_v32, %v1474_v28  ;;  %3987 = vmatprep.subr.bf16.mxu1 %v1488_v35  ;;  %4019 = vmatprep.subr.bf16.mxu0 %v1837_v36  ;;  %v1425_v6 = vmul.f32 %v1409_v37, %v1012_v60 }
 0x3e3   : > { %3988 = vmatpush3.bf16.xpose.msra.mxu1 %v1488_v35  ;;  %4020 = vmatpush3.bf16.xpose.msra.mxu0 %v1837_v36 }
 0x3e4   : > { %v1489_v43 = vmul.bf16 %v1487_v17, %v5765_v39  ;;  %v1838_v44 = vmul.bf16 %v1836_v21, %v5765_v39  ;;  %v5771_v46 = vmul.bf16 %v1662_v41, %v5765_v39  ;;  %v1415_v2 = vpop.permute.xlu0 %1414  ;;  %v1429_v47 = vadd.f32 %v1425_v6, %v1421_v45 }
 0x3e5   : > { %v1405_v50 = vpop.permute.xlu1 %1404  ;;  %v1432_v4 = vmul.f32 %v1415_v2, %v1015_v7  ;;  %v5809_v7 = vld [vmem:[%s6270_s27 + $0x10] sm:$0xff] }
 0x3e6   : > { %v1423_v51 = vmul.f32 %v1405_v50, %v1010_v48  ;;  %3989 = vmatprep.subr.bf16.mxu1 %v1489_v43  ;;  %4021 = vmatprep.subr.bf16.mxu0 %v1838_v44  ;;  %v1434_v48 = vadd.f32 %v1430_v58, %v1426_v62 }
 0x3e7   : > { %v1436_v59 = vadd.f32 %v1432_v4, %v1428_v33 }
 0x3e8   : > { %v1427_v8 = vadd.f32 %v1423_v51, %v1419_v56 }
 0x3e9   : > { %v1413_v3 = vpop.permute.xlu1 %1412 }
 0x3ea   : > { %v1431_v9 = vmul.f32 %v1413_v3, %v1014_v61  ;;  %v5802_v61 = vld [vmem:[%s6269_s30] sm:$0xff] }
 0x3eb   : > { %3990 = vmatpush3.bf16.xpose.msra.mxu1 %v1489_v43  ;;  %4022 = vmatpush3.bf16.xpose.msra.mxu0 %v1838_v44 }
 0x3ec   : > { %v1435_v11 = vadd.f32 %v1431_v9, %v1427_v8  ;;  %3995 = vmatprep.subr.bf16.mxu1 %v5715_v40  ;;  %4043 = vmatprep.subr.bf16.mxu0 %v5715_v40 }
 0x3ed   : > { %v1417_v29 = vpop.permute.xlu1 %1416 }
 0x3ee   : > { %v5781_v53 = vpack.c.bf16 %v1435_v11, %v1434_v48  ;;  %v1433_v57 = vmul.f32 %v1417_v29, %v1016_v16 }
 0x3f0   : > { %v1437_v60 = vadd.f32 %v1433_v57, %v1429_v47  ;;  %3991 = vmatprep.mubr.bf16.mxu1 %v5781_v53  ;;  %4023 = vmatprep.mubr.bf16.mxu0 %v5781_v53 }
 0x3f2   : > { %v5785_v27 = vpack.c.bf16 %v1437_v60, %v1436_v59 }
 0x3f4   : > { %3992 = vmatmul.mubr.bf16.vlgmr.msra.gmra.mrb[4].mxu1 %v5785_v27  ;;  %4024 = vmatmul.mubr.bf16.vlgmr.msra.gmra.mrb[8].mxu0 %v5785_v27 }
 0x3f5   : > { %3996 = vmatpush3.bf16.msra.mxu1 %v5715_v40  ;;  %4044 = vmatpush3.bf16.msra.mxu0 %v5715_v40 }
 0x3f6   : > { %3997 = vmatprep.subr.bf16.mxu1 %v5713_v38  ;;  %4045 = vmatprep.subr.bf16.mxu0 %v5713_v38 }
 0x3f9   : > { %3998 = vmatpush3.bf16.msra.mxu1 %v5713_v38  ;;  %4046 = vmatpush3.bf16.msra.mxu0 %v5713_v38 }
 0x3fa   : > { %4003 = vmatprep.subr.bf16.mxu1 %v5794_v31 }
 0x4c7   : > { %v3993_v0 = vpop.f32.mrb[4].mxu1  ;;  %v5804_v1 = vpop.f32.mrb[8].mxu0 }
 0x4c8   : > { %v1524_v12 = vpop.f32.mrb[5].mxu1  ;;  %v5811_v14 = vpop.f32.mrb[9].mxu0  ;;  %v1533_v21 = vadd.f32 %v3993_v0, %v5809_v7 }
 0x4c9   : > { %v1525_v16 = vadd.f32 %v1524_v12, %v5802_v61  ;;  %v3994_v17 = vpop.f32.mrb[6].mxu1  ;;  %v5819_v18 = vpop.f32.mrb[10].mxu0 }
 0x4ca   : > { %v1527_v19 = vpop.f32.mrb[7].mxu1  ;;  %v5821_v20 = vpop.f32.mrb[11].mxu0  ;;  %v1536_v26 = vadd.f32 %v3994_v17, %v5829_v24  ;;  %v1546_v34 = vsel %vm1539_vm0, %v1533_v21, -inf }
 0x4cb   : > { %v1528_v22 = vadd.f32 %v1527_v19, %v5816_v15  ;;  %v1540_v23 = vsel %vm1539_vm0, %v1525_v16, -inf }
 0x4cc   : > { %1541 = vmax.xlane.f32.xlu0 %v1540_v23  ;;  %v1549_v28 = vsel %vm1539_vm0, %v1536_v26, -inf }
 0x4cd   : > { %v1543_v25 = vsel %vm1539_vm0, %v1528_v22, -inf }
 0x4ce   : > { %1544 = vmax.xlane.f32.xlu1 %v1543_v25 }
 0x4d0   : > { %1547 = vmax.xlane.f32.xlu0 %v1546_v34 }
 0x4d4   : > { %1550 = vmax.xlane.f32.xlu0 %v1549_v28 }
 0x559   : > { %v1542_v32 = vpop.xlane.xlu0 %1541 }
 0x55a   : > { %v1552_v35 = vsub.f32 %v1525_v16, %v1542_v32 }
 0x55b   : > { %v1545_v36 = vpop.xlane.xlu1 %1544 }
 0x55c   : > { %v1556_v37 = vmul.f32 1.442695, %v1552_v35  ;;  %v1553_v41 = vsub.f32 %v1528_v22, %v1545_v36 }
 0x55d   : > { %v1548_v42 = vpop.xlane.xlu0 %1547 }
 0x55e   : > { %4400 = vpow2.f32 %v1556_v37  ;;  %v1558_v43 = vmul.f32 1.442695, %v1553_v41  ;;  %v1554_v44 = vsub.f32 %v1533_v21, %v1548_v42 }
 0x560   : > { %4402 = vpow2.f32 %v1558_v43  ;;  %v1560_v49 = vmul.f32 1.442695, %v1554_v44  ;;  %v1874_v44 = vadd.f32 %v5811_v14, %v5802_v61 }
 0x561   : > { %v1551_v50 = vpop.xlane.xlu0 %1550 }
 0x562   : > { %4404 = vpow2.f32 %v1560_v49  ;;  %v1555_v51 = vsub.f32 %v1536_v26, %v1551_v50  ;;  %v1877_v50 = vadd.f32 %v5821_v20, %v5816_v15 }
 0x564   : > { %v1562_v54 = vmul.f32 1.442695, %v1555_v51  ;;  %v1891_v14 = vsel %vm1539_vm0, %v1877_v50, -inf }
 0x566   : > { %4406 = vpow2.f32 %v1562_v54  ;;  %v1882_v54 = vadd.f32 %v5804_v1, %v5809_v7 }
 0x568   : > { %v4401_v56 = vpop.eup %4400 }
 0x569   : > { %v1564_v58 = vsel %vm1539_vm0, %v4401_v56, 0.0 }
 0x56a   : > { %v4403_v62 = vpop.eup %4402  ;;  %1565 = vadd.xlane.f32.xlu0 %v1564_v58  ;;  %v1885_v58 = vadd.f32 %v5819_v18, %v5829_v24 }
 0x56b   : > { %v1567_v2 = vsel %vm1539_vm0, %v4403_v62, 0.0 }
 0x56c   : > { %v4405_v3 = vpop.eup %4404  ;;  %1568 = vadd.xlane.f32.xlu1 %v1567_v2  ;;  %v1897_v20 = vsel %vm1539_vm0, %v1885_v58, -inf }
 0x56d   : > { %v1570_v5 = vsel %vm1539_vm0, %v4405_v3, 0.0 }
 0x56e   : > { %1571 = vadd.xlane.f32.xlu0 %v1570_v5 }
 0x570   : > { %v4407_v6 = vpop.eup %4406 }
 0x571   : > { %v1573_v8 = vsel %vm1539_vm0, %v4407_v6, 0.0 }
 0x572   : > { %1574 = vadd.xlane.f32.xlu1 %v1573_v8 }
 0x5f7   : > { %v1566_v9 = vpop.xlane.xlu0 %1565 }
 0x5f8   : > { %4408 = vrcp.f32 %v1566_v9 }
 0x5f9   : > { %v1569_v10 = vpop.xlane.xlu1 %1568 }
 0x5fa   : > { %4410 = vrcp.f32 %v1569_v10 }
 0x5fb   : > { %v1572_v45 = vpop.xlane.xlu0 %1571 }
 0x5fc   : > { %4412 = vrcp.f32 %v1572_v45 }
 0x5ff   : > { %v1575_v48 = vpop.xlane.xlu1 %1574 }
 0x600   : > { %4414 = vrcp.f32 %v1575_v48 }
 0x602   : > { %v4409_v4 = vpop.eup %4408 }
 0x603   : > { %v1580_v29 = vmul.f32 %v4409_v4, %v4401_v56  ;;  %v1888_v56 = vsel %vm1539_vm0, %v1874_v44, -inf }
 0x604   : > { %v4411_v11 = vpop.eup %4410 }
 0x605   : > { %v1581_v33 = vmul.f32 %v4411_v11, %v4403_v62  ;;  %v1894_v62 = vsel %vm1539_vm0, %v1882_v54, -inf }
 0x606   : > { %v4413_v57 = vpop.eup %4412 }
 0x607   : > { %v1584_v47 = vpack.c.bf16 %v1581_v33, %v1580_v29  ;;  %v1582_v60 = vmul.f32 %v4413_v57, %v4405_v3 }
 0x609   : > { %3999 = vmatprep.mubr.msk.bf16.mxu1 %vm1539_vm0, %v1584_v47 }
 0x60a   : > { %v4415_v59 = vpop.eup %4414 }
 0x60b   : > { %v1583_v0 = vmul.f32 %v4415_v59, %v4407_v6 }
 0x60d   : > { %v1585_v12 = vpack.c.bf16 %v1583_v0, %v1582_v60 }
 0x60f   : > { %4000 = vmatmul.mubr.msk.bf16.vlgmr.msra.gmra.mrb[8].mxu1 %vm1539_vm0, %v1585_v12 }
 0x610   : > { %4004 = vmatpush3.bf16.xpose.msra.mxu1 %v5794_v31  ;;  %4007 = vmatprep.mubr.bf16.mxu1 %v5781_v53  ;;  %v1641_v31 = vunpack.c.l.bf16 %v5728_v52 }
 0x611   : > { %4005 = vmatprep.subr.bf16.mxu1 %v5771_v46 }
 0x612   : > { %v1645_v16 = vrot.slane %v1641_v31, %v5741_v63 }
 0x618   : > { %4006 = vmatpush3.bf16.xpose.msra.mxu1 %v5771_v46 }
 0x619   : > { %4011 = vmatprep.subr.bf16.mxu1 %v5715_v40 }
 0x61f   : > { %4008 = vmatmul.mubr.bf16.vlgmr.msra.gmra.mrb[12].mxu1 %v5785_v27 }
 0x620   : > { %4012 = vmatpush3.bf16.msra.mxu1 %v5715_v40 }
 0x621   : > { %4013 = vmatprep.subr.bf16.mxu1 %v5713_v38 }
 0x624   : > { %4014 = vmatpush3.bf16.msra.mxu1 %v5713_v38 }
 0x625   : > { %4027 = vmatprep.subr.bf16.mxu1 %v5715_v40 }
 0x6e2   : > { %v4001_v17 = vpop.f32.mrb[8].mxu1 }
 0x6e3   : > { %v5853_v19 = vmul.f32 %v4001_v17, %v1645_v16  ;;  %v1626_v46 = vpop.f32.mrb[9].mxu1 }
 0x6e4   : > { %v5855_v21 = vmul.f32 %v1645_v16, %v1626_v46  ;;  %v4002_v22 = vpop.f32.mrb[10].mxu1 }
 0x6e5   : > { %v5857_v23 = vmul.f32 %v4002_v22, %v1645_v16  ;;  %v1629_v25 = vpop.f32.mrb[11].mxu1 }
 0x6e6   : > { %v5859_v26 = vmul.f32 %v1645_v16, %v1629_v25 }
 0x6f2   : > { %v4009_v34 = vpop.f32.mrb[12].mxu1 }
 0x6f3   : > { %v1699_v28 = vpop.f32.mrb[13].mxu1  ;;  %v1708_v36 = vadd.f32 %v4009_v34, %v5809_v7 }
 0x6f4   : > { %v1700_v32 = vadd.f32 %v1699_v28, %v5802_v61  ;;  %v4010_v35 = vpop.f32.mrb[14].mxu1 }
 0x6f5   : > { %v1702_v52 = vpop.f32.mrb[15].mxu1  ;;  %v1711_v42 = vadd.f32 %v4010_v35, %v5829_v24  ;;  %v1720_v49 = vsel %vm1539_vm0, %v1708_v36, -inf }
 0x6f6   : > { %v1703_v37 = vadd.f32 %v1702_v52, %v5816_v15  ;;  %v1714_v41 = vsel %vm1539_vm0, %v1700_v32, -inf }
 0x6f7   : > { %1715 = vmax.xlane.f32.xlu0 %v1714_v41  ;;  %v1723_v51 = vsel %vm1539_vm0, %v1711_v42, -inf }
 0x6f8   : > { %v1717_v43 = vsel %vm1539_vm0, %v1703_v37, -inf }
 0x6f9   : > { %1718 = vmax.xlane.f32.xlu1 %v1717_v43 }
 0x6fb   : > { %1721 = vmax.xlane.f32.xlu0 %v1720_v49 }
 0x6fd   : > { %1724 = vmax.xlane.f32.xlu1 %v1723_v51 }
 0x6ff   : > { %1889 = vmax.xlane.f32.xlu0 %v1888_v56 }
 0x701   : > { %1892 = vmax.xlane.f32.xlu1 %v1891_v14 }
 0x703   : > { %1895 = vmax.xlane.f32.xlu0 %v1894_v62 }
 0x705   : > { %1898 = vmax.xlane.f32.xlu1 %v1897_v20 }
 0x784   : > { %v1716_v2 = vpop.xlane.xlu0 %1715 }
 0x785   : > { %v1726_v3 = vsub.f32 %v1700_v32, %v1716_v2 }
 0x786   : > { %v1719_v5 = vpop.xlane.xlu1 %1718 }
 0x787   : > { %v1730_v6 = vmul.f32 1.442695, %v1726_v3  ;;  %v1727_v1 = vsub.f32 %v1703_v37, %v1719_v5 }
 0x788   : > { %v1722_v8 = vpop.xlane.xlu0 %1721 }
 0x789   : > { %4416 = vpow2.f32 %v1730_v6  ;;  %v1732_v9 = vmul.f32 1.442695, %v1727_v1  ;;  %v1728_v10 = vsub.f32 %v1708_v36, %v1722_v8 }
 0x78a   : > { %v1725_v45 = vpop.xlane.xlu1 %1724 }
 0x78b   : > { %4418 = vpow2.f32 %v1732_v9  ;;  %v1734_v18 = vmul.f32 1.442695, %v1728_v10  ;;  %v1729_v48 = vsub.f32 %v1711_v42, %v1725_v45  ;;  %v5892_v9 = vld [vmem:[%s6268_s9 + $0x3] sm:$0x1] }
 0x78c   : > { %v1890_v4 = vpop.xlane.xlu0 %1889 }
 0x78d   : > { %4420 = vpow2.f32 %v1734_v18  ;;  %v1736_v11 = vmul.f32 1.442695, %v1729_v48  ;;  %v1900_v29 = vsub.f32 %v1874_v44, %v1890_v4  ;;  %v2005_v4 = vpack.i.b16 %v5892_v9, %v5892_v9 }
 0x78e   : > { %v1893_v33 = vpop.xlane.xlu1 %1892 }
 0x78f   : > { %4422 = vpow2.f32 %v1736_v11  ;;  %v1904_v47 = vmul.f32 1.442695, %v1900_v29  ;;  %v1901_v57 = vsub.f32 %v1877_v50, %v1893_v33 }
 0x790   : > { %v1896_v59 = vpop.xlane.xlu0 %1895 }
 0x791   : > { %4424 = vpow2.f32 %v1904_v47  ;;  %v1906_v60 = vmul.f32 1.442695, %v1901_v57  ;;  %v1902_v0 = vsub.f32 %v1882_v54, %v1896_v59  ;;  %v2010_v59 = vrot.slane %v2005_v4, %v5741_v63 }
 0x792   : > { %v1899_v12 = vpop.xlane.xlu1 %1898 }
 0x793   : > { %v4417_v31 = vpop.eup %4416  ;;  %4426 = vpow2.f32 %v1906_v60  ;;  %v1908_v16 = vmul.f32 1.442695, %v1902_v0  ;;  %v1903_v17 = vsub.f32 %v1885_v58, %v1899_v12 }
 0x794   : > { %v1738_v46 = vsel %vm1539_vm0, %v4417_v31, 0.0 }
 0x795   : > { %v4419_v22 = vpop.eup %4418  ;;  %4428 = vpow2.f32 %v1908_v16  ;;  %v1910_v25 = vmul.f32 1.442695, %v1903_v17  ;;  %1739 = vadd.xlane.f32.xlu0 %v1738_v46  ;;  %v2011_v17 = vmul.bf16 %v2010_v59, %v5761_v30 }
 0x796   : > { %v1741_v34 = vsel %vm1539_vm0, %v4419_v22, 0.0 }
 0x797   : > { %v4421_v28 = vpop.eup %4420  ;;  %4430 = vpow2.f32 %v1910_v25  ;;  %1742 = vadd.xlane.f32.xlu1 %v1741_v34 }
 0x798   : > { %v1744_v32 = vsel %vm1539_vm0, %v4421_v28, 0.0 }
 0x799   : > { %v4423_v35 = vpop.eup %4422  ;;  %1745 = vadd.xlane.f32.xlu0 %v1744_v32 }
 0x79a   : > { %v1747_v52 = vsel %vm1539_vm0, %v4423_v35, 0.0 }
 0x79b   : > { %v4425_v36 = vpop.eup %4424  ;;  %1748 = vadd.xlane.f32.xlu1 %v1747_v52 }
 0x79c   : > { %v1912_v37 = vsel %vm1539_vm0, %v4425_v36, 0.0 }
 0x79d   : > { %v4427_v41 = vpop.eup %4426  ;;  %1913 = vadd.xlane.f32.xlu0 %v1912_v37 }
 0x79e   : > { %v1915_v42 = vsel %vm1539_vm0, %v4427_v41, 0.0 }
 0x79f   : > { %v4429_v43 = vpop.eup %4428  ;;  %1916 = vadd.xlane.f32.xlu1 %v1915_v42 }
 0x7a0   : > { %v1918_v44 = vsel %vm1539_vm0, %v4429_v43, 0.0 }
 0x7a1   : > { %v4431_v49 = vpop.eup %4430  ;;  %1919 = vadd.xlane.f32.xlu0 %v1918_v44 }
 0x7a2   : > { %v1921_v50 = vsel %vm1539_vm0, %v4431_v49, 0.0 }
 0x7a3   : > { %1922 = vadd.xlane.f32.xlu1 %v1921_v50 }
 0x822   : > { %v1740_v51 = vpop.xlane.xlu0 %1739 }
 0x823   : > { %4432 = vrcp.f32 %v1740_v51 }
 0x824   : > { %v1743_v54 = vpop.xlane.xlu1 %1742 }
 0x825   : > { %4434 = vrcp.f32 %v1743_v54 }
 0x826   : > { %v1746_v56 = vpop.xlane.xlu0 %1745 }
 0x827   : > { %4436 = vrcp.f32 %v1746_v56 }
 0x828   : > { %v1749_v58 = vpop.xlane.xlu1 %1748 }
 0x829   : > { %4438 = vrcp.f32 %v1749_v58 }
 0x82a   : > { %v1914_v14 = vpop.xlane.xlu0 %1913 }
 0x82b   : > { %4440 = vrcp.f32 %v1914_v14 }
 0x82c   : > { %v1917_v62 = vpop.xlane.xlu1 %1916 }
 0x82d   : > { %v4433_v20 = vpop.eup %4432  ;;  %4442 = vrcp.f32 %v1917_v62 }
 0x82e   : > { %v1920_v2 = vpop.xlane.xlu0 %1919  ;;  %v1754_v6 = vmul.f32 %v4433_v20, %v4417_v31 }
 0x82f   : > { %v4435_v3 = vpop.eup %4434  ;;  %4444 = vrcp.f32 %v1920_v2 }
 0x830   : > { %v1923_v5 = vpop.xlane.xlu1 %1922  ;;  %v1755_v1 = vmul.f32 %v4435_v3, %v4419_v22  ;;  %v1815_v22 = vunpack.c.l.bf16 %v5754_v13 }
 0x831   : > { %v4437_v8 = vpop.eup %4436  ;;  %4446 = vrcp.f32 %v1923_v5 }
 0x832   : > { %v1758_v10 = vpack.c.bf16 %v1755_v1, %v1754_v6  ;;  %v1756_v18 = vmul.f32 %v4437_v8, %v4421_v28  ;;  %v1819_v25 = vrot.slane %v1815_v22, %v5741_v63 }
 0x833   : > { %v4439_v45 = vpop.eup %4438 }
 0x834   : > { %v1757_v48 = vmul.f32 %v4439_v45, %v4423_v35  ;;  %4015 = vmatprep.mubr.msk.bf16.mxu1 %vm1539_vm0, %v1758_v10 }
 0x835   : > { %v4441_v11 = vpop.eup %4440 }
 0x836   : > { %v1759_v29 = vpack.c.bf16 %v1757_v48, %v1756_v18  ;;  %v1928_v47 = vmul.f32 %v4441_v11, %v4425_v36 }
 0x837   : > { %v4443_v33 = vpop.eup %4442 }
 0x838   : > { %4016 = vmatmul.mubr.msk.bf16.vlgmr.msra.gmra.mrb[16].mxu1 %vm1539_vm0, %v1759_v29  ;;  %v1929_v57 = vmul.f32 %v4443_v33, %v4427_v41 }
 0x839   : > { %v4445_v60 = vpop.eup %4444  ;;  %4028 = vmatpush3.bf16.msra.mxu1 %v5715_v40  ;;  %v2012_v40 = vmul.bf16 %v2010_v59, %v5765_v39 }
 0x83a   : > { %4029 = vmatprep.subr.bf16.mxu1 %v5713_v38  ;;  %v1932_v0 = vpack.c.bf16 %v1929_v57, %v1928_v47  ;;  %v1930_v31 = vmul.f32 %v4445_v60, %v4429_v43 }
 0x83b   : > { %v4447_v12 = vpop.eup %4446 }
 0x83c   : > { %v1931_v16 = vmul.f32 %v4447_v12, %v4431_v49  ;;  %4031 = vmatprep.mubr.msk.bf16.mxu1 %vm1539_vm0, %v1932_v0 }
 0x83d   : > { %4030 = vmatpush3.bf16.msra.mxu1 %v5713_v38  ;;  %v1989_v38 = vunpack.c.l.bf16 %v5736_v55 }
 0x83e   : > { %4035 = vmatprep.subr.bf16.mxu1 %v2011_v17  ;;  %v1933_v46 = vpack.c.bf16 %v1931_v16, %v1930_v31 }
 0x83f   : > { %v1993_v13 = vrot.slane %v1989_v38, %v5741_v63 }
 0x840   : > { %4032 = vmatmul.mubr.msk.bf16.vlgmr.msra.gmra.mrb[20].mxu1 %vm1539_vm0, %v1933_v46  ;;  %v4296_v46 = vld [vmem:[%s5591_s22] sm:$0xff]  }
 0x841   : > { %4039 = vmatprep.mubr.bf16.mxu1 %v5781_v53  ;;  %4051 = vmatprep.subr.bf16.mxu0 %v4296_v46 }
 0x846   : > { %4036 = vmatpush3.bf16.xpose.msra.mxu1 %v2011_v17 }
 0x847   : > { %4037 = vmatprep.subr.bf16.mxu1 %v2012_v40 }
 0x84e   : > { %4038 = vmatpush3.bf16.xpose.msra.mxu1 %v2012_v40 }
 0x855   : > { %4040 = vmatmul.mubr.bf16.vlgmr.msra.gmra.mrb[24].mxu1 %v5785_v27 }
 0x90b   : > { %v4017_v30 = vpop.f32.mrb[16].mxu1 }
 0x90c   : > { %v1822_v34 = vmul.f32 %v4017_v30, %v1819_v25  ;;  %v1800_v28 = vpop.f32.mrb[17].mxu1 }
 0x90d   : > { %v1820_v32 = vmul.f32 %v1819_v25, %v1800_v28  ;;  %v4018_v35 = vpop.f32.mrb[18].mxu1 }
 0x90e   : > { %v1826_v53 = vadd.f32 %v1822_v34, %v5853_v19  ;;  %v1823_v52 = vmul.f32 %v4018_v35, %v1819_v25  ;;  %v1803_v39 = vpop.f32.mrb[19].mxu1 }
 0x90f   : > { %v1824_v36 = vadd.f32 %v1820_v32, %v5855_v21  ;;  %v1821_v37 = vmul.f32 %v1819_v25, %v1803_v39 }
 0x910   : > { %v1827_v27 = vadd.f32 %v1823_v52, %v5857_v23 }
 0x911   : > { %v1825_v41 = vadd.f32 %v1821_v37, %v5859_v26 }
 0x913   : > { %v4033_v42 = vpop.f32.mrb[20].mxu1 }
 0x914   : > { %v1996_v43 = vmul.f32 %v4033_v42, %v1993_v13  ;;  %v1974_v55 = vpop.f32.mrb[21].mxu1  ;;  %v4300_v42 = vld [vmem:[%s5591_s22 + $0x20] sm:$0xff]  }
 0x915   : > { %v1994_v44 = vmul.f32 %v1993_v13, %v1974_v55  ;;  %v4034_v49 = vpop.f32.mrb[22].mxu1  ;;  %v4302_v55 = vld [vmem:[%s5591_s22 + $0x30] sm:$0xff]  }
 0x916   : > { %v5916_v50 = vadd.f32 %v1996_v43, %v1826_v53  ;;  %v1997_v51 = vmul.f32 %v4034_v49, %v1993_v13  ;;  %v1977_v19 = vpop.f32.mrb[23].mxu1  ;;  %v4301_v43 = vld [vmem:[%s5591_s22 + $0x28] sm:$0xff]   ;;  %v2163_v49 = vunpack.c.l.bf16 %v5892_v9 }
 0x917   : > { %v5918_v54 = vadd.f32 %v1994_v44, %v1824_v36  ;;  %v1995_v56 = vmul.f32 %v1993_v13, %v1977_v19  ;;  %v4298_v13 = vld [vmem:[%s5591_s22 + $0x10] sm:$0xff]   ;;  %v4303_v44 = vld [vmem:[%s5591_s22 + $0x38] sm:$0xff]  }
 0x918   : > { %v5920_v21 = vadd.f32 %v1997_v51, %v1827_v27  ;;  %v4297_v27 = vld [vmem:[%s5591_s22 + $0x8] sm:$0xff]   ;;  %v2167_v51 = vrot.slane %v2163_v49, %v5741_v63 }
 0x919   : > { %v5922_v58 = vadd.f32 %v1995_v56, %v1825_v41  ;;  %v4299_v41 = vld [vmem:[%s5591_s22 + $0x18] sm:$0xff]   ;;  %s6271_s22 = scalar_lea.vmem [#allocation17], %s5574_s6  ;;  %s6272_s6 = sld [smem:[#allocation37_spill]] }
 0x91f   : > { %p3787_p5 = scmp.ne.s32.totalorder %s6272_s6, 1 }
 0x928   : > { %v4041_v23 = vpop.f32.mrb[24].mxu1 }
 0x929   : > { %v2047_v14 = vpop.f32.mrb[25].mxu1  ;;  %v2056_v2 = vadd.f32 %v4041_v23, %v5809_v7 }
 0x92a   : > { %v2048_v26 = vadd.f32 %v2047_v14, %v5802_v61  ;;  %v4042_v62 = vpop.f32.mrb[26].mxu1 }
 0x92b   : > { %v2050_v20 = vpop.f32.mrb[27].mxu1  ;;  %v2059_v6 = vadd.f32 %v4042_v62, %v5829_v24  ;;  %v2068_v8 = vsel %vm1539_vm0, %v2056_v2, -inf }
 0x92c   : > { %v2051_v3 = vadd.f32 %v2050_v20, %v5816_v15  ;;  %v2062_v5 = vsel %vm1539_vm0, %v2048_v26, -inf }
 0x92d   : > { %2063 = vmax.xlane.f32.xlu0 %v2062_v5  ;;  %v2071_v10 = vsel %vm1539_vm0, %v2059_v6, -inf }
 0x92e   : > { %v2065_v1 = vsel %vm1539_vm0, %v2051_v3, -inf }
 0x92f   : > { %2066 = vmax.xlane.f32.xlu1 %v2065_v1 }
 0x931   : > { %2069 = vmax.xlane.f32.xlu0 %v2068_v8  ;;  %v4304_v8 = vld [vmem:[%s5599_s19] ss:$12 sps:$4 sm:$0xff]  }
 0x933   : > { %2072 = vmax.xlane.f32.xlu1 %v2071_v10  ;;  %v4306_v10 = vld [vmem:[%s5599_s19 + $0x4] ss:$12 sps:$4 sm:$0xff]  }
 0x934   : > { %2496 = vmatprep.subr.bf16.mxu1 %v4306_v10  ;;  %v4336_v10 = vld [vmem:[%s5601_s1] ss:$12 sps:$4 sm:$0xff]  }
 0x935   : > { %2497 = vmatpush1.bf16.msra.mxu1 %v4304_v8 }
 0x9ba   : > { %v2064_v61 = vpop.xlane.xlu0 %2063 }
 0x9bb   : > { %v2074_v45 = vsub.f32 %v2048_v26, %v2064_v61  ;;  %v4310_v61 = vld [vmem:[%s5599_s19 + $0x8] ss:$12 sps:$4 sm:$0xff]  }
 0x9bc   : > { %v2067_v18 = vpop.xlane.xlu1 %2066 }
 0x9bd   : > { %v2078_v7 = vmul.f32 1.442695, %v2074_v45  ;;  %v2075_v48 = vsub.f32 %v2051_v3, %v2067_v18  ;;  %v4314_v45 = vld [vmem:[%s5599_s19 + $0x20] ss:$12 sps:$4 sm:$0xff]   ;;  %v4307_v18 = vld [vmem:[%s5599_s19 + $0x18] ss:$12 sps:$4 sm:$0xff]  }
 0x9be   : > { %v2070_v15 = vpop.xlane.xlu0 %2069 }
 0x9bf   : > { %4448 = vpow2.f32 %v2078_v7  ;;  %v2080_v4 = vmul.f32 1.442695, %v2075_v48  ;;  %v2076_v11 = vsub.f32 %v2056_v2, %v2070_v15  ;;  %v4520_v48 = vld [vmem:[#allocation2] sm:$0xff] }
 0x9c0   : > { %v2073_v29 = vpop.xlane.xlu1 %2072 }
 0x9c1   : > { %4450 = vpow2.f32 %v2080_v4  ;;  %v2082_v24 = vmul.f32 1.442695, %v2076_v11  ;;  %v2077_v33 = vsub.f32 %v2059_v6, %v2073_v29  ;;  %v4521_v29 = vld [vmem:[#allocation2 + $0x10] sm:$0xff] }
 0x9c3   : > { %4452 = vpow2.f32 %v2082_v24  ;;  %v2084_v47 = vmul.f32 1.442695, %v2077_v33  ;;  %v4522_v33 = vld [vmem:[#allocation2 + $0x8] sm:$0xff] }
 0x9c5   : > { %4454 = vpow2.f32 %v2084_v47 }
 0x9c9   : > { %v4449_v57 = vpop.eup %4448 }
 0x9ca   : > { %v2086_v59 = vsel %vm1539_vm0, %v4449_v57, 0.0 }
 0x9cb   : > { %v4451_v60 = vpop.eup %4450  ;;  %2087 = vadd.xlane.f32.xlu0 %v2086_v59  ;;  %v4523_v59 = vld [vmem:[#allocation2 + $0x18] sm:$0xff] }
 0x9cc   : > { %v2089_v0 = vsel %vm1539_vm0, %v4451_v60, 0.0 }
 0x9cd   : > { %v4453_v12 = vpop.eup %4452  ;;  %2090 = vadd.xlane.f32.xlu1 %v2089_v0 }
 0x9ce   : > { %v2092_v31 = vsel %vm1539_vm0, %v4453_v12, 0.0 }
 0x9cf   : > { %v4455_v16 = vpop.eup %4454  ;;  %2093 = vadd.xlane.f32.xlu0 %v2092_v31 }
 0x9d0   : > { %v2095_v17 = vsel %vm1539_vm0, %v4455_v16, 0.0 }
 0x9d1   : > { %2096 = vadd.xlane.f32.xlu1 %v2095_v17  ;;  %v4318_v17 = vld [vmem:[%s5599_s19 + $0x38] ss:$12 sps:$4 sm:$0xff]  }
 0xa58   : > { %v2088_v40 = vpop.xlane.xlu0 %2087 }
 0xa59   : > { %4456 = vrcp.f32 %v2088_v40  ;;  %v4321_v40 = vld [vmem:[%s5599_s19 + $0x64] ss:$12 sps:$4 sm:$0xff]  }
 0xa5a   : > { %v2091_v22 = vpop.xlane.xlu1 %2090 }
 0xa5b   : > { %4458 = vrcp.f32 %v2091_v22  ;;  %v4322_v22 = vld [vmem:[%s5599_s19 + $0x50] ss:$12 sps:$4 sm:$0xff]  }
 0xa5c   : > { %v2094_v25 = vpop.xlane.xlu0 %2093 }
 0xa5d   : > { %4460 = vrcp.f32 %v2094_v25  ;;  %v4319_v25 = vld [vmem:[%s5599_s19 + $0x60] ss:$12 sps:$4 sm:$0xff]  }
 0xa5e   : > { %v2097_v30 = vpop.xlane.xlu1 %2096 }
 0xa5f   : > { %4462 = vrcp.f32 %v2097_v30  ;;  %v4325_v30 = vld [vmem:[%s5599_s19 + $0x7c] ss:$12 sps:$4 sm:$0xff]  }
 0xa63   : > { %v4457_v38 = vpop.eup %4456 }
 0xa64   : > { %v2102_v28 = vmul.f32 %v4457_v38, %v4449_v57  ;;  %v4326_v38 = vld [vmem:[%s5599_s19 + $0x68] ss:$12 sps:$4 sm:$0xff]  }
 0xa65   : > { %v4459_v34 = vpop.eup %4458 }
 0xa66   : > { %v2103_v32 = vmul.f32 %v4459_v34, %v4451_v60  ;;  %v4323_v34 = vld [vmem:[%s5599_s19 + $0x78] ss:$12 sps:$4 sm:$0xff]  }
 0xa67   : > { %v4461_v35 = vpop.eup %4460 }
 0xa68   : > { %v2106_v53 = vpack.c.bf16 %v2103_v32, %v2102_v28  ;;  %v2104_v39 = vmul.f32 %v4461_v35, %v4453_v12  ;;  %v4329_v28 = vld [vmem:[%s5599_s19 + $0x94] ss:$12 sps:$4 sm:$0xff]   ;;  %v4327_v35 = vld [vmem:[%s5599_s19 + $0x90] ss:$12 sps:$4 sm:$0xff]  }
 0xa69   : > { %v4463_v52 = vpop.eup %4462  ;;  %v4330_v32 = vld [vmem:[%s5599_s19 + $0x80] ss:$12 sps:$4 sm:$0xff]  }
 0xa6a   : > { %v2105_v36 = vmul.f32 %v4463_v52, %v4455_v16  ;;  %4047 = vmatprep.mubr.msk.bf16.mxu0 %vm1539_vm0, %v2106_v53  ;;  %v4317_v16 = vld [vmem:[%s5599_s19 + $0x4c] ss:$12 sps:$4 sm:$0xff]  }
 0xa6b   : > { %v4333_v53 = vld [vmem:[%s5599_s19 + $0xac] ss:$12 sps:$4 sm:$0xff]  }
 0xa6c   : > { %v2107_v37 = vpack.c.bf16 %v2105_v36, %v2104_v39  ;;  %v4334_v52 = vld [vmem:[%s5599_s19 + $0x98] ss:$12 sps:$4 sm:$0xff]   ;;  %v5009_v39 = vmov 0   ;;  %v4331_v36 = vld [vmem:[%s5599_s19 + $0xa8] ss:$12 sps:$4 sm:$0xff]  }
 0xa6d   : > { %2528 = vmatprep.mubr.bf16.mxu1 %v5009_v39 }
 0xa6e   : > { %4048 = vmatmul.mubr.msk.bf16.vlgmr.msra.gmra.mrb[12].mxu0 %vm1539_vm0, %v2107_v37  ;;  %v4335_v37 = vld [vmem:[%s5599_s19 + $0xb0] ss:$12 sps:$4 sm:$0xff]  }
 0xa6f   : > { %4052 = vmatpush3.bf16.msra.mxu0 %v4296_v46  ;;  %v4315_v46 = vld [vmem:[%s5599_s19 + $0x48] ss:$12 sps:$4 sm:$0xff]  }
 0xa70   : > { %4053 = vmatprep.subr.bf16.mxu0 %v4297_v27 }
 0xa73   : > { %4054 = vmatpush3.bf16.msra.mxu0 %v4297_v27  ;;  %v4338_v27 = vld [vmem:[%s5601_s1 + $0x4] ss:$12 sps:$4 sm:$0xff]  }
 0xa74   : > { %4055 = vmatprep.subr.bf16.mxu0 %v4298_v13 }
 0xa77   : > { %4056 = vmatpush3.bf16.msra.mxu0 %v4298_v13  ;;  %v4342_v13 = vld [vmem:[%s5601_s1 + $0x8] ss:$12 sps:$4 sm:$0xff]  }
 0xa78   : > { %4057 = vmatprep.subr.bf16.mxu0 %v4299_v41 }
 0xa7b   : > { %4058 = vmatpush3.bf16.msra.mxu0 %v4299_v41 }
 0xa7c   : > { %4059 = vmatprep.subr.bf16.mxu0 %v4300_v42 }
 0xa7f   : > { %4060 = vmatpush3.bf16.msra.mxu0 %v4300_v42 }
 0xa80   : > { %4061 = vmatprep.subr.bf16.mxu0 %v4301_v43 }
 0xa83   : > { %4062 = vmatpush3.bf16.msra.mxu0 %v4301_v43 }
 0xa84   : > { %4063 = vmatprep.subr.bf16.mxu0 %v4302_v55 }
 0xa87   : > { %4064 = vmatpush3.bf16.msra.mxu0 %v4302_v55 }
 0xa88   : > { %4065 = vmatprep.subr.bf16.mxu0 %v4303_v44 }
 0xa8b   : > { %4066 = vmatpush3.bf16.msra.mxu0 %v4303_v44 }
 0xa8c   : > { %4071 = vmatprep.subr.bf16.mxu0 %v4310_v61 }
 0xb41   : > { %v4049_v19 = vpop.f32.mrb[12].mxu0 }
 0xb42   : > { %v2170_v56 = vmul.f32 %v4049_v19, %v2167_v51  ;;  %v2148_v23 = vpop.f32.mrb[13].mxu0 }
 0xb43   : > { %v2168_v14 = vmul.f32 %v2167_v51, %v2148_v23  ;;  %v4050_v26 = vpop.f32.mrb[14].mxu0 }
 0xb44   : > { %v2174_v62 = vadd.f32 %v2170_v56, %v5916_v50  ;;  %v2171_v20 = vmul.f32 %v4050_v26, %v2167_v51  ;;  %v2151_v2 = vpop.f32.mrb[15].mxu0  ;;  %v4309_v50 = vld [vmem:[%s5599_s19 + $0x1c] ss:$12 sps:$4 sm:$0xff]  }
 0xb45   : > { %v2172_v3 = vadd.f32 %v2168_v14, %v5918_v54  ;;  %v2169_v9 = vmul.f32 %v2167_v51, %v2151_v2  ;;  %2498 = vmatprep.subr.bf16.mxu1 %v4309_v50  ;;  %v4313_v54 = vld [vmem:[%s5599_s19 + $0x34] ss:$12 sps:$4 sm:$0xff]  }
 0xb46   : > { %v2175_v63 = vadd.f32 %v2171_v20, %v5920_v21  ;;  %2499 = vmatpush1.bf16.msra.mxu1 %v4307_v18  ;;  %v4311_v21 = vld [vmem:[%s5599_s19 + $0x30] ss:$12 sps:$4 sm:$0xff]  }
 0xb47   : > { %v2173_v5 = vadd.f32 %v2169_v9, %v5922_v58  ;;  %2500 = vmatprep.subr.bf16.mxu1 %v4313_v54 }
 0xb48   : > { %v2177_v6 = vpack.c.bf16 %v2175_v63, %v2174_v62 }
 0xb49   : > { %v2176_v1 = vpack.c.bf16 %v2173_v5, %v2172_v3  ;;  %v3702_v3 = vld [vmem:[%s6271_s22] ss:$0 sm:$0xff] }
 0xb4a   : > { %2501 = vmatpush1.bf16.msra.mxu1 %v4311_v21  ;;  %v4339_v21 = vld [vmem:[%s5601_s1 + $0x18] ss:$12 sps:$4 sm:$0xff]  }
 0xb4b   : > { %4067 = vmatprep.mubr.bf16.mxu0 %v2176_v1  ;;  %2502 = vmatprep.subr.bf16.mxu1 %v4317_v16  ;;  %v4355_v16 = vld [vmem:[%s5601_s1 + $0x78] ss:$12 sps:$4 sm:$0xff]  }
 0xb4c   : > { %4068 = vmatmul.mubr.bf16.vlgmr.msra.gmra.mrb[16].mxu0 %v2177_v6 }
 0xb4d   : > { %4072 = vmatpush3.bf16.msra.mxu0 %v4310_v61  ;;  %v4341_v61 = vld [vmem:[%s5601_s1 + $0x1c] ss:$12 sps:$4 sm:$0xff]  }
 0xb4e   : > { %4073 = vmatprep.subr.bf16.mxu0 %v4314_v45  ;;  %2503 = vmatpush1.bf16.msra.mxu1 %v4315_v46  ;;  %v4362_v46 = vld [vmem:[%s5601_s1 + $0x80] ss:$12 sps:$4 sm:$0xff]  }
 0xb4f   : > { %2504 = vmatprep.subr.bf16.mxu1 %v4321_v40  ;;  %v4359_v40 = vld [vmem:[%s5601_s1 + $0x90] ss:$12 sps:$4 sm:$0xff]  }
 0xb51   : > { %4074 = vmatpush3.bf16.msra.mxu0 %v4314_v45 }
 0xb52   : > { %4075 = vmatprep.subr.bf16.mxu0 %v4318_v17  ;;  %2505 = vmatpush1.bf16.msra.mxu1 %v4319_v25  ;;  %v4366_v25 = vld [vmem:[%s5601_s1 + $0x98] ss:$12 sps:$4 sm:$0xff]  }
 0xb53   : > { %2506 = vmatprep.subr.bf16.mxu1 %v4325_v30  ;;  %v4363_v30 = vld [vmem:[%s5601_s1 + $0xa8] ss:$12 sps:$4 sm:$0xff]  }
 0xb55   : > { %4076 = vmatpush3.bf16.msra.mxu0 %v4318_v17  ;;  %v4361_v17 = vld [vmem:[%s5601_s1 + $0x94] ss:$12 sps:$4 sm:$0xff]  }
 0xb56   : > { %4077 = vmatprep.subr.bf16.mxu0 %v4322_v22  ;;  %2507 = vmatpush1.bf16.msra.mxu1 %v4323_v34  ;;  %v4368_v34 = vld [vmem:[%s5607_s2 + $0x40] sm:$0xff]  }
 0xb57   : > { %2508 = vmatprep.subr.bf16.mxu1 %v4329_v28  ;;  %v4369_v28 = vld [vmem:[%s5607_s2] sm:$0xff]  }
 0xb59   : > { %4078 = vmatpush3.bf16.msra.mxu0 %v4322_v22  ;;  %v4365_v22 = vld [vmem:[%s5601_s1 + $0xac] ss:$12 sps:$4 sm:$0xff]  }
 0xb5a   : > { %4079 = vmatprep.subr.bf16.mxu0 %v4326_v38  ;;  %2509 = vmatpush1.bf16.msra.mxu1 %v4327_v35  ;;  %v4371_v35 = vld [vmem:[%s5607_s2 + $0x80] sm:$0xff]  }
 0xb5b   : > { %2510 = vmatprep.subr.bf16.mxu1 %v4333_v53  ;;  %v4372_v53 = vld [vmem:[%s5607_s2 + $0x8] sm:$0xff]  }
 0xb5d   : > { %4080 = vmatpush3.bf16.msra.mxu0 %v4326_v38  ;;  %v4367_v38 = vld [vmem:[%s5601_s1 + $0xb0] ss:$12 sps:$4 sm:$0xff]  }
 0xb5e   : > { %4081 = vmatprep.subr.bf16.mxu0 %v4330_v32  ;;  %2511 = vmatpush1.bf16.msra.mxu1 %v4331_v36  ;;  %v4375_v36 = vld [vmem:[%s5607_s2 + $0x10] sm:$0xff]  }
 0xb5f   : > { %2758 = vmatprep.subr.bf16.mxu1 %v4338_v27  ;;  %v4377_v27 = vld [vmem:[%s5607_s2 + $0x90] sm:$0xff]  }
 0xb61   : > { %4082 = vmatpush3.bf16.msra.mxu0 %v4330_v32  ;;  %v4370_v32 = vld [vmem:[%s5607_s2 + $0x48] sm:$0xff]  }
 0xb62   : > { %4083 = vmatprep.subr.bf16.mxu0 %v4334_v52 }
 0xb65   : > { %4084 = vmatpush3.bf16.msra.mxu0 %v4334_v52  ;;  %v4373_v52 = vld [vmem:[%s5607_s2 + $0x50] sm:$0xff]  }
 0xb66   : > { %4085 = vmatprep.subr.bf16.mxu0 %v4335_v37 }
 0xb69   : > { %4086 = vmatpush3.bf16.msra.mxu0 %v4335_v37  ;;  %v4376_v37 = vld [vmem:[%s5607_s2 + $0x58] sm:$0xff]  }
 0xb6a   : > { %4091 = vmatprep.subr.bf16.mxu0 %v4342_v13 }
 0xc1f   : > { %v4069_v58 = vpop.f32.mrb[16].mxu0 }
 0xc20   : > { %v2276_v7 = vpop.f32.mrb[17].mxu0  ;;  %v5962_v24 = vadd.f32 %v4521_v29, %v4069_v58  ;;  %v4350_v29 = vld [vmem:[%s5601_s1 + $0x38] ss:$12 sps:$4 sm:$0xff]  }
 0xc21   : > { %v5960_v15 = vadd.f32 %v4520_v48, %v2276_v7  ;;  %v4070_v4 = vpop.f32.mrb[18].mxu0  ;;  %v4345_v7 = vld [vmem:[%s5601_s1 + $0x34] ss:$12 sps:$4 sm:$0xff]  }
 0xc22   : > { %v2279_v11 = vpop.f32.mrb[19].mxu0  ;;  %v5968_v60 = vadd.f32 %v4523_v59, %v4070_v4  ;;  %v2298_v12 = vmul.f32 %v5962_v24, %v5962_v24  ;;  %v4346_v48 = vld [vmem:[%s5601_s1 + $0x20] ss:$12 sps:$4 sm:$0xff]   ;;  %v4343_v4 = vld [vmem:[%s5601_s1 + $0x30] ss:$12 sps:$4 sm:$0xff]  }
 0xc23   : > { %v5964_v47 = vadd.f32 %v4522_v33, %v2279_v11  ;;  %v2296_v57 = vmul.f32 %v5960_v15, %v5960_v15  ;;  %v4349_v11 = vld [vmem:[%s5601_s1 + $0x4c] ss:$12 sps:$4 sm:$0xff]   ;;  %v4347_v33 = vld [vmem:[%s5601_s1 + $0x48] ss:$12 sps:$4 sm:$0xff]   ;;  %v4354_v59 = vld [vmem:[%s5601_s1 + $0x50] ss:$12 sps:$4 sm:$0xff]  }
 0xc24   : > { %v2299_v31 = vmul.f32 %v5968_v60, %v5968_v60 }
 0xc25   : > { %2300 = vadd.xlane.f32.xlu0 %v2296_v57  ;;  %v2297_v0 = vmul.f32 %v5964_v47, %v5964_v47  ;;  %v4353_v57 = vld [vmem:[%s5601_s1 + $0x64] ss:$12 sps:$4 sm:$0xff]  }
 0xc27   : > { %2302 = vadd.xlane.f32.xlu1 %v2297_v0  ;;  %v4351_v0 = vld [vmem:[%s5601_s1 + $0x60] ss:$12 sps:$4 sm:$0xff]  }
 0xc29   : > { %2304 = vadd.xlane.f32.xlu0 %v2298_v12  ;;  %v4357_v12 = vld [vmem:[%s5601_s1 + $0x7c] ss:$12 sps:$4 sm:$0xff]  }
 0xc2b   : > { %2306 = vadd.xlane.f32.xlu1 %v2299_v31  ;;  %v4358_v31 = vld [vmem:[%s5601_s1 + $0x68] ss:$12 sps:$4 sm:$0xff]  }
 0xcb2   : > { %v2301_v41 = vpop.xlane.xlu0 %2300 }
 0xcb3   : > { %v2308_v42 = vmul.f32 0.0078125, %v2301_v41  ;;  %v4379_v41 = vld [vmem:[%s5607_s2 + $0x60] sm:$0xff]  }
 0xcb4   : > { %v2303_v43 = vpop.xlane.xlu1 %2302 }
 0xcb5   : > { %v2312_v55 = vadd.f32 1e-05, %v2308_v42  ;;  %v2309_v44 = vmul.f32 0.0078125, %v2303_v43  ;;  %v4380_v42 = vld [vmem:[%s5607_s2 + $0x98] sm:$0xff]   ;;  %v4381_v43 = vld [vmem:[%s5607_s2 + $0x20] sm:$0xff]  }
 0xcb6   : > { %v2305_v49 = vpop.xlane.xlu0 %2304 }
 0xcb7   : > { %4464 = vrsqrt.f32 %v2312_v55  ;;  %v2313_v51 = vadd.f32 1e-05, %v2309_v44  ;;  %v2310_v19 = vmul.f32 0.0078125, %v2305_v49  ;;  %v4382_v55 = vld [vmem:[%s5607_s2 + $0x68] sm:$0xff]   ;;  %v4383_v44 = vld [vmem:[%s5607_s2 + $0xa0] sm:$0xff]  }
 0xcb8   : > { %v2307_v56 = vpop.xlane.xlu1 %2306  ;;  %v4384_v49 = vld [vmem:[%s5607_s2 + $0x28] sm:$0xff]  }
 0xcb9   : > { %4466 = vrsqrt.f32 %v2313_v51  ;;  %v2314_v23 = vadd.f32 1e-05, %v2310_v19  ;;  %v2311_v14 = vmul.f32 0.0078125, %v2307_v56  ;;  %v4385_v51 = vld [vmem:[%s5607_s2 + $0x70] sm:$0xff]   ;;  %v4386_v19 = vld [vmem:[%s5607_s2 + $0xa8] sm:$0xff]  }
 0xcba   : > { %v4387_v56 = vld [vmem:[%s5607_s2 + $0x30] sm:$0xff]  }
 0xcbb   : > { %4468 = vrsqrt.f32 %v2314_v23  ;;  %v2315_v26 = vadd.f32 1e-05, %v2311_v14  ;;  %v4388_v23 = vld [vmem:[%s5607_s2 + $0x78] sm:$0xff]   ;;  %v4389_v14 = vld [vmem:[%s5607_s2 + $0xb0] sm:$0xff]  }
 0xcbd   : > { %4470 = vrsqrt.f32 %v2315_v26  ;;  %v4390_v26 = vld [vmem:[%s5607_s2 + $0x38] sm:$0xff]  }
 0xcc1   : > { %v4465_v62 = vpop.eup %4464 }
 0xcc2   : > { %v2320_v20 = vmul.f32 %v4465_v62, %v5960_v15  ;;  %v4391_v62 = vld [vmem:[%s5607_s2 + $0xb8] sm:$0xff]  }
 0xcc3   : > { %v4467_v2 = vpop.eup %4466 }
 0xcc4   : > { %v2321_v9 = vmul.f32 %v4467_v2, %v5964_v47  ;;  %v2330_v5 = vmul.f32 %v3702_v3, %v2320_v20 }
 0xcc5   : > { %v4469_v63 = vpop.eup %4468 }
 0xcc6   : > { %v2331_v6 = vmul.f32 %v3702_v3, %v2321_v9  ;;  %v2322_v1 = vmul.f32 %v4469_v63, %v5962_v24 }
 0xcc7   : > { %v4471_v8 = vpop.eup %4470 }
 0xcc8   : > { %v2334_v50 = vpack.c.bf16 %v2331_v6, %v2330_v5  ;;  %v2323_v45 = vmul.f32 %v4471_v8, %v5968_v60  ;;  %v2332_v18 = vmul.f32 %v3702_v3, %v2322_v1 }
 0xcca   : > { %2529 = vmatmul.mubr.bf16.vlgmr.msra.gmra.mrb[28].mxu1 %v2334_v50  ;;  %4087 = vmatprep.mubr.bf16.mxu0 %v2334_v50  ;;  %v2333_v54 = vmul.f32 %v3702_v3, %v2323_v45 }
 0xccb   : > { %2759 = vmatpush1.bf16.msra.mxu1 %v4336_v10  ;;  %2538 = vmatprep.mubr.bf16.mxu1 %v5009_v39 }
 0xccc   : > { %2760 = vmatprep.subr.bf16.mxu1 %v4341_v61  ;;  %v2335_v58 = vpack.c.bf16 %v2333_v54, %v2332_v18 }
 0xcce   : > { %4088 = vmatmul.mubr.bf16.vlgmr.msra.gmra.mrb[20].mxu0 %v2335_v58 }
 0xccf   : > { %2761 = vmatpush1.bf16.msra.mxu1 %v4339_v21  ;;  %4092 = vmatpush3.bf16.msra.mxu0 %v4342_v13  ;;  %v4378_v13 = vld [vmem:[%s5607_s2 + $0x18] sm:$0xff]  }
 0xcd0   : > { %4107 = vmatprep.mubr.bf16.mxu0 %v2334_v50  ;;  %2762 = vmatprep.subr.bf16.mxu1 %v4345_v7 }
 0xcd1   : > { %4093 = vmatprep.subr.bf16.mxu0 %v4346_v48 }
 0xcd2   : > { %2539 = vmatmul.mubr.bf16.gmra.mrb[32].mxu1 %v2335_v58 }
 0xcd3   : > { %2763 = vmatpush1.bf16.msra.mxu1 %v4343_v4  ;;  %4094 = vmatpush3.bf16.msra.mxu0 %v4346_v48 }
 0xcd4   : > { %2764 = vmatprep.subr.bf16.mxu1 %v4349_v11  ;;  %4095 = vmatprep.subr.bf16.mxu0 %v4350_v29 }
 0xcd5   : > { %2790 = vmatprep.mubr.bf16.mxu1 %v5009_v39 }
 0xcd7   : > { %2765 = vmatpush1.bf16.msra.mxu1 %v4347_v33  ;;  %4096 = vmatpush3.bf16.msra.mxu0 %v4350_v29 }
 0xcd8   : > { %2766 = vmatprep.subr.bf16.mxu1 %v4353_v57  ;;  %4097 = vmatprep.subr.bf16.mxu0 %v4354_v59 }
 0xcdb   : > { %2767 = vmatpush1.bf16.msra.mxu1 %v4351_v0  ;;  %4098 = vmatpush3.bf16.msra.mxu0 %v4354_v59 }
 0xcdc   : > { %2768 = vmatprep.subr.bf16.mxu1 %v4357_v12  ;;  %4099 = vmatprep.subr.bf16.mxu0 %v4358_v31 }
 0xcdf   : > { %2769 = vmatpush1.bf16.msra.mxu1 %v4355_v16  ;;  %4100 = vmatpush3.bf16.msra.mxu0 %v4358_v31 }
 0xce0   : > { %2770 = vmatprep.subr.bf16.mxu1 %v4361_v17  ;;  %4101 = vmatprep.subr.bf16.mxu0 %v4362_v46 }
 0xce3   : > { %2771 = vmatpush1.bf16.msra.mxu1 %v4359_v40  ;;  %4102 = vmatpush3.bf16.msra.mxu0 %v4362_v46 }
 0xce4   : > { %2772 = vmatprep.subr.bf16.mxu1 %v4365_v22  ;;  %4103 = vmatprep.subr.bf16.mxu0 %v4366_v25 }
 0xce7   : > { %2773 = vmatpush1.bf16.msra.mxu1 %v4363_v30  ;;  %4104 = vmatpush3.bf16.msra.mxu0 %v4366_v25 }
 0xce8   : > { %4105 = vmatprep.subr.bf16.mxu0 %v4367_v38  ;;  %3889 = vmatprep.subr.bf16.mxu1 %v4368_v34 }
 0xcea   : > { %2791 = vmatmul.mubr.bf16.vlgmr.msra.gmra.mrb[36].mxu1 %v2334_v50 }
 0xceb   : > { %4106 = vmatpush3.bf16.msra.mxu0 %v4367_v38  ;;  %2800 = vmatprep.mubr.bf16.mxu1 %v5009_v39  ;;  %v4374_v39 = vld [vmem:[%s5607_s2 + $0x88] sm:$0xff]  }
 0xcec   : > { %3890 = vmatpush3.bf16.msra.mxu1 %v4369_v28  ;;  %4111 = vmatprep.subr.bf16.mxu0 %v4371_v35 }
 0xced   : > { %3891 = vmatprep.subr.bf16.mxu1 %v4370_v32 }
 0xcee   : > { %4108 = vmatmul.mubr.bf16.vlgmr.msra.gmra.mrb[24].mxu0 %v2335_v58 }
 0xcef   : > { %4112 = vmatpush3.bf16.msra.mxu0 %v4371_v35 }
 0xcf0   : > { %3892 = vmatpush3.bf16.msra.mxu1 %v4372_v53  ;;  %4113 = vmatprep.subr.bf16.mxu0 %v4374_v39 }
 0xcf1   : > { %3893 = vmatprep.subr.bf16.mxu1 %v4373_v52 }
 0xcf2   : > { %2801 = vmatmul.mubr.bf16.gmra.mrb[40].mxu1 %v2335_v58 }
 0xcf3   : > { %4114 = vmatpush3.bf16.msra.mxu0 %v4374_v39 }
 0xcf4   : > { %3894 = vmatpush3.bf16.msra.mxu1 %v4375_v36  ;;  %4115 = vmatprep.subr.bf16.mxu0 %v4377_v27 }
 0xcf5   : > { %3895 = vmatprep.subr.bf16.mxu1 %v4376_v37 }
 0xcf7   : > { %4116 = vmatpush3.bf16.msra.mxu0 %v4377_v27 }
 0xcf8   : > { %3896 = vmatpush3.bf16.msra.mxu1 %v4378_v13  ;;  %4117 = vmatprep.subr.bf16.mxu0 %v4380_v42 }
 0xcf9   : > { %3897 = vmatprep.subr.bf16.mxu1 %v4379_v41 }
 0xcfb   : > { %4118 = vmatpush3.bf16.msra.mxu0 %v4380_v42 }
 0xcfc   : > { %3898 = vmatpush3.bf16.msra.mxu1 %v4381_v43  ;;  %4119 = vmatprep.subr.bf16.mxu0 %v4383_v44 }
 0xcfd   : > { %3899 = vmatprep.subr.bf16.mxu1 %v4382_v55 }
 0xcff   : > { %4120 = vmatpush3.bf16.msra.mxu0 %v4383_v44 }
 0xd00   : > { %3900 = vmatpush3.bf16.msra.mxu1 %v4384_v49  ;;  %4121 = vmatprep.subr.bf16.mxu0 %v4386_v19 }
 0xd01   : > { %3901 = vmatprep.subr.bf16.mxu1 %v4385_v51 }
 0xd03   : > { %4122 = vmatpush3.bf16.msra.mxu0 %v4386_v19 }
 0xd04   : > { %3902 = vmatpush3.bf16.msra.mxu1 %v4387_v56  ;;  %4123 = vmatprep.subr.bf16.mxu0 %v4389_v14 }
 0xd05   : > { %3903 = vmatprep.subr.bf16.mxu1 %v4388_v23 }
 0xd07   : > { %4124 = vmatpush3.bf16.msra.mxu0 %v4389_v14 }
 0xd08   : > { %3904 = vmatpush3.bf16.msra.mxu1 %v4390_v26  ;;  %4125 = vmatprep.subr.bf16.mxu0 %v4391_v62 }
 0xd0b   : > { %4126 = vmatpush3.bf16.msra.mxu0 %v4391_v62 }
 0xd9d   : > { %v6050_v20 = vpop.f32.mrb[28].mxu1 }
 0xd9e   : > { %v3751_v2 = vmul.f32 -1.442695, %v6050_v20  ;;  %v6053_v3 = vpop.f32.mrb[29].mxu1 }
 0xd9f   : > { %v3752_v9 = vmul.f32 -1.442695, %v6053_v3  ;;  %v6056_v63 = vpop.f32.mrb[30].mxu1 }
 0xda0   : > { %4472 = vpow2.f32 %v3751_v2  ;;  %v3754_v5 = vmul.f32 -1.442695, %v6056_v63  ;;  %v6059_v6 = vpop.f32.mrb[31].mxu1 }
 0xda1   : > { %4474 = vpow2.f32 %v3752_v9  ;;  %v3755_v1 = vmul.f32 -1.442695, %v6059_v6  ;;  %v6062_v8 = vpop.f32.mrb[20].mxu0 }
 0xda2   : > { %4476 = vpow2.f32 %v3754_v5  ;;  %v3759_v10 = vmul.f32 -1.442695, %v6062_v8  ;;  %v6065_v50 = vpop.f32.mrb[21].mxu0 }
 0xda3   : > { %4478 = vpow2.f32 %v3755_v1  ;;  %v3753_v61 = vmul.f32 -1.442695, %v6065_v50  ;;  %v6068_v45 = vpop.f32.mrb[22].mxu0 }
 0xda4   : > { %4480 = vpow2.f32 %v3759_v10  ;;  %v3762_v18 = vmul.f32 -1.442695, %v6068_v45  ;;  %v6071_v54 = vpop.f32.mrb[23].mxu0 }
 0xda5   : > { %4482 = vpow2.f32 %v3753_v61  ;;  %v3756_v21 = vmul.f32 -1.442695, %v6071_v54  ;;  %v6074_v58 = vpop.f32.mrb[32].mxu1 }
 0xda6   : > { %4484 = vpow2.f32 %v3762_v18  ;;  %v3757_v7 = vmul.f32 -1.442695, %v6074_v58  ;;  %v6077_v48 = vpop.f32.mrb[33].mxu1 }
 0xda7   : > { %4486 = vpow2.f32 %v3756_v21  ;;  %v3758_v4 = vmul.f32 -1.442695, %v6077_v48  ;;  %v6080_v11 = vpop.f32.mrb[34].mxu1 }
 0xda8   : > { %4488 = vpow2.f32 %v3757_v7  ;;  %v3760_v29 = vmul.f32 -1.442695, %v6080_v11  ;;  %v6083_v33 = vpop.f32.mrb[35].mxu1 }
 0xda9   : > { %4490 = vpow2.f32 %v3758_v4  ;;  %v3761_v57 = vmul.f32 -1.442695, %v6083_v33 }
 0xdaa   : > { %v4473_v59 = vpop.eup %4472  ;;  %4492 = vpow2.f32 %v3760_v29 }
 0xdab   : > { %v4475_v0 = vpop.eup %4474  ;;  %v2896_v12 = vadd.f32 1.0, %v4473_v59  ;;  %4494 = vpow2.f32 %v3761_v57 }
 0xdac   : > { %v4477_v31 = vpop.eup %4476  ;;  %v2897_v16 = vadd.f32 1.0, %v4475_v0 }
 0xdad   : > { %v4479_v17 = vpop.eup %4478  ;;  %v2899_v46 = vadd.f32 1.0, %v4477_v31  ;;  %4496 = vrcp.f32 %v2896_v12 }
 0xdae   : > { %v4481_v40 = vpop.eup %4480  ;;  %v2900_v22 = vadd.f32 1.0, %v4479_v17  ;;  %4498 = vrcp.f32 %v2897_v16 }
 0xdaf   : > { %v4483_v25 = vpop.eup %4482  ;;  %v2904_v30 = vadd.f32 1.0, %v4481_v40  ;;  %4500 = vrcp.f32 %v2899_v46 }
 0xdb0   : > { %v4485_v38 = vpop.eup %4484  ;;  %v2898_v34 = vadd.f32 1.0, %v4483_v25  ;;  %4502 = vrcp.f32 %v2900_v22 }
 0xdb1   : > { %v4487_v28 = vpop.eup %4486  ;;  %v2907_v32 = vadd.f32 1.0, %v4485_v38  ;;  %4504 = vrcp.f32 %v2904_v30 }
 0xdb2   : > { %v4489_v35 = vpop.eup %4488  ;;  %v2901_v53 = vadd.f32 1.0, %v4487_v28  ;;  %4506 = vrcp.f32 %v2898_v34 }
 0xdb3   : > { %v4491_v52 = vpop.eup %4490  ;;  %v2902_v39 = vadd.f32 1.0, %v4489_v35  ;;  %4508 = vrcp.f32 %v2907_v32 }
 0xdb4   : > { %v4493_v36 = vpop.eup %4492  ;;  %v2903_v37 = vadd.f32 1.0, %v4491_v52  ;;  %4510 = vrcp.f32 %v2901_v53 }
 0xdb5   : > { %v4495_v27 = vpop.eup %4494  ;;  %v2905_v13 = vadd.f32 1.0, %v4493_v36  ;;  %4512 = vrcp.f32 %v2902_v39 }
 0xdb6   : > { %v2906_v41 = vadd.f32 1.0, %v4495_v27  ;;  %4514 = vrcp.f32 %v2903_v37 }
 0xdb7   : > { %v4497_v42 = vpop.eup %4496  ;;  %4516 = vrcp.f32 %v2905_v13 }
 0xdb8   : > { %v4499_v43 = vpop.eup %4498  ;;  %4518 = vrcp.f32 %v2906_v41  ;;  %v2932_v49 = vmul.f32 %v4497_v42, %v6050_v20 }
 0xdb9   : > { %v4501_v55 = vpop.eup %4500  ;;  %v2933_v19 = vmul.f32 %v4499_v43, %v6053_v3 }
 0xdba   : > { %v4503_v44 = vpop.eup %4502  ;;  %v2935_v14 = vmul.f32 %v4501_v55, %v6056_v63 }
 0xdbb   : > { %v4505_v51 = vpop.eup %4504  ;;  %v2936_v9 = vmul.f32 %v4503_v44, %v6059_v6 }
 0xdbc   : > { %v4507_v23 = vpop.eup %4506  ;;  %v2940_v61 = vmul.f32 %v4505_v51, %v6062_v8 }
 0xdbd   : > { %v2792_v56 = vpop.f32.mrb[36].mxu1  ;;  %v4509_v2 = vpop.eup %4508  ;;  %v2934_v7 = vmul.f32 %v4507_v23, %v6065_v50 }
 0xdbe   : > { %v2944_v26 = vmul.f32 %v2932_v49, %v2792_v56  ;;  %v2794_v62 = vpop.f32.mrb[37].mxu1  ;;  %v4511_v10 = vpop.eup %4510  ;;  %v2943_v63 = vmul.f32 %v4509_v2, %v6068_v45 }
 0xdbf   : > { %v2945_v5 = vmul.f32 %v2933_v19, %v2794_v62  ;;  %v2796_v1 = vpop.f32.mrb[38].mxu1  ;;  %v4513_v20 = vpop.eup %4512  ;;  %v2937_v6 = vmul.f32 %v4511_v10, %v6071_v54 }
 0xdc0   : > { %v2947_v18 = vmul.f32 %v2935_v14, %v2796_v1  ;;  %v2798_v21 = vpop.f32.mrb[39].mxu1  ;;  %v4515_v29 = vpop.eup %4514  ;;  %v2938_v46 = vmul.f32 %v4513_v20, %v6074_v58 }
 0xdc1   : > { %v2948_v3 = vmul.f32 %v2936_v9, %v2798_v21  ;;  %v4109_v4 = vpop.f32.mrb[24].mxu0  ;;  %v4517_v12 = vpop.eup %4516  ;;  %v2939_v50 = vmul.f32 %v4515_v29, %v6077_v48 }
 0xdc2   : > { %v2956_v57 = vpack.c.bf16 %v2947_v18, %v2944_v26  ;;  %v2952_v59 = vmul.f32 %v4109_v4, %v2940_v61  ;;  %v2845_v0 = vpop.f32.mrb[25].mxu0  ;;  %v4519_v8 = vpop.eup %4518  ;;  %v2941_v45 = vmul.f32 %v4517_v12, %v6080_v11 }
 0xdc3   : > { %v2957_v31 = vpack.c.bf16 %v2948_v3, %v2945_v5  ;;  %v2946_v16 = vmul.f32 %v2934_v7, %v2845_v0  ;;  %v4110_v17 = vpop.f32.mrb[26].mxu0  ;;  %v2942_v54 = vmul.f32 %v4519_v8, %v6083_v33 }
 0xdc4   : > { %v2955_v40 = vmul.f32 %v4110_v17, %v2943_v63  ;;  %v2848_v22 = vpop.f32.mrb[27].mxu0 }
 0xdc5   : > { %v2949_v25 = vmul.f32 %v2937_v6, %v2848_v22  ;;  %v2802_v30 = vpop.f32.mrb[40].mxu1  ;;  %3186 = vmatprep.mubr.bf16.mxu1 %v2957_v31  ;;  %v3788_v31 = vld [vmem:[#allocation23] ss:$0 sm:$0xff] (!%p3787_p5) }
 0xdc6   : > { %v2961_v38 = vpack.c.bf16 %v2955_v40, %v2952_v59  ;;  %v2950_v34 = vmul.f32 %v2938_v46, %v2802_v30  ;;  %v2804_v28 = vpop.f32.mrb[41].mxu1  ;;  %3187 = vmatmul.mubr.bf16.vlgmr.msra.gmra.mrb[44].mxu1 %v2956_v57 }
 0xdc7   : > { %v2958_v32 = vpack.c.bf16 %v2949_v25, %v2946_v16  ;;  %v2951_v35 = vmul.f32 %v2939_v50, %v2804_v28  ;;  %v2806_v53 = vpop.f32.mrb[42].mxu1 }
 0xdc8   : > { %v2953_v52 = vmul.f32 %v2941_v45, %v2806_v53  ;;  %v2808_v58 = vpop.f32.mrb[43].mxu1 }
 0xdc9   : > { %v2954_v39 = vmul.f32 %v2942_v54, %v2808_v58  ;;  %4127 = vmatprep.mubr.bf16.mxu0 %v2958_v32 }
 0xdca   : > { %v2959_v36 = vpack.c.bf16 %v2953_v52, %v2950_v34  ;;  %4128 = vmatmul.mubr.bf16.vlgmr.msra.gmra.mrb[28].mxu0 %v2961_v38 }
 0xdcb   : > { %v2960_v48 = vpack.c.bf16 %v2954_v39, %v2951_v35 }
 0xdcd   : > { %3194 = vmatprep.mubr.bf16.mxu1 %v2960_v48 }
 0xdce   : > { %3195 = vmatmul.mubr.bf16.gmra.mrb[48].mxu1 %v2959_v36 }
 0xe99   : > { %v3905_v37 = vpop.f32.mrb[44].mxu1 }
 0xe9a   : > { %v3906_v11 = vpop.f32.mrb[45].mxu1 }
 0xe9b   : > { %v3907_v27 = vadd.f32 %v3906_v11, %v3905_v37  ;;  %v3908_v13 = vpop.f32.mrb[46].mxu1 }
 0xe9c   : > { %v3909_v41 = vpop.f32.mrb[47].mxu1 }
 0xe9d   : > { %v3910_v42 = vadd.f32 %v3909_v41, %v3908_v13  ;;  %v4129_v43 = vpop.f32.mrb[28].mxu0 }
 0xe9e   : > { %v3237_v33 = vpop.f32.mrb[29].mxu0 }
 0xe9f   : > { %v3238_v55 = vadd.f32 %v3907_v27, %v3237_v33  ;;  %v4130_v44 = vpop.f32.mrb[30].mxu0 }
 0xea0   : > { %v3240_v49 = vpop.f32.mrb[31].mxu0 }
 0xea1   : > { %v3252_v51 = vadd.f32 %v3238_v55, %v5960_v15  ;;  %v3241_v19 = vadd.f32 %v3910_v42, %v3240_v49  ;;  %v3911_v56 = vpop.f32.mrb[48].mxu1 }
 0xea2   : > { %v3912_v23 = vpop.f32.mrb[49].mxu1 }
 0xea3   : > { %3256 = vst [vmem:[#allocation2] sm:$0xff] %v3252_v51  ;;  %v3253_v14 = vadd.f32 %v3241_v19, %v5964_v47  ;;  %v3913_v26 = vadd.f32 %v3912_v23, %v3911_v56  ;;  %v3914_v62 = vpop.f32.mrb[50].mxu1  ;;  %v3265_v18 = vmul.f32 (!%p3787_p5), %v3252_v51, %v3252_v51 }
 0xea4   : > { %v3915_v2 = vpop.f32.mrb[51].mxu1 }
 0xea5   : > { %3257 = vst [vmem:[#allocation2 + $0x8] sm:$0xff] %v3253_v14  ;;  %v3246_v9 = vadd.f32 %v4129_v43, %v3913_v26  ;;  %v3916_v5 = vadd.f32 %v3915_v2, %v3914_v62  ;;  %3263 = sbr.rel (%p3787_p5) target bundleno = 3922 (0xf52), region = 140  ;;  %3269 = vadd.xlane.f32.xlu0 (!%p3787_p5), %v3265_v18  ;;  %v3266_v21 = vmul.f32 (!%p3787_p5), %v3253_v14, %v3253_v14 }
 0xea7   : > { %v3254_v1 = vadd.f32 %v3246_v9, %v5962_v24  ;;  %v3249_v10 = vadd.f32 %v4130_v44, %v3916_v5 }
 0xea9   : > { %3258 = vst [vmem:[#allocation2 + $0x10] sm:$0xff] %v3254_v1  ;;  %v3255_v61 = vadd.f32 %v3249_v10, %v5968_v60  ;;  %v3267_v15 = vmul.f32 (!%p3787_p5), %v3254_v1, %v3254_v1  ;;  %3271 = vadd.xlane.f32.xlu0 (!%p3787_p5), %v3266_v21 }
 0xeab   : > { %3259 = vst [vmem:[#allocation2 + $0x18] sm:$0xff] %v3255_v61  ;;  %3273 = vadd.xlane.f32.xlu1 (!%p3787_p5), %v3267_v15  ;;  %v3268_v47 = vmul.f32 (!%p3787_p5), %v3255_v61, %v3255_v61 }
 0xeaf   : > { %3275 = vadd.xlane.f32.xlu1 %v3268_v47 }
 0xf32   : > { %v3270_v7 = vpop.xlane.xlu0 %3269 }
 0xf33   : > { %v3277_v24 = vmul.f32 0.0078125, %v3270_v7 }
 0xf35   : > { %v3281_v29 = vadd.f32 1e-05, %v3277_v24 }
 0xf36   : > { %v3272_v60 = vpop.xlane.xlu0 %3271 }
 0xf37   : > { %v3278_v59 = vmul.f32 0.0078125, %v3272_v60 }
 0xf38   : > { %v3274_v20 = vpop.xlane.xlu1 %3273 }
 0xf39   : > { %v3279_v3 = vmul.f32 0.0078125, %v3274_v20  ;;  %v3282_v12 = vadd.f32 1e-05, %v3278_v59 }
 0xf3b   : > { %v3283_v4 = vadd.f32 1e-05, %v3279_v3 }
 0xf3c   : > { %v3276_v63 = vpop.xlane.xlu1 %3275 }
 0xf3d   : > { %4524 = vrsqrt.f32 %v3283_v4  ;;  %v3280_v57 = vmul.f32 0.0078125, %v3276_v63 }
 0xf3e   : > { %4526 = vrsqrt.f32 %v3281_v29 }
 0xf3f   : > { %v3284_v0 = vadd.f32 1e-05, %v3280_v57 }
 0xf41   : > { %4528 = vrsqrt.f32 %v3284_v0 }
 0xf42   : > { %4530 = vrsqrt.f32 %v3282_v12 }
 0xf47   : > { %v4525_v6 = vpop.eup %4524 }
 0xf48   : > { %v4527_v16 = vpop.eup %4526  ;;  %v3291_v17 = vmul.f32 %v4525_v6, %v3254_v1 }
 0xf49   : > { %v3289_v8 = vmul.f32 %v4527_v16, %v3252_v51 }
 0xf4a   : > { %v3301_v46 = vmul.f32 %v3788_v31, %v3291_v17 }
 0xf4b   : > { %v4529_v40 = vpop.eup %4528  ;;  %v3299_v22 = vmul.f32 %v3788_v31, %v3289_v8 }
 0xf4c   : > { %v4531_v50 = vpop.eup %4530  ;;  %3305 = vst [vmem:[#allocation25 + $0x10] sm:$0xff] %v3301_v46  ;;  %v3292_v25 = vmul.f32 %v4529_v40, %v3255_v61 }
 0xf4d   : > { %3303 = vst [vmem:[#allocation25] sm:$0xff] %v3299_v22  ;;  %v3290_v30 = vmul.f32 %v4531_v50, %v3253_v14 }
 0xf4e   : > { %v3302_v45 = vmul.f32 %v3788_v31, %v3292_v25 }
 0xf4f   : > { %v3300_v38 = vmul.f32 %v3788_v31, %v3290_v30 }
 0xf50   : > { %3306 = vst [vmem:[#allocation25 + $0x18] sm:$0xff] %v3302_v45 }
 0xf51   : > { %3304 = vst [vmem:[#allocation25 + $0x8] sm:$0xff] %v3300_v38 }
 0xf52 PF: > { %s6273_s19 = sld [smem:[#allocation37_spill]]  ;;  %s5010_s1 = smov [#allocation25]  }
 0xf53   : > { %s3313_s2 = sshll.u32 %s5010_s1, 4  ;;  %s3314_s2 = int_to_ptr.vmem [resolvable:$true] %s3313_s2 }
 0xf54   : > { %s4896_s25 = scalar_lea.vmem %s3314_s2, 512  ;;  %p4903_p4 = scmp.lt.s32.totalorder %s3314_s2, %s3314_s2 }
 0xf55   : > { %p4897_p8 = scmp.ne.s32.totalorder %s3314_s2, %s4896_s25  ;;  %p4904_p7 = scmp.lt.s32.totalorder %s4896_s25, %s4896_s25 }
 0xf57   : > { %p4905_p0 = por %p4904_p7, %p4903_p4 }
 0xf58   : > { %p4221_p1 = scmp.eq.s32.totalorder %s6273_s19, 1 }
 0xf5a   : > { %p4898_p9 = pnand %p4897_p8, %p4221_p1 }
 0xf5c   : > { %p4899_p2 = pneg %p4898_p9 }
 0xf5e   : > { %p4906_p3 = pnand %p4905_p0, %p4899_p2 }
 0xf60   : > { %4909 = shalt.err (!%p4906_p3)
}
 0xf61   : > { %s6274_s24 = sld [smem:[#allocation57_spill]] }
 0xf67   : > { %s4910_s17 = scalar_lea.hbm %s6274_s24, 512 }
 0xf68   : > { %p4911_p6 = scmp.ne.s32.totalorder %s6274_s24, %s4910_s17  ;;  %p4916_p12 = scmp.lt.u32.totalorder %s4910_s17, %s6274_s24 }
 0xf6a   : > { %p4912_p10 = pnand %p4911_p6, %p4221_p1 }
 0xf6c   : > { %p4913_p11 = pneg %p4912_p10 }
 0xf6e   : > { %p4918_p13 = pnand %p4916_p12, %p4913_p11 }
 0xf70   : > { %4921 = shalt.err (!%p4918_p13)
}
 0xf71   : > { %s5011_s18 = smov 128   ;;  %s5012_s14 = smov 8  }
 0xf72   : > { %4171 = dma.vmem_to_hbm [thread:$0]  (%p4221_p1), %s3314_s2, 512, %s6274_s24, [#allocation7], %s5011_s18, %s5011_s18, %s5012_s14  }
 0xf73   : > { %4969 = dma.done.wait (%p4221_p1), [#allocation7], 512  }
 0xf74   : > { %4971 = vsyncadd (%p4221_p1), [#allocation7], 4294966784 }
 0xf75 PF: > { %s6275_s30 = sld [smem:[#allocation40_spill]]  ;;  %s6276_s29 = sld [smem:[#allocation35_spill]] }
 0xf76   : > { %s6277_s0 = sld [smem:[#allocation36_spill]]  ;;  %s6278_s5 = sld [smem:[#allocation41_spill]] }
 0xf7b   : > { %p46_p5 = scmp.ge.s32.totalorder %s6275_s30, 4  }
 0xf7d   :  { %48 = sbr.rel (!%p46_p5) target bundleno = 37 (0x25), region = 267 }
 0xf84   :  { %3329 = vsyncpa [#allocation6], 1 }
 0xf85   :  { %3331 = vsyncpa [#allocation6 + $0x1], 1 }
 0xf86   :  { %3332 = vsyncpa [#allocation9], 1 }
 0xf87   :  { %3333 = vsyncpa [#allocation12], 1 }
 0xf88   :  { %3335 = vsyncpa [#allocation12 + $0x1], 1 }
 0xf89   :  { %3336 = vsyncpa [#allocation15], 1 }
 0xf8a   :  { %3338 = vsyncpa [#allocation15 + $0x1], 1 }
 0xf8b   :  { %3339 = vsyncpa [#allocation18], 1 }
 0xf8c   :  { %3341 = vsyncpa [#allocation18 + $0x1], 1 }
 0xf8d   :  { %3342 = vsyncpa [#allocation21], 1 }
 0xf8e   :  { %3344 = vsyncpa [#allocation21 + $0x1], 1 }
 0xf8f   :  { %3345 = vsyncpa [#allocation24], 1 }
 0xf90   :  { %3346 = vsyncpa [#allocation7], 1 }
 0xf91   :  { %3348 = vsyncpa [#allocation7 + $0x1], 1 }

</bundles_post_ra>
